<compile_context>
chip_gen: v7x
topology: tpu7x:2x2x1
jax: 0.10.0
libtpu: 0.0.40
codegen_flags: <defaults>
</compile_context>

<pallas_src>
import functools

import jax
import jax.numpy as jnp
from jax.experimental import pallas as pl
from jax.experimental.pallas import tpu as pltpu

# ----------------------------- model constants ------------------------------
NUM_FEATURES = 60          # self.num_features
N_CODES = 5                # self.n_diagnosis_codes
EMB = 30                   # self.emb_size
NEW_FEATURES = 20          # self.num_new_features
HIDDEN = 30                # self.hidden_size
CLASSES = 3                # self.num_classes
EPS = 1e-5                 # nn.BatchNorm1d default eps

D_IN = NUM_FEATURES * N_CODES      # 300
D_IN_PAD = 384                     # 3 * 128 (K padding for the first matmul)
D_H1_RAW = NEW_FEATURES * EMB      # 600
D_H1 = 640                         # 5 * 128
D2 = 512
D3 = 128
D4 = 128                           # HIDDEN=30 padded to 128 lanes
D5 = 128                           # CLASSES=3 padded to 128 lanes

# Matmul operand dtype AND storage dtype for x2 / y2 / y3 / y4 in HBM.
# (Set jnp.float32 for exact f32 semantics; bf16 halves activation traffic.)
MM_DTYPE = jnp.bfloat16

_TILE1_CAP = 2048                  # stage-1 batch tile cap
_TILE2_CAP = 4096                  # stages 2-4 batch tile cap (VMEM-safe on v7x)


def _default_vmem_limit():
    """Generation-aware scoped-VMEM limit (leave headroom below physical)."""
    cap = 64 * 1024 * 1024
    try:  # v5e/v6e: 128 MiB physical; v7x: 64 MiB physical
        cap = int(pltpu.get_tpu_info().vmem_capacity_bytes)
    except Exception:
        pass
    return max(48 * 1024 * 1024, min(cap * 3 // 4, 100 * 1024 * 1024))


_VMEM_LIMIT = _default_vmem_limit()


# ------------------------------- kernels ------------------------------------
def _bn_stats_accumulate_finalize(y, g_ref, be_ref, sa_ref, sb_ref, *,
                                  tile_b, batch, needs_mask):
    """Accumulate per-channel sum / sum-of-squares of f32 `y` across batch tiles.

    On the last grid step the accumulators are converted in place into the
    folded BatchNorm affine (training-mode, full-batch biased statistics):
        sa <- gamma * rsqrt(var + eps)      (scale)
        sb <- beta  - mean * scale          (shift)
    so the consumer stage only needs `y * scale + shift`.
    Padded batch rows (zero rows) are excluded; the mask is applied only on
    the last tile, which is the only tile that can contain pad rows.
    """
    i = pl.program_id(0)
    last = pl.num_programs(0) - 1

    @pl.when(i == 0)
    def _init():
        sa_ref[...] = jnp.zeros_like(sa_ref)
        sb_ref[...] = jnp.zeros_like(sb_ref)

    if needs_mask:
        @pl.when(i != last)
        def _acc_full():
            sa_ref[...] += jnp.sum(y, axis=0, keepdims=True)
            sb_ref[...] += jnp.sum(y * y, axis=0, keepdims=True)

        @pl.when(i == last)
        def _acc_masked():
            row = i * tile_b + jax.lax.broadcasted_iota(jnp.int32, (tile_b, 1), 0)
            valid = (row < batch).astype(jnp.float32)
            ym = y * valid
            sa_ref[...] += jnp.sum(ym, axis=0, keepdims=True)
            sb_ref[...] += jnp.sum(ym * y, axis=0, keepdims=True)
    else:
        sa_ref[...] += jnp.sum(y, axis=0, keepdims=True)
        sb_ref[...] += jnp.sum(y * y, axis=0, keepdims=True)

    @pl.when(i == last)
    def _finalize():
        inv_b = jnp.float32(1.0 / batch)
        mean = sa_ref[...] * inv_b
        var = jnp.maximum(sb_ref[...] * inv_b - mean * mean, 0.0)
        scale = g_ref[...] * jax.lax.rsqrt(var + EPS)
        sa_ref[...] = scale
        sb_ref[...] = be_ref[...] - mean * scale


def _stage_in_kernel(x_ref, w1_ref, b1_ref, w2_ref, g_ref, be_ref,
                     y_ref, sa_ref, sb_ref, *, tile_b, batch, needs_mask):
    """x -> [fused emb-sum + fc + relu + flatten] -> mlp[0] linear, + BN2 stats.

    mlp[0]'s bias is dropped: it cancels exactly under the following BN."""
    x = x_ref[...].astype(MM_DTYPE)
    h1 = jnp.dot(x, w1_ref[...], preferred_element_type=jnp.float32) + b1_ref[...]
    h1 = jnp.maximum(h1, 0.0)
    y = jnp.dot(h1.astype(MM_DTYPE), w2_ref[...], preferred_element_type=jnp.float32)
    y_ref[...] = y.astype(y_ref.dtype)          # bf16 HBM storage
    _bn_stats_accumulate_finalize(y, g_ref, be_ref, sa_ref, sb_ref,
                                  tile_b=tile_b, batch=batch, needs_mask=needs_mask)


def _stage_mid_kernel(y_in_ref, scale_ref, shift_ref, w_ref, g_ref, be_ref,
                      y_ref, sa_ref, sb_ref, *, tile_b, batch, needs_mask):
    """BN(prev) -> relu -> linear (bias dropped; cancels under next BN), + BN stats."""
    y_in = y_in_ref[...].astype(jnp.float32)
    h = jnp.maximum(y_in * scale_ref[...] + shift_ref[...], 0.0)
    y = jnp.dot(h.astype(MM_DTYPE), w_ref[...], preferred_element_type=jnp.float32)
    y_ref[...] = y.astype(y_ref.dtype)          # bf16 HBM storage
    _bn_stats_accumulate_finalize(y, g_ref, be_ref, sa_ref, sb_ref,
                                  tile_b=tile_b, batch=batch, needs_mask=needs_mask)


def _stage_out_kernel(y_in_ref, scale_ref, shift_ref, w_ref, b_ref, out_ref):
    """BN(prev) -> relu -> classifier -> masked softmax over the real classes."""
    y_in = y_in_ref[...].astype(jnp.float32)
    h = jnp.maximum(y_in * scale_ref[...] + shift_ref[...], 0.0)
    logits = jnp.dot(h.astype(MM_DTYPE), w_ref[...],
                     preferred_element_type=jnp.float32) + b_ref[...]
    col = jax.lax.broadcasted_iota(jnp.int32, logits.shape, 1)
    logits = jnp.where(col < CLASSES, logits, jnp.float32(-1e30))  # mask pad lanes
    m = jnp.max(logits, axis=-1, keepdims=True)
    e = jnp.exp(logits - m)
    denom = jnp.sum(e, axis=-1, keepdims=True)
    out_ref[...] = e * pl.reciprocal(denom, approx=True)


# ------------------------------- wrapper -------------------------------------
def _round_up(n, m):
    return (n + m - 1) // m * m


def _tiled(tile_b, cols):
    return pl.BlockSpec((tile_b, cols), lambda i: (i, 0))


def _resident(shape):
    return pl.BlockSpec(shape, lambda i: (0, 0))


def _pick_tiles(B, tile_b):
    """Per-stage batch tiles.  tile1 for stage 1, tile2 for stages 2-4; both
    divide b_pad, and b_pad is a multiple of 16 (bf16 sublane packing)."""
    if tile_b is not None:
        t = int(tile_b)
        return t, t, _round_up(B, t)
    tile1 = min(_TILE1_CAP, _round_up(B, 16))
    b_pad = _round_up(B, tile1)
    n1 = b_pad // tile1
    tile2 = tile1
    for cand in range(min(n1, _TILE2_CAP // tile1), 0, -1):
        if n1 % cand == 0:
            tile2 = tile1 * cand
            break
    return tile1, tile2, b_pad


@functools.partial(jax.jit, static_argnames=("tile_b",))
def mlp_forward(x, kp, tile_b=None):
    B = x.shape[0]
    tile1, tile2, b_pad = _pick_tiles(B, tile_b)
    n1 = b_pad // tile1
    n2 = b_pad // tile2
    needs_mask = b_pad != B

    # Padded input stored in bf16: compute numerics are identical (the kernel
    # casts to MM_DTYPE before the first dot anyway) and stage-1 DMA is halved.
    x2 = x.reshape(B, D_IN).astype(MM_DTYPE)
    x2 = jnp.pad(x2, ((0, b_pad - B), (0, D_IN_PAD - D_IN)))

    seq_params = pltpu.CompilerParams(          # BN stats accumulate across tiles
        dimension_semantics=("arbitrary",), vmem_limit_bytes=_VMEM_LIMIT)
    par_params = pltpu.CompilerParams(          # final stage has no cross-tile coupling
        dimension_semantics=("parallel",), vmem_limit_bytes=_VMEM_LIMIT)

    kw1 = dict(tile_b=tile1, batch=B, needs_mask=needs_mask)
    kw2 = dict(tile_b=tile2, batch=B, needs_mask=needs_mask)

    # stage 1: x -> h1 (fused emb+fc+relu) -> y2 = h1 @ W2, BN2 stats
    y2, sc2, sh2 = pl.pallas_call(
        functools.partial(_stage_in_kernel, **kw1),
        grid=(n1,),
        in_specs=[
            _tiled(tile1, D_IN_PAD),
            _resident((D_IN_PAD, D_H1)), _resident((1, D_H1)),
            _resident((D_H1, D2)),
            _resident((1, D2)), _resident((1, D2)),
        ],
        out_specs=[_tiled(tile1, D2), _resident((1, D2)), _resident((1, D2))],
        out_shape=[
            jax.ShapeDtypeStruct((b_pad, D2), MM_DTYPE),
            jax.ShapeDtypeStruct((1, D2), jnp.float32),
            jax.ShapeDtypeStruct((1, D2), jnp.float32),
        ],
        compiler_params=seq_params,
    )(x2, kp["W1"], kp["b1"], kp["W2"], kp["g2"], kp["be2"])

    # stage 2: BN2 -> relu -> y3 = h2 @ W3, BN3 stats
    y3, sc3, sh3 = pl.pallas_call(
        functools.partial(_stage_mid_kernel, **kw2),
        grid=(n2,),
        in_specs=[
            _tiled(tile2, D2), _resident((1, D2)), _resident((1, D2)),
            _resident((D2, D3)),
            _resident((1, D3)), _resident((1, D3)),
        ],
        out_specs=[_tiled(tile2, D3), _resident((1, D3)), _resident((1, D3))],
        out_shape=[
            jax.ShapeDtypeStruct((b_pad, D3), MM_DTYPE),
            jax.ShapeDtypeStruct((1, D3), jnp.float32),
            jax.ShapeDtypeStruct((1, D3), jnp.float32),
        ],
        compiler_params=seq_params,
    )(y2, sc2, sh2, kp["W3"], kp["g3"], kp["be3"])

    # stage 3: BN3 -> relu -> y4 = h3 @ W4 (HIDDEN padded to 128), BN4 stats
    y4, sc4, sh4 = pl.pallas_call(
        functools.partial(_stage_mid_kernel, **kw2),
        grid=(n2,),
        in_specs=[
            _tiled(tile2, D3), _resident((1, D3)), _resident((1, D3)),
            _resident((D3, D4)),
            _resident((1, D4)), _resident((1, D4)),
        ],
        out_specs=[_tiled(tile2, D4), _resident((1, D4)), _resident((1, D4))],
        out_shape=[
            jax.ShapeDtypeStruct((b_pad, D4), MM_DTYPE),
            jax.ShapeDtypeStruct((1, D4), jnp.float32),
            jax.ShapeDtypeStruct((1, D4), jnp.float32),
        ],
        compiler_params=seq_params,
    )(y3, sc3, sh3, kp["W4"], kp["g4"], kp["be4"])

    # stage 4: BN4 -> relu -> classifier -> softmax.  Output kept f32 for
    # fidelity of the final probabilities (small buffer: 512 B/row).
    probs = pl.pallas_call(
        _stage_out_kernel,
        grid=(n2,),
        in_specs=[
            _tiled(tile2, D4), _resident((1, D4)), _resident((1, D4)),
            _resident((D4, D5)), _resident((1, D5)),
        ],
        out_specs=_tiled(tile2, D5),
        out_shape=jax.ShapeDtypeStruct((b_pad, D5), jnp.float32),
        compiler_params=par_params,
    )(y4, sc4, sh4, kp["W5"], kp["b5"])

    return probs[:B, :CLASSES]


# --------------------------- parameter handling ------------------------------
def init_params(key):
    """PyTorch-equivalent (un-fused, f32) parameters."""
    ks = jax.random.split(key, 11)

    # nn.Embedding(5, 30, padding_idx=-1, max_norm=1.0)
    E = jax.random.normal(ks[0], (N_CODES, EMB), jnp.float32)
    E = E.at[N_CODES - 1].set(0.0)
    norms = jnp.linalg.norm(E, axis=1, keepdims=True)
    E = jnp.where(norms > 1.0, E / jnp.maximum(norms, 1e-12), E)

    def linear(kw, kb, fan_in, fan_out):
        bound = float(fan_in) ** -0.5
        w = jax.random.uniform(kw, (fan_out, fan_in), jnp.float32, -bound, bound)
        b = jax.random.uniform(kb, (fan_out,), jnp.float32, -bound, bound)
        return w, b

    Wfc, bfc = linear(ks[1], ks[2], NUM_FEATURES, NEW_FEATURES)   # fc: 60 -> 20
    W2, b2 = linear(ks[3], ks[4], NEW_FEATURES * EMB, 512)        # mlp[0]
    W3, b3 = linear(ks[5], ks[6], 512, 128)                       # mlp[3]
    W4, b4 = linear(ks[7], ks[8], 128, HIDDEN)                    # mlp[6]
    W5, b5 = linear(ks[9], ks[10], HIDDEN, CLASSES)               # mlp[9]

    return dict(
        E=E, Wfc=Wfc, bfc=bfc,
        W2=W2, b2=b2, g2=jnp.ones((512,), jnp.float32), be2=jnp.zeros((512,), jnp.float32),
        W3=W3, b3=b3, g3=jnp.ones((128,), jnp.float32), be3=jnp.zeros((128,), jnp.float32),
        W4=W4, b4=b4, g4=jnp.ones((HIDDEN,), jnp.float32), be4=jnp.zeros((HIDDEN,), jnp.float32),
        W5=W5, b5=b5,
    )


def prepare_kernel_params(p):
    """One-time packing: fused W1, (in,out)-major bf16 weights, lane padding,
    (1,F) biases/gammas/betas.  Linear biases that are immediately followed by
    train-mode BatchNorm (b2, b3, b4) cancel exactly and are dropped."""
    def row(v, width):
        v = v.reshape(1, -1).astype(jnp.float32)
        return jnp.pad(v, ((0, 0), (0, width - v.shape[1])))

    # Fuse (embedding-weighted sum + fc + transposes/reshape) into one matmul:
    #   flat[b, n*EMB + e] = relu( sum_{t,c} x[b,t,c] * E[c,e] * Wfc[n,t] + bfc[n] )
    W1 = jnp.einsum("ce,nt->tcne", p["E"], p["Wfc"]).reshape(D_IN, D_H1_RAW)
    b1 = jnp.repeat(p["bfc"], EMB)

    W1 = jnp.pad(W1, ((0, D_IN_PAD - D_IN), (0, D_H1 - D_H1_RAW)))        # (384, 640)
    W2 = jnp.pad(p["W2"].T, ((0, D_H1 - D_H1_RAW), (0, 0)))               # (640, 512)
    W3 = p["W3"].T                                                        # (512, 128)
    W4 = jnp.pad(p["W4"].T, ((0, 0), (0, D4 - HIDDEN)))                   # (128, 128)
    W5 = jnp.pad(p["W5"].T, ((0, D4 - HIDDEN), (0, D5 - CLASSES)))        # (128, 128)

    return dict(
        W1=W1.astype(MM_DTYPE), b1=row(b1, D_H1),
        W2=W2.astype(MM_DTYPE), g2=row(p["g2"], D2), be2=row(p["be2"], D2),
        W3=W3.astype(MM_DTYPE), g3=row(p["g3"], D3), be3=row(p["be3"], D3),
        W4=W4.astype(MM_DTYPE), g4=row(p["g4"], D4), be4=row(p["be4"], D4),
        W5=W5.astype(MM_DTYPE), b5=row(p["b5"], D5),
    )


# ------------------------------- references ----------------------------------
def reference_from_kernel_params(x, kp):
    """Plain-JAX forward with the SAME packed weights / matmul precision /
    bf16 activation storage as the kernels — validates grid tiling, cross-tile
    BN stats, last-tile masking, padding and the softmax mask."""
    B = x.shape[0]
    x2 = jnp.pad(x.reshape(B, D_IN), ((0, 0), (0, D_IN_PAD - D_IN))).astype(MM_DTYPE)

    def lin(h, w, b=None):
        y = jnp.dot(h.astype(MM_DTYPE), w, preferred_element_type=jnp.float32)
        return y if b is None else y + b

    def bn_relu(y, g, be):
        # stats from the f32 pre-activation; normalization applied to the
        # storage-quantized (bf16) value, mirroring the kernel pipeline.
        mean = jnp.mean(y, axis=0, keepdims=True)
        var = jnp.maximum(jnp.mean(y * y, axis=0, keepdims=True) - mean * mean, 0.0)
        scale = g * jax.lax.rsqrt(var + EPS)
        shift = be - mean * scale
        y_q = y.astype(MM_DTYPE).astype(jnp.float32)
        return jnp.maximum(y_q * scale + shift, 0.0)

    h1 = jnp.maximum(lin(x2, kp["W1"], kp["b1"]), 0.0)
    h2 = bn_relu(lin(h1, kp["W2"]), kp["g2"], kp["be2"])
    h3 = bn_relu(lin(h2, kp["W3"]), kp["g3"], kp["be3"])
    h4 = bn_relu(lin(h3, kp["W4"]), kp["g4"], kp["be4"])
    logits = lin(h4, kp["W5"], kp["b5"])[:, :CLASSES]
    return jax.nn.softmax(logits, axis=1)


def reference_f32_unfused(x, p):
    """Plain-JAX mirror of the original PyTorch forward (un-fused, all f32)."""
    B = x.shape[0]
    M = jnp.einsum("btc,ce->bte", x, p["E"])                 # (x * emb_weight).sum(2)
    Mt = jnp.swapaxes(M, 1, 2)                               # transpose(1, 2)
    z = jnp.einsum("bet,nt->ben", Mt, p["Wfc"]) + p["bfc"]   # fc
    z = jax.nn.relu(z)
    z = jnp.swapaxes(z, 1, 2).reshape(B, -1)                 # transpose + reshape

    def bn(y):
        mean = y.mean(0, keepdims=True)
        var = ((y - mean) ** 2).mean(0, keepdims=True)
        return (y - mean) / jnp.sqrt(var + EPS)

    h = jax.nn.relu(bn(z @ p["W2"].T + p["b2"]))
    h = jax.nn.relu(bn(h @ p["W3"].T + p["b3"]))
    h = jax.nn.relu(bn(h @ p["W4"].T + p["b4"]))
    logits = h @ p["W5"].T + p["b5"]
    return jax.nn.softmax(logits, axis=1)


# --------------------------------- main ---------------------------------------
if __name__ == "__main__":
    key = jax.random.PRNGKey(0)
    k_params, k_x = jax.random.split(key)
    params = init_params(k_params)
    kparams = prepare_kernel_params(params)

    # Small demo batch chosen to exercise multi-tile BN accumulation AND the
    # padded-batch masking path: B=20 with tile_b=16 -> 2 batch tiles, 12 pad
    # rows confined to the last tile.  The auto path uses a single padded tile.
    B = 20
    x = jax.random.uniform(k_x, (B, NUM_FEATURES, N_CODES), jnp.float32)

    out = jax.block_until_ready(mlp_forward(x, kparams, tile_b=16))
    out_auto = jax.block_until_ready(mlp_forward(x, kparams))       # auto tile path
    assert out.shape == (B, CLASSES)

    # Tight check: same weights / matmul precision / bf16 activation storage
    # as the kernel pipeline (tolerance covers only the approx reciprocal and
    # cross-tile summation order).
    ref = reference_from_kernel_params(x, kparams)
    assert bool(jnp.allclose(out, ref, rtol=2e-3, atol=2e-3)), "kernel != mirrored reference"
    assert bool(jnp.allclose(out_auto, ref, rtol=2e-3, atol=2e-3)), "auto-tile kernel != reference"

    # Loose semantic check vs. the original un-fused f32 forward (slack only
    # covers bf16 matmul / storage rounding drift).
    ref32 = reference_f32_unfused(x, params)
    tol32 = 0.1 if MM_DTYPE == jnp.bfloat16 else 1e-3
    assert bool(jnp.allclose(out, ref32, atol=tol32)), "kernel deviates from f32 semantics"

    assert bool(jnp.allclose(out.sum(axis=1), 1.0, atol=5e-3)), "softmax rows must sum to 1"

    print("KERNEL_OK")
</pallas_src>

<mosaic_0001>
module attributes {stable_mosaic.version = 11 : i64} {
  func.func @_stage_out_kernel(%arg0: i32, %arg1: memref<16x128xbf16, #tpu.memory_space<vmem>>, %arg2: memref<1x128xf32, #tpu.memory_space<vmem>>, %arg3: memref<1x128xf32, #tpu.memory_space<vmem>>, %arg4: memref<128x128xbf16, #tpu.memory_space<vmem>>, %arg5: memref<1x128xf32, #tpu.memory_space<vmem>>, %arg6: memref<16x128xf32, #tpu.memory_space<vmem>>) attributes {dimension_semantics = [#tpu.dimension_semantics<parallel>], iteration_bounds = array<i64: 2>, scalar_prefetch = 0 : i64, scratch_operands = 0 : i64, tpu.core_type = #tpu.core_type<tc>, window_params = [{transform_indices = @transform_0, window_bounds = array<i64: 16, 128>}, {pipeline_mode = #tpu.pipeline_mode<synchronous>, transform_indices = @transform_1, window_bounds = array<i64: 1, 128>}, {pipeline_mode = #tpu.pipeline_mode<synchronous>, transform_indices = @transform_2, window_bounds = array<i64: 1, 128>}, {pipeline_mode = #tpu.pipeline_mode<synchronous>, transform_indices = @transform_3, window_bounds = array<i64: 128, 128>}, {pipeline_mode = #tpu.pipeline_mode<synchronous>, transform_indices = @transform_4, window_bounds = array<i64: 1, 128>}, {transform_indices = @transform_5, window_bounds = array<i64: 16, 128>}]} {
    %c0 = arith.constant 0 : index
    %c0_0 = arith.constant 0 : index
    %0 = vector.load %arg1[%c0, %c0_0] : memref<16x128xbf16, #tpu.memory_space<vmem>>, vector<16x128xbf16>
    %1 = arith.extf %0 : vector<16x128xbf16> to vector<16x128xf32>
    %c0_1 = arith.constant 0 : index
    %c0_2 = arith.constant 0 : index
    %2 = vector.load %arg2[%c0_1, %c0_2] : memref<1x128xf32, #tpu.memory_space<vmem>>, vector<1x128xf32>
    %3 = vector.broadcast %2 : vector<1x128xf32> to vector<16x128xf32>
    %4 = arith.mulf %1, %3 : vector<16x128xf32>
    %c0_3 = arith.constant 0 : index
    %c0_4 = arith.constant 0 : index
    %5 = vector.load %arg3[%c0_3, %c0_4] : memref<1x128xf32, #tpu.memory_space<vmem>>, vector<1x128xf32>
    %6 = vector.broadcast %5 : vector<1x128xf32> to vector<16x128xf32>
    %7 = arith.addf %4, %6 : vector<16x128xf32>
    %cst = arith.constant 0.000000e+00 : f32
    %8 = vector.broadcast %cst : f32 to vector<16x128xf32>
    %9 = arith.maximumf %7, %8 : vector<16x128xf32>
    %10 = arith.truncf %9 : vector<16x128xf32> to vector<16x128xbf16>
    %c0_5 = arith.constant 0 : index
    %c0_6 = arith.constant 0 : index
    %11 = vector.load %arg4[%c0_5, %c0_6] : memref<128x128xbf16, #tpu.memory_space<vmem>>, vector<128x128xbf16>
    %cst_7 = arith.constant dense<0.000000e+00> : vector<16x128xf32>
    %12 = tpu.matmul %10, %11, %cst_7 {dimension_numbers = #tpu.dot_dimension_numbers<[1], [0], [0], [1], [0, 0, 1, 1], [], []>} : vector<16x128xbf16>, vector<128x128xbf16>, vector<16x128xf32> -> vector<16x128xf32>
    %c0_8 = arith.constant 0 : index
    %c0_9 = arith.constant 0 : index
    %13 = vector.load %arg5[%c0_8, %c0_9] : memref<1x128xf32, #tpu.memory_space<vmem>>, vector<1x128xf32>
    %14 = vector.broadcast %13 : vector<1x128xf32> to vector<16x128xf32>
    %15 = arith.addf %12, %14 : vector<16x128xf32>
    %16 = tpu.iota {dimensions = array<i32: 1>} : vector<16x128xi32>
    %c3_i32 = arith.constant 3 : i32
    %17 = vector.broadcast %c3_i32 : i32 to vector<16x128xi32>
    %18 = arith.cmpi slt, %16, %17 : vector<16x128xi32>
    %cst_10 = arith.constant -1.000000e+30 : f32
    %19 = vector.broadcast %cst_10 : f32 to vector<16x128xf32>
    %20 = arith.select %18, %15, %19 : vector<16x128xi1>, vector<16x128xf32>
    %cst_11 = arith.constant dense<0xFF800000> : vector<16xf32>
    %21 = vector.multi_reduction <maximumf>, %20, %cst_11 [1] : vector<16x128xf32> to vector<16xf32>
    %22 = vector.shape_cast %21 : vector<16xf32> to vector<16x1xf32>
    %23 = vector.broadcast %22 : vector<16x1xf32> to vector<16x128xf32>
    %24 = arith.subf %20, %23 : vector<16x128xf32>
    %25 = math.exp %24 : vector<16x128xf32>
    %cst_12 = arith.constant dense<0.000000e+00> : vector<16xf32>
    %26 = vector.multi_reduction <add>, %25, %cst_12 [1] : vector<16x128xf32> to vector<16xf32>
    %27 = vector.shape_cast %26 : vector<16xf32> to vector<16x1xf32>
    %28 = tpu.reciprocal %27 {approx = true} : vector<16x1xf32> -> vector<16x1xf32>
    %29 = vector.broadcast %28 : vector<16x1xf32> to vector<16x128xf32>
    %30 = arith.mulf %25, %29 : vector<16x128xf32>
    %c0_13 = arith.constant 0 : index
    %c0_14 = arith.constant 0 : index
    %31 = vector.load %arg6[%c0_13, %c0_14] : memref<16x128xf32, #tpu.memory_space<vmem>>, vector<16x128xf32>
    tpu.vector_store %arg6[%c0_13, %c0_14], %30 {strides = array<i32>} : memref<16x128xf32, #tpu.memory_space<vmem>>, vector<16x128xf32>,
    return
  }
  func.func @transform_0(%arg0: i32) -> (i32, i32) {
    %c0_i32 = arith.constant 0 : i32
    %c0_i32_0 = arith.constant 0 : i32
    return %arg0, %c0_i32 : i32, i32
  }
  func.func @transform_1(%arg0: i32) -> (i32, i32) {
    %c0_i32 = arith.constant 0 : i32
    %c0_i32_0 = arith.constant 0 : i32
    %c0_i32_1 = arith.constant 0 : i32
    return %c0_i32, %c0_i32_0 : i32, i32
  }
  func.func @transform_2(%arg0: i32) -> (i32, i32) {
    %c0_i32 = arith.constant 0 : i32
    %c0_i32_0 = arith.constant 0 : i32
    %c0_i32_1 = arith.constant 0 : i32
    return %c0_i32, %c0_i32_0 : i32, i32
  }
  func.func @transform_3(%arg0: i32) -> (i32, i32) {
    %c0_i32 = arith.constant 0 : i32
    %c0_i32_0 = arith.constant 0 : i32
    %c0_i32_1 = arith.constant 0 : i32
    return %c0_i32, %c0_i32_0 : i32, i32
  }
  func.func @transform_4(%arg0: i32) -> (i32, i32) {
    %c0_i32 = arith.constant 0 : i32
    %c0_i32_0 = arith.constant 0 : i32
    %c0_i32_1 = arith.constant 0 : i32
    return %c0_i32, %c0_i32_0 : i32, i32
  }
  func.func @transform_5(%arg0: i32) -> (i32, i32) {
    %c0_i32 = arith.constant 0 : i32
    %c0_i32_0 = arith.constant 0 : i32
    return %arg0, %c0_i32 : i32, i32
  }
}

module attributes {stable_mosaic.version = 11 : i64} {
  func.func @_stage_mid_kernel(%arg0: i32, %arg1: memref<16x512xbf16, #tpu.memory_space<vmem>>, %arg2: memref<1x512xf32, #tpu.memory_space<vmem>>, %arg3: memref<1x512xf32, #tpu.memory_space<vmem>>, %arg4: memref<512x128xbf16, #tpu.memory_space<vmem>>, %arg5: memref<1x128xf32, #tpu.memory_space<vmem>>, %arg6: memref<1x128xf32, #tpu.memory_space<vmem>>, %arg7: memref<16x128xbf16, #tpu.memory_space<vmem>>, %arg8: memref<1x128xf32, #tpu.memory_space<vmem>>, %arg9: memref<1x128xf32, #tpu.memory_space<vmem>>) attributes {dimension_semantics = [#tpu.dimension_semantics<arbitrary>], iteration_bounds = array<i64: 2>, scalar_prefetch = 0 : i64, scratch_operands = 0 : i64, tpu.core_type = #tpu.core_type<tc>, window_params = [{transform_indices = @transform_0, window_bounds = array<i64: 16, 512>}, {pipeline_mode = #tpu.pipeline_mode<synchronous>, transform_indices = @transform_1, window_bounds = array<i64: 1, 512>}, {pipeline_mode = #tpu.pipeline_mode<synchronous>, transform_indices = @transform_2, window_bounds = array<i64: 1, 512>}, {pipeline_mode = #tpu.pipeline_mode<synchronous>, transform_indices = @transform_3, window_bounds = array<i64: 512, 128>}, {pipeline_mode = #tpu.pipeline_mode<synchronous>, transform_indices = @transform_4, window_bounds = array<i64: 1, 128>}, {pipeline_mode = #tpu.pipeline_mode<synchronous>, transform_indices = @transform_5, window_bounds = array<i64: 1, 128>}, {transform_indices = @transform_6, window_bounds = array<i64: 16, 128>}, {pipeline_mode = #tpu.pipeline_mode<synchronous>, transform_indices = @transform_7, window_bounds = array<i64: 1, 128>}, {pipeline_mode = #tpu.pipeline_mode<synchronous>, transform_indices = @transform_8, window_bounds = array<i64: 1, 128>}]} {
    %c0 = arith.constant 0 : index
    %c0_0 = arith.constant 0 : index
    %0 = vector.load %arg1[%c0, %c0_0] : memref<16x512xbf16, #tpu.memory_space<vmem>>, vector<16x512xbf16>
    %1 = arith.extf %0 : vector<16x512xbf16> to vector<16x512xf32>
    %c0_1 = arith.constant 0 : index
    %c0_2 = arith.constant 0 : index
    %2 = vector.load %arg2[%c0_1, %c0_2] : memref<1x512xf32, #tpu.memory_space<vmem>>, vector<1x512xf32>
    %3 = vector.broadcast %2 : vector<1x512xf32> to vector<16x512xf32>
    %4 = arith.mulf %1, %3 : vector<16x512xf32>
    %c0_3 = arith.constant 0 : index
    %c0_4 = arith.constant 0 : index
    %5 = vector.load %arg3[%c0_3, %c0_4] : memref<1x512xf32, #tpu.memory_space<vmem>>, vector<1x512xf32>
    %6 = vector.broadcast %5 : vector<1x512xf32> to vector<16x512xf32>
    %7 = arith.addf %4, %6 : vector<16x512xf32>
    %cst = arith.constant 0.000000e+00 : f32
    %8 = vector.broadcast %cst : f32 to vector<16x512xf32>
    %9 = arith.maximumf %7, %8 : vector<16x512xf32>
    %10 = arith.truncf %9 : vector<16x512xf32> to vector<16x512xbf16>
    %c0_5 = arith.constant 0 : index
    %c0_6 = arith.constant 0 : index
    %11 = vector.load %arg4[%c0_5, %c0_6] : memref<512x128xbf16, #tpu.memory_space<vmem>>, vector<512x128xbf16>
    %cst_7 = arith.constant dense<0.000000e+00> : vector<16x128xf32>
    %12 = tpu.matmul %10, %11, %cst_7 {dimension_numbers = #tpu.dot_dimension_numbers<[1], [0], [0], [1], [0, 0, 1, 1], [], []>} : vector<16x512xbf16>, vector<512x128xbf16>, vector<16x128xf32> -> vector<16x128xf32>
    %13 = arith.truncf %12 : vector<16x128xf32> to vector<16x128xbf16>
    %c0_8 = arith.constant 0 : index
    %c0_9 = arith.constant 0 : index
    %14 = vector.load %arg7[%c0_8, %c0_9] : memref<16x128xbf16, #tpu.memory_space<vmem>>, vector<16x128xbf16>
    tpu.vector_store %arg7[%c0_8, %c0_9], %13 {strides = array<i32>} : memref<16x128xbf16, #tpu.memory_space<vmem>>, vector<16x128xbf16>,
    %c0_i32 = arith.constant 0 : i32
    %15 = arith.cmpi eq, %arg0, %c0_i32 : i32
    %16 = arith.extui %15 : i1 to i32
    %c0_i32_10 = arith.constant 0 : i32
    %17 = arith.cmpi ne, %16, %c0_i32_10 : i32
    scf.if %17 {
      %cst_16 = arith.constant 0.000000e+00 : f32
      %27 = vector.broadcast %cst_16 : f32 to vector<1x128xf32>
      %c0_17 = arith.constant 0 : index
      %c0_18 = arith.constant 0 : index
      %28 = vector.load %arg8[%c0_17, %c0_18] : memref<1x128xf32, #tpu.memory_space<vmem>>, vector<1x128xf32>
      tpu.vector_store %arg8[%c0_17, %c0_18], %27 {strides = array<i32>} : memref<1x128xf32, #tpu.memory_space<vmem>>, vector<1x128xf32>,
      %cst_19 = arith.constant 0.000000e+00 : f32
      %29 = vector.broadcast %cst_19 : f32 to vector<1x128xf32>
      %c0_20 = arith.constant 0 : index
      %c0_21 = arith.constant 0 : index
      %30 = vector.load %arg9[%c0_20, %c0_21] : memref<1x128xf32, #tpu.memory_space<vmem>>, vector<1x128xf32>
      tpu.vector_store %arg9[%c0_20, %c0_21], %29 {strides = array<i32>} : memref<1x128xf32, #tpu.memory_space<vmem>>, vector<1x128xf32>,
    } else {
    }
    %c1_i32 = arith.constant 1 : i32
    %18 = arith.cmpi ne, %arg0, %c1_i32 : i32
    %19 = arith.extui %18 : i1 to i32
    %c0_i32_11 = arith.constant 0 : i32
    %20 = arith.cmpi ne, %19, %c0_i32_11 : i32
    scf.if %20 {
      %c0_16 = arith.constant 0 : index
      %c0_17 = arith.constant 0 : index
      %27 = vector.load %arg8[%c0_16, %c0_17] : memref<1x128xf32, #tpu.memory_space<vmem>>, vector<1x128xf32>
      %cst_18 = arith.constant dense<0.000000e+00> : vector<128xf32>
      %28 = vector.multi_reduction <add>, %12, %cst_18 [0] : vector<16x128xf32> to vector<128xf32>
      %29 = vector.shape_cast %28 : vector<128xf32> to vector<1x128xf32>
      %30 = arith.addf %27, %29 : vector<1x128xf32>
      %c0_19 = arith.constant 0 : index
      %c0_20 = arith.constant 0 : index
      %31 = vector.load %arg8[%c0_19, %c0_20] : memref<1x128xf32, #tpu.memory_space<vmem>>, vector<1x128xf32>
      tpu.vector_store %arg8[%c0_19, %c0_20], %30 {strides = array<i32>} : memref<1x128xf32, #tpu.memory_space<vmem>>, vector<1x128xf32>,
      %c0_21 = arith.constant 0 : index
      %c0_22 = arith.constant 0 : index
      %32 = vector.load %arg9[%c0_21, %c0_22] : memref<1x128xf32, #tpu.memory_space<vmem>>, vector<1x128xf32>
      %33 = arith.mulf %12, %12 : vector<16x128xf32>
      %cst_23 = arith.constant dense<0.000000e+00> : vector<128xf32>
      %34 = vector.multi_reduction <add>, %33, %cst_23 [0] : vector<16x128xf32> to vector<128xf32>
      %35 = vector.shape_cast %34 : vector<128xf32> to vector<1x128xf32>
      %36 = arith.addf %32, %35 : vector<1x128xf32>
      %c0_24 = arith.constant 0 : index
      %c0_25 = arith.constant 0 : index
      %37 = vector.load %arg9[%c0_24, %c0_25] : memref<1x128xf32, #tpu.memory_space<vmem>>, vector<1x128xf32>
      tpu.vector_store %arg9[%c0_24, %c0_25], %36 {strides = array<i32>} : memref<1x128xf32, #tpu.memory_space<vmem>>, vector<1x128xf32>,
    } else {
    }
    %c1_i32_12 = arith.constant 1 : i32
    %21 = arith.cmpi eq, %arg0, %c1_i32_12 : i32
    %22 = arith.extui %21 : i1 to i32
    %c0_i32_13 = arith.constant 0 : i32
    %23 = arith.cmpi ne, %22, %c0_i32_13 : i32
    scf.if %23 {
      %c16_i32 = arith.constant 16 : i32
      %27 = arith.muli %arg0, %c16_i32 : i32
      %28 = tpu.iota {dimensions = array<i32: 0>} : vector<16x1xi32>
      %29 = vector.broadcast %27 : i32 to vector<16x1xi32>
      %30 = arith.addi %29, %28 : vector<16x1xi32>
      %c20_i32 = arith.constant 20 : i32
      %31 = vector.broadcast %c20_i32 : i32 to vector<16x1xi32>
      %32 = arith.cmpi slt, %30, %31 : vector<16x1xi32>
      %33 = arith.extui %32 : vector<16x1xi1> to vector<16x1xi32>
      %34 = arith.sitofp %33 : vector<16x1xi32> to vector<16x1xf32>
      %35 = vector.broadcast %34 : vector<16x1xf32> to vector<16x128xf32>
      %36 = arith.mulf %12, %35 : vector<16x128xf32>
      %c0_16 = arith.constant 0 : index
      %c0_17 = arith.constant 0 : index
      %37 = vector.load %arg8[%c0_16, %c0_17] : memref<1x128xf32, #tpu.memory_space<vmem>>, vector<1x128xf32>
      %cst_18 = arith.constant dense<0.000000e+00> : vector<128xf32>
      %38 = vector.multi_reduction <add>, %36, %cst_18 [0] : vector<16x128xf32> to vector<128xf32>
      %39 = vector.shape_cast %38 : vector<128xf32> to vector<1x128xf32>
      %40 = arith.addf %37, %39 : vector<1x128xf32>
      %c0_19 = arith.constant 0 : index
      %c0_20 = arith.constant 0 : index
      %41 = vector.load %arg8[%c0_19, %c0_20] : memref<1x128xf32, #tpu.memory_space<vmem>>, vector<1x128xf32>
      tpu.vector_store %arg8[%c0_19, %c0_20], %40 {strides = array<i32>} : memref<1x128xf32, #tpu.memory_space<vmem>>, vector<1x128xf32>,
      %c0_21 = arith.constant 0 : index
      %c0_22 = arith.constant 0 : index
      %42 = vector.load %arg9[%c0_21, %c0_22] : memref<1x128xf32, #tpu.memory_space<vmem>>, vector<1x128xf32>
      %43 = arith.mulf %36, %12 : vector<16x128xf32>
      %cst_23 = arith.constant dense<0.000000e+00> : vector<128xf32>
      %44 = vector.multi_reduction <add>, %43, %cst_23 [0] : vector<16x128xf32> to vector<128xf32>
      %45 = vector.shape_cast %44 : vector<128xf32> to vector<1x128xf32>
      %46 = arith.addf %42, %45 : vector<1x128xf32>
      %c0_24 = arith.constant 0 : index
      %c0_25 = arith.constant 0 : index
      %47 = vector.load %arg9[%c0_24, %c0_25] : memref<1x128xf32, #tpu.memory_space<vmem>>, vector<1x128xf32>
      tpu.vector_store %arg9[%c0_24, %c0_25], %46 {strides = array<i32>} : memref<1x128xf32, #tpu.memory_space<vmem>>, vector<1x128xf32>,
    } else {
    }
    %c1_i32_14 = arith.constant 1 : i32
    %24 = arith.cmpi eq, %arg0, %c1_i32_14 : i32
    %25 = arith.extui %24 : i1 to i32
    %c0_i32_15 = arith.constant 0 : i32
    %26 = arith.cmpi ne, %25, %c0_i32_15 : i32
    scf.if %26 {
      %c0_16 = arith.constant 0 : index
      %c0_17 = arith.constant 0 : index
      %27 = vector.load %arg8[%c0_16, %c0_17] : memref<1x128xf32, #tpu.memory_space<vmem>>, vector<1x128xf32>
      %cst_18 = arith.constant 5.000000e-02 : f32
      %28 = vector.broadcast %cst_18 : f32 to vector<1x128xf32>
      %29 = arith.mulf %27, %28 : vector<1x128xf32>
      %c0_19 = arith.constant 0 : index
      %c0_20 = arith.constant 0 : index
      %30 = vector.load %arg9[%c0_19, %c0_20] : memref<1x128xf32, #tpu.memory_space<vmem>>, vector<1x128xf32>
      %cst_21 = arith.constant 5.000000e-02 : f32
      %31 = vector.broadcast %cst_21 : f32 to vector<1x128xf32>
      %32 = arith.mulf %30, %31 : vector<1x128xf32>
      %33 = arith.mulf %29, %29 : vector<1x128xf32>
      %34 = arith.subf %32, %33 : vector<1x128xf32>
      %cst_22 = arith.constant 0.000000e+00 : f32
      %35 = vector.broadcast %cst_22 : f32 to vector<1x128xf32>
      %36 = arith.maximumf %34, %35 : vector<1x128xf32>
      %c0_23 = arith.constant 0 : index
      %c0_24 = arith.constant 0 : index
      %37 = vector.load %arg5[%c0_23, %c0_24] : memref<1x128xf32, #tpu.memory_space<vmem>>, vector<1x128xf32>
      %cst_25 = arith.constant 9.99999974E-6 : f32
      %38 = vector.broadcast %cst_25 : f32 to vector<1x128xf32>
      %39 = arith.addf %36, %38 : vector<1x128xf32>
      %40 = math.rsqrt %39 : vector<1x128xf32>
      %41 = arith.mulf %37, %40 : vector<1x128xf32>
      %c0_26 = arith.constant 0 : index
      %c0_27 = arith.constant 0 : index
      %42 = vector.load %arg8[%c0_26, %c0_27] : memref<1x128xf32, #tpu.memory_space<vmem>>, vector<1x128xf32>
      tpu.vector_store %arg8[%c0_26, %c0_27], %41 {strides = array<i32>} : memref<1x128xf32, #tpu.memory_space<vmem>>, vector<1x128xf32>,
      %c0_28 = arith.constant 0 : index
      %c0_29 = arith.constant 0 : index
      %43 = vector.load %arg6[%c0_28, %c0_29] : memref<1x128xf32, #tpu.memory_space<vmem>>, vector<1x128xf32>
      %44 = arith.mulf %29, %41 : vector<1x128xf32>
      %45 = arith.subf %43, %44 : vector<1x128xf32>
      %c0_30 = arith.constant 0 : index
      %c0_31 = arith.constant 0 : index
      %46 = vector.load %arg9[%c0_30, %c0_31] : memref<1x128xf32, #tpu.memory_space<vmem>>, vector<1x128xf32>
      tpu.vector_store %arg9[%c0_30, %c0_31], %45 {strides = array<i32>} : memref<1x128xf32, #tpu.memory_space<vmem>>, vector<1x128xf32>,
    } else {
    }
    return
  }
  func.func @transform_0(%arg0: i32) -> (i32, i32) {
    %c0_i32 = arith.constant 0 : i32
    %c0_i32_0 = arith.constant 0 : i32
    return %arg0, %c0_i32 : i32, i32
  }
  func.func @transform_1(%arg0: i32) -> (i32, i32) {
    %c0_i32 = arith.constant 0 : i32
    %c0_i32_0 = arith.constant 0 : i32
    %c0_i32_1 = arith.constant 0 : i32
    return %c0_i32, %c0_i32_0 : i32, i32
  }
  func.func @transform_2(%arg0: i32) -> (i32, i32) {
    %c0_i32 = arith.constant 0 : i32
    %c0_i32_0 = arith.constant 0 : i32
    %c0_i32_1 = arith.constant 0 : i32
    return %c0_i32, %c0_i32_0 : i32, i32
  }
  func.func @transform_3(%arg0: i32) -> (i32, i32) {
    %c0_i32 = arith.constant 0 : i32
    %c0_i32_0 = arith.constant 0 : i32
    %c0_i32_1 = arith.constant 0 : i32
    return %c0_i32, %c0_i32_0 : i32, i32
  }
  func.func @transform_4(%arg0: i32) -> (i32, i32) {
    %c0_i32 = arith.constant 0 : i32
    %c0_i32_0 = arith.constant 0 : i32
    %c0_i32_1 = arith.constant 0 : i32
    return %c0_i32, %c0_i32_0 : i32, i32
  }
  func.func @transform_5(%arg0: i32) -> (i32, i32) {
    %c0_i32 = arith.constant 0 : i32
    %c0_i32_0 = arith.constant 0 : i32
    %c0_i32_1 = arith.constant 0 : i32
    return %c0_i32, %c0_i32_0 : i32, i32
  }
  func.func @transform_6(%arg0: i32) -> (i32, i32) {
    %c0_i32 = arith.constant 0 : i32
    %c0_i32_0 = arith.constant 0 : i32
    return %arg0, %c0_i32 : i32, i32
  }
  func.func @transform_7(%arg0: i32) -> (i32, i32) {
    %c0_i32 = arith.constant 0 : i32
    %c0_i32_0 = arith.constant 0 : i32
    %c0_i32_1 = arith.constant 0 : i32
    return %c0_i32, %c0_i32_0 : i32, i32
  }
  func.func @transform_8(%arg0: i32) -> (i32, i32) {
    %c0_i32 = arith.constant 0 : i32
    %c0_i32_0 = arith.constant 0 : i32
    %c0_i32_1 = arith.constant 0 : i32
    return %c0_i32, %c0_i32_0 : i32, i32
  }
}

module attributes {stable_mosaic.version = 11 : i64} {
  func.func @_stage_mid_kernel(%arg0: i32, %arg1: memref<16x128xbf16, #tpu.memory_space<vmem>>, %arg2: memref<1x128xf32, #tpu.memory_space<vmem>>, %arg3: memref<1x128xf32, #tpu.memory_space<vmem>>, %arg4: memref<128x128xbf16, #tpu.memory_space<vmem>>, %arg5: memref<1x128xf32, #tpu.memory_space<vmem>>, %arg6: memref<1x128xf32, #tpu.memory_space<vmem>>, %arg7: memref<16x128xbf16, #tpu.memory_space<vmem>>, %arg8: memref<1x128xf32, #tpu.memory_space<vmem>>, %arg9: memref<1x128xf32, #tpu.memory_space<vmem>>) attributes {dimension_semantics = [#tpu.dimension_semantics<arbitrary>], iteration_bounds = array<i64: 2>, scalar_prefetch = 0 : i64, scratch_operands = 0 : i64, tpu.core_type = #tpu.core_type<tc>, window_params = [{transform_indices = @transform_0, window_bounds = array<i64: 16, 128>}, {pipeline_mode = #tpu.pipeline_mode<synchronous>, transform_indices = @transform_1, window_bounds = array<i64: 1, 128>}, {pipeline_mode = #tpu.pipeline_mode<synchronous>, transform_indices = @transform_2, window_bounds = array<i64: 1, 128>}, {pipeline_mode = #tpu.pipeline_mode<synchronous>, transform_indices = @transform_3, window_bounds = array<i64: 128, 128>}, {pipeline_mode = #tpu.pipeline_mode<synchronous>, transform_indices = @transform_4, window_bounds = array<i64: 1, 128>}, {pipeline_mode = #tpu.pipeline_mode<synchronous>, transform_indices = @transform_5, window_bounds = array<i64: 1, 128>}, {transform_indices = @transform_6, window_bounds = array<i64: 16, 128>}, {pipeline_mode = #tpu.pipeline_mode<synchronous>, transform_indices = @transform_7, window_bounds = array<i64: 1, 128>}, {pipeline_mode = #tpu.pipeline_mode<synchronous>, transform_indices = @transform_8, window_bounds = array<i64: 1, 128>}]} {
    %c0 = arith.constant 0 : index
    %c0_0 = arith.constant 0 : index
    %0 = vector.load %arg1[%c0, %c0_0] : memref<16x128xbf16, #tpu.memory_space<vmem>>, vector<16x128xbf16>
    %1 = arith.extf %0 : vector<16x128xbf16> to vector<16x128xf32>
    %c0_1 = arith.constant 0 : index
    %c0_2 = arith.constant 0 : index
    %2 = vector.load %arg2[%c0_1, %c0_2] : memref<1x128xf32, #tpu.memory_space<vmem>>, vector<1x128xf32>
    %3 = vector.broadcast %2 : vector<1x128xf32> to vector<16x128xf32>
    %4 = arith.mulf %1, %3 : vector<16x128xf32>
    %c0_3 = arith.constant 0 : index
    %c0_4 = arith.constant 0 : index
    %5 = vector.load %arg3[%c0_3, %c0_4] : memref<1x128xf32, #tpu.memory_space<vmem>>, vector<1x128xf32>
    %6 = vector.broadcast %5 : vector<1x128xf32> to vector<16x128xf32>
    %7 = arith.addf %4, %6 : vector<16x128xf32>
    %cst = arith.constant 0.000000e+00 : f32
    %8 = vector.broadcast %cst : f32 to vector<16x128xf32>
    %9 = arith.maximumf %7, %8 : vector<16x128xf32>
    %10 = arith.truncf %9 : vector<16x128xf32> to vector<16x128xbf16>
    %c0_5 = arith.constant 0 : index
    %c0_6 = arith.constant 0 : index
    %11 = vector.load %arg4[%c0_5, %c0_6] : memref<128x128xbf16, #tpu.memory_space<vmem>>, vector<128x128xbf16>
    %cst_7 = arith.constant dense<0.000000e+00> : vector<16x128xf32>
    %12 = tpu.matmul %10, %11, %cst_7 {dimension_numbers = #tpu.dot_dimension_numbers<[1], [0], [0], [1], [0, 0, 1, 1], [], []>} : vector<16x128xbf16>, vector<128x128xbf16>, vector<16x128xf32> -> vector<16x128xf32>
    %13 = arith.truncf %12 : vector<16x128xf32> to vector<16x128xbf16>
    %c0_8 = arith.constant 0 : index
    %c0_9 = arith.constant 0 : index
    %14 = vector.load %arg7[%c0_8, %c0_9] : memref<16x128xbf16, #tpu.memory_space<vmem>>, vector<16x128xbf16>
    tpu.vector_store %arg7[%c0_8, %c0_9], %13 {strides = array<i32>} : memref<16x128xbf16, #tpu.memory_space<vmem>>, vector<16x128xbf16>,
    %c0_i32 = arith.constant 0 : i32
    %15 = arith.cmpi eq, %arg0, %c0_i32 : i32
    %16 = arith.extui %15 : i1 to i32
    %c0_i32_10 = arith.constant 0 : i32
    %17 = arith.cmpi ne, %16, %c0_i32_10 : i32
    scf.if %17 {
      %cst_16 = arith.constant 0.000000e+00 : f32
      %27 = vector.broadcast %cst_16 : f32 to vector<1x128xf32>
      %c0_17 = arith.constant 0 : index
      %c0_18 = arith.constant 0 : index
      %28 = vector.load %arg8[%c0_17, %c0_18] : memref<1x128xf32, #tpu.memory_space<vmem>>, vector<1x128xf32>
      tpu.vector_store %arg8[%c0_17, %c0_18], %27 {strides = array<i32>} : memref<1x128xf32, #tpu.memory_space<vmem>>, vector<1x128xf32>,
      %cst_19 = arith.constant 0.000000e+00 : f32
      %29 = vector.broadcast %cst_19 : f32 to vector<1x128xf32>
      %c0_20 = arith.constant 0 : index
      %c0_21 = arith.constant 0 : index
      %30 = vector.load %arg9[%c0_20, %c0_21] : memref<1x128xf32, #tpu.memory_space<vmem>>, vector<1x128xf32>
      tpu.vector_store %arg9[%c0_20, %c0_21], %29 {strides = array<i32>} : memref<1x128xf32, #tpu.memory_space<vmem>>, vector<1x128xf32>,
    } else {
    }
    %c1_i32 = arith.constant 1 : i32
    %18 = arith.cmpi ne, %arg0, %c1_i32 : i32
    %19 = arith.extui %18 : i1 to i32
    %c0_i32_11 = arith.constant 0 : i32
    %20 = arith.cmpi ne, %19, %c0_i32_11 : i32
    scf.if %20 {
      %c0_16 = arith.constant 0 : index
      %c0_17 = arith.constant 0 : index
      %27 = vector.load %arg8[%c0_16, %c0_17] : memref<1x128xf32, #tpu.memory_space<vmem>>, vector<1x128xf32>
      %cst_18 = arith.constant dense<0.000000e+00> : vector<128xf32>
      %28 = vector.multi_reduction <add>, %12, %cst_18 [0] : vector<16x128xf32> to vector<128xf32>
      %29 = vector.shape_cast %28 : vector<128xf32> to vector<1x128xf32>
      %30 = arith.addf %27, %29 : vector<1x128xf32>
      %c0_19 = arith.constant 0 : index
      %c0_20 = arith.constant 0 : index
      %31 = vector.load %arg8[%c0_19, %c0_20] : memref<1x128xf32, #tpu.memory_space<vmem>>, vector<1x128xf32>
      tpu.vector_store %arg8[%c0_19, %c0_20], %30 {strides = array<i32>} : memref<1x128xf32, #tpu.memory_space<vmem>>, vector<1x128xf32>,
      %c0_21 = arith.constant 0 : index
      %c0_22 = arith.constant 0 : index
      %32 = vector.load %arg9[%c0_21, %c0_22] : memref<1x128xf32, #tpu.memory_space<vmem>>, vector<1x128xf32>
      %33 = arith.mulf %12, %12 : vector<16x128xf32>
      %cst_23 = arith.constant dense<0.000000e+00> : vector<128xf32>
      %34 = vector.multi_reduction <add>, %33, %cst_23 [0] : vector<16x128xf32> to vector<128xf32>
      %35 = vector.shape_cast %34 : vector<128xf32> to vector<1x128xf32>
      %36 = arith.addf %32, %35 : vector<1x128xf32>
      %c0_24 = arith.constant 0 : index
      %c0_25 = arith.constant 0 : index
      %37 = vector.load %arg9[%c0_24, %c0_25] : memref<1x128xf32, #tpu.memory_space<vmem>>, vector<1x128xf32>
      tpu.vector_store %arg9[%c0_24, %c0_25], %36 {strides = array<i32>} : memref<1x128xf32, #tpu.memory_space<vmem>>, vector<1x128xf32>,
    } else {
    }
    %c1_i32_12 = arith.constant 1 : i32
    %21 = arith.cmpi eq, %arg0, %c1_i32_12 : i32
    %22 = arith.extui %21 : i1 to i32
    %c0_i32_13 = arith.constant 0 : i32
    %23 = arith.cmpi ne, %22, %c0_i32_13 : i32
    scf.if %23 {
      %c16_i32 = arith.constant 16 : i32
      %27 = arith.muli %arg0, %c16_i32 : i32
      %28 = tpu.iota {dimensions = array<i32: 0>} : vector<16x1xi32>
      %29 = vector.broadcast %27 : i32 to vector<16x1xi32>
      %30 = arith.addi %29, %28 : vector<16x1xi32>
      %c20_i32 = arith.constant 20 : i32
      %31 = vector.broadcast %c20_i32 : i32 to vector<16x1xi32>
      %32 = arith.cmpi slt, %30, %31 : vector<16x1xi32>
      %33 = arith.extui %32 : vector<16x1xi1> to vector<16x1xi32>
      %34 = arith.sitofp %33 : vector<16x1xi32> to vector<16x1xf32>
      %35 = vector.broadcast %34 : vector<16x1xf32> to vector<16x128xf32>
      %36 = arith.mulf %12, %35 : vector<16x128xf32>
      %c0_16 = arith.constant 0 : index
      %c0_17 = arith.constant 0 : index
      %37 = vector.load %arg8[%c0_16, %c0_17] : memref<1x128xf32, #tpu.memory_space<vmem>>, vector<1x128xf32>
      %cst_18 = arith.constant dense<0.000000e+00> : vector<128xf32>
      %38 = vector.multi_reduction <add>, %36, %cst_18 [0] : vector<16x128xf32> to vector<128xf32>
      %39 = vector.shape_cast %38 : vector<128xf32> to vector<1x128xf32>
      %40 = arith.addf %37, %39 : vector<1x128xf32>
      %c0_19 = arith.constant 0 : index
      %c0_20 = arith.constant 0 : index
      %41 = vector.load %arg8[%c0_19, %c0_20] : memref<1x128xf32, #tpu.memory_space<vmem>>, vector<1x128xf32>
      tpu.vector_store %arg8[%c0_19, %c0_20], %40 {strides = array<i32>} : memref<1x128xf32, #tpu.memory_space<vmem>>, vector<1x128xf32>,
      %c0_21 = arith.constant 0 : index
      %c0_22 = arith.constant 0 : index
      %42 = vector.load %arg9[%c0_21, %c0_22] : memref<1x128xf32, #tpu.memory_space<vmem>>, vector<1x128xf32>
      %43 = arith.mulf %36, %12 : vector<16x128xf32>
      %cst_23 = arith.constant dense<0.000000e+00> : vector<128xf32>
      %44 = vector.multi_reduction <add>, %43, %cst_23 [0] : vector<16x128xf32> to vector<128xf32>
      %45 = vector.shape_cast %44 : vector<128xf32> to vector<1x128xf32>
      %46 = arith.addf %42, %45 : vector<1x128xf32>
      %c0_24 = arith.constant 0 : index
      %c0_25 = arith.constant 0 : index
      %47 = vector.load %arg9[%c0_24, %c0_25] : memref<1x128xf32, #tpu.memory_space<vmem>>, vector<1x128xf32>
      tpu.vector_store %arg9[%c0_24, %c0_25], %46 {strides = array<i32>} : memref<1x128xf32, #tpu.memory_space<vmem>>, vector<1x128xf32>,
    } else {
    }
    %c1_i32_14 = arith.constant 1 : i32
    %24 = arith.cmpi eq, %arg0, %c1_i32_14 : i32
    %25 = arith.extui %24 : i1 to i32
    %c0_i32_15 = arith.constant 0 : i32
    %26 = arith.cmpi ne, %25, %c0_i32_15 : i32
    scf.if %26 {
      %c0_16 = arith.constant 0 : index
      %c0_17 = arith.constant 0 : index
      %27 = vector.load %arg8[%c0_16, %c0_17] : memref<1x128xf32, #tpu.memory_space<vmem>>, vector<1x128xf32>
      %cst_18 = arith.constant 5.000000e-02 : f32
      %28 = vector.broadcast %cst_18 : f32 to vector<1x128xf32>
      %29 = arith.mulf %27, %28 : vector<1x128xf32>
      %c0_19 = arith.constant 0 : index
      %c0_20 = arith.constant 0 : index
      %30 = vector.load %arg9[%c0_19, %c0_20] : memref<1x128xf32, #tpu.memory_space<vmem>>, vector<1x128xf32>
      %cst_21 = arith.constant 5.000000e-02 : f32
      %31 = vector.broadcast %cst_21 : f32 to vector<1x128xf32>
      %32 = arith.mulf %30, %31 : vector<1x128xf32>
      %33 = arith.mulf %29, %29 : vector<1x128xf32>
      %34 = arith.subf %32, %33 : vector<1x128xf32>
      %cst_22 = arith.constant 0.000000e+00 : f32
      %35 = vector.broadcast %cst_22 : f32 to vector<1x128xf32>
      %36 = arith.maximumf %34, %35 : vector<1x128xf32>
      %c0_23 = arith.constant 0 : index
      %c0_24 = arith.constant 0 : index
      %37 = vector.load %arg5[%c0_23, %c0_24] : memref<1x128xf32, #tpu.memory_space<vmem>>, vector<1x128xf32>
      %cst_25 = arith.constant 9.99999974E-6 : f32
      %38 = vector.broadcast %cst_25 : f32 to vector<1x128xf32>
      %39 = arith.addf %36, %38 : vector<1x128xf32>
      %40 = math.rsqrt %39 : vector<1x128xf32>
      %41 = arith.mulf %37, %40 : vector<1x128xf32>
      %c0_26 = arith.constant 0 : index
      %c0_27 = arith.constant 0 : index
      %42 = vector.load %arg8[%c0_26, %c0_27] : memref<1x128xf32, #tpu.memory_space<vmem>>, vector<1x128xf32>
      tpu.vector_store %arg8[%c0_26, %c0_27], %41 {strides = array<i32>} : memref<1x128xf32, #tpu.memory_space<vmem>>, vector<1x128xf32>,
      %c0_28 = arith.constant 0 : index
      %c0_29 = arith.constant 0 : index
      %43 = vector.load %arg6[%c0_28, %c0_29] : memref<1x128xf32, #tpu.memory_space<vmem>>, vector<1x128xf32>
      %44 = arith.mulf %29, %41 : vector<1x128xf32>
      %45 = arith.subf %43, %44 : vector<1x128xf32>
      %c0_30 = arith.constant 0 : index
      %c0_31 = arith.constant 0 : index
      %46 = vector.load %arg9[%c0_30, %c0_31] : memref<1x128xf32, #tpu.memory_space<vmem>>, vector<1x128xf32>
      tpu.vector_store %arg9[%c0_30, %c0_31], %45 {strides = array<i32>} : memref<1x128xf32, #tpu.memory_space<vmem>>, vector<1x128xf32>,
    } else {
    }
    return
  }
  func.func @transform_0(%arg0: i32) -> (i32, i32) {
    %c0_i32 = arith.constant 0 : i32
    %c0_i32_0 = arith.constant 0 : i32
    return %arg0, %c0_i32 : i32, i32
  }
  func.func @transform_1(%arg0: i32) -> (i32, i32) {
    %c0_i32 = arith.constant 0 : i32
    %c0_i32_0 = arith.constant 0 : i32
    %c0_i32_1 = arith.constant 0 : i32
    return %c0_i32, %c0_i32_0 : i32, i32
  }
  func.func @transform_2(%arg0: i32) -> (i32, i32) {
    %c0_i32 = arith.constant 0 : i32
    %c0_i32_0 = arith.constant 0 : i32
    %c0_i32_1 = arith.constant 0 : i32
    return %c0_i32, %c0_i32_0 : i32, i32
  }
  func.func @transform_3(%arg0: i32) -> (i32, i32) {
    %c0_i32 = arith.constant 0 : i32
    %c0_i32_0 = arith.constant 0 : i32
    %c0_i32_1 = arith.constant 0 : i32
    return %c0_i32, %c0_i32_0 : i32, i32
  }
  func.func @transform_4(%arg0: i32) -> (i32, i32) {
    %c0_i32 = arith.constant 0 : i32
    %c0_i32_0 = arith.constant 0 : i32
    %c0_i32_1 = arith.constant 0 : i32
    return %c0_i32, %c0_i32_0 : i32, i32
  }
  func.func @transform_5(%arg0: i32) -> (i32, i32) {
    %c0_i32 = arith.constant 0 : i32
    %c0_i32_0 = arith.constant 0 : i32
    %c0_i32_1 = arith.constant 0 : i32
    return %c0_i32, %c0_i32_0 : i32, i32
  }
  func.func @transform_6(%arg0: i32) -> (i32, i32) {
    %c0_i32 = arith.constant 0 : i32
    %c0_i32_0 = arith.constant 0 : i32
    return %arg0, %c0_i32 : i32, i32
  }
  func.func @transform_7(%arg0: i32) -> (i32, i32) {
    %c0_i32 = arith.constant 0 : i32
    %c0_i32_0 = arith.constant 0 : i32
    %c0_i32_1 = arith.constant 0 : i32
    return %c0_i32, %c0_i32_0 : i32, i32
  }
  func.func @transform_8(%arg0: i32) -> (i32, i32) {
    %c0_i32 = arith.constant 0 : i32
    %c0_i32_0 = arith.constant 0 : i32
    %c0_i32_1 = arith.constant 0 : i32
    return %c0_i32, %c0_i32_0 : i32, i32
  }
}

module attributes {stable_mosaic.version = 11 : i64} {
  func.func @_stage_in_kernel(%arg0: i32, %arg1: memref<16x384xbf16, #tpu.memory_space<vmem>>, %arg2: memref<384x640xbf16, #tpu.memory_space<vmem>>, %arg3: memref<1x640xf32, #tpu.memory_space<vmem>>, %arg4: memref<640x512xbf16, #tpu.memory_space<vmem>>, %arg5: memref<1x512xf32, #tpu.memory_space<vmem>>, %arg6: memref<1x512xf32, #tpu.memory_space<vmem>>, %arg7: memref<16x512xbf16, #tpu.memory_space<vmem>>, %arg8: memref<1x512xf32, #tpu.memory_space<vmem>>, %arg9: memref<1x512xf32, #tpu.memory_space<vmem>>) attributes {dimension_semantics = [#tpu.dimension_semantics<arbitrary>], iteration_bounds = array<i64: 2>, scalar_prefetch = 0 : i64, scratch_operands = 0 : i64, tpu.core_type = #tpu.core_type<tc>, window_params = [{transform_indices = @transform_0, window_bounds = array<i64: 16, 384>}, {pipeline_mode = #tpu.pipeline_mode<synchronous>, transform_indices = @transform_1, window_bounds = array<i64: 384, 640>}, {pipeline_mode = #tpu.pipeline_mode<synchronous>, transform_indices = @transform_2, window_bounds = array<i64: 1, 640>}, {pipeline_mode = #tpu.pipeline_mode<synchronous>, transform_indices = @transform_3, window_bounds = array<i64: 640, 512>}, {pipeline_mode = #tpu.pipeline_mode<synchronous>, transform_indices = @transform_4, window_bounds = array<i64: 1, 512>}, {pipeline_mode = #tpu.pipeline_mode<synchronous>, transform_indices = @transform_5, window_bounds = array<i64: 1, 512>}, {transform_indices = @transform_6, window_bounds = array<i64: 16, 512>}, {pipeline_mode = #tpu.pipeline_mode<synchronous>, transform_indices = @transform_7, window_bounds = array<i64: 1, 512>}, {pipeline_mode = #tpu.pipeline_mode<synchronous>, transform_indices = @transform_8, window_bounds = array<i64: 1, 512>}]} {
    %c0 = arith.constant 0 : index
    %c0_0 = arith.constant 0 : index
    %0 = vector.load %arg1[%c0, %c0_0] : memref<16x384xbf16, #tpu.memory_space<vmem>>, vector<16x384xbf16>
    %c0_1 = arith.constant 0 : index
    %c0_2 = arith.constant 0 : index
    %1 = vector.load %arg2[%c0_1, %c0_2] : memref<384x640xbf16, #tpu.memory_space<vmem>>, vector<384x640xbf16>
    %cst = arith.constant dense<0.000000e+00> : vector<16x640xf32>
    %2 = tpu.matmul %0, %1, %cst {dimension_numbers = #tpu.dot_dimension_numbers<[1], [0], [0], [1], [0, 0, 1, 1], [], []>} : vector<16x384xbf16>, vector<384x640xbf16>, vector<16x640xf32> -> vector<16x640xf32>
    %c0_3 = arith.constant 0 : index
    %c0_4 = arith.constant 0 : index
    %3 = vector.load %arg3[%c0_3, %c0_4] : memref<1x640xf32, #tpu.memory_space<vmem>>, vector<1x640xf32>
    %4 = vector.broadcast %3 : vector<1x640xf32> to vector<16x640xf32>
    %5 = arith.addf %2, %4 : vector<16x640xf32>
    %cst_5 = arith.constant 0.000000e+00 : f32
    %6 = vector.broadcast %cst_5 : f32 to vector<16x640xf32>
    %7 = arith.maximumf %5, %6 : vector<16x640xf32>
    %8 = arith.truncf %7 : vector<16x640xf32> to vector<16x640xbf16>
    %c0_6 = arith.constant 0 : index
    %c0_7 = arith.constant 0 : index
    %9 = vector.load %arg4[%c0_6, %c0_7] : memref<640x512xbf16, #tpu.memory_space<vmem>>, vector<640x512xbf16>
    %cst_8 = arith.constant dense<0.000000e+00> : vector<16x512xf32>
    %10 = tpu.matmul %8, %9, %cst_8 {dimension_numbers = #tpu.dot_dimension_numbers<[1], [0], [0], [1], [0, 0, 1, 1], [], []>} : vector<16x640xbf16>, vector<640x512xbf16>, vector<16x512xf32> -> vector<16x512xf32>
    %11 = arith.truncf %10 : vector<16x512xf32> to vector<16x512xbf16>
    %c0_9 = arith.constant 0 : index
    %c0_10 = arith.constant 0 : index
    %12 = vector.load %arg7[%c0_9, %c0_10] : memref<16x512xbf16, #tpu.memory_space<vmem>>, vector<16x512xbf16>
    tpu.vector_store %arg7[%c0_9, %c0_10], %11 {strides = array<i32>} : memref<16x512xbf16, #tpu.memory_space<vmem>>, vector<16x512xbf16>,
    %c0_i32 = arith.constant 0 : i32
    %13 = arith.cmpi eq, %arg0, %c0_i32 : i32
    %14 = arith.extui %13 : i1 to i32
    %c0_i32_11 = arith.constant 0 : i32
    %15 = arith.cmpi ne, %14, %c0_i32_11 : i32
    scf.if %15 {
      %cst_17 = arith.constant 0.000000e+00 : f32
      %25 = vector.broadcast %cst_17 : f32 to vector<1x512xf32>
      %c0_18 = arith.constant 0 : index
      %c0_19 = arith.constant 0 : index
      %26 = vector.load %arg8[%c0_18, %c0_19] : memref<1x512xf32, #tpu.memory_space<vmem>>, vector<1x512xf32>
      tpu.vector_store %arg8[%c0_18, %c0_19], %25 {strides = array<i32>} : memref<1x512xf32, #tpu.memory_space<vmem>>, vector<1x512xf32>,
      %cst_20 = arith.constant 0.000000e+00 : f32
      %27 = vector.broadcast %cst_20 : f32 to vector<1x512xf32>
      %c0_21 = arith.constant 0 : index
      %c0_22 = arith.constant 0 : index
      %28 = vector.load %arg9[%c0_21, %c0_22] : memref<1x512xf32, #tpu.memory_space<vmem>>, vector<1x512xf32>
      tpu.vector_store %arg9[%c0_21, %c0_22], %27 {strides = array<i32>} : memref<1x512xf32, #tpu.memory_space<vmem>>, vector<1x512xf32>,
    } else {
    }
    %c1_i32 = arith.constant 1 : i32
    %16 = arith.cmpi ne, %arg0, %c1_i32 : i32
    %17 = arith.extui %16 : i1 to i32
    %c0_i32_12 = arith.constant 0 : i32
    %18 = arith.cmpi ne, %17, %c0_i32_12 : i32
    scf.if %18 {
      %c0_17 = arith.constant 0 : index
      %c0_18 = arith.constant 0 : index
      %25 = vector.load %arg8[%c0_17, %c0_18] : memref<1x512xf32, #tpu.memory_space<vmem>>, vector<1x512xf32>
      %cst_19 = arith.constant dense<0.000000e+00> : vector<512xf32>
      %26 = vector.multi_reduction <add>, %10, %cst_19 [0] : vector<16x512xf32> to vector<512xf32>
      %27 = vector.shape_cast %26 : vector<512xf32> to vector<1x512xf32>
      %28 = arith.addf %25, %27 : vector<1x512xf32>
      %c0_20 = arith.constant 0 : index
      %c0_21 = arith.constant 0 : index
      %29 = vector.load %arg8[%c0_20, %c0_21] : memref<1x512xf32, #tpu.memory_space<vmem>>, vector<1x512xf32>
      tpu.vector_store %arg8[%c0_20, %c0_21], %28 {strides = array<i32>} : memref<1x512xf32, #tpu.memory_space<vmem>>, vector<1x512xf32>,
      %c0_22 = arith.constant 0 : index
      %c0_23 = arith.constant 0 : index
      %30 = vector.load %arg9[%c0_22, %c0_23] : memref<1x512xf32, #tpu.memory_space<vmem>>, vector<1x512xf32>
      %31 = arith.mulf %10, %10 : vector<16x512xf32>
      %cst_24 = arith.constant dense<0.000000e+00> : vector<512xf32>
      %32 = vector.multi_reduction <add>, %31, %cst_24 [0] : vector<16x512xf32> to vector<512xf32>
      %33 = vector.shape_cast %32 : vector<512xf32> to vector<1x512xf32>
      %34 = arith.addf %30, %33 : vector<1x512xf32>
      %c0_25 = arith.constant 0 : index
      %c0_26 = arith.constant 0 : index
      %35 = vector.load %arg9[%c0_25, %c0_26] : memref<1x512xf32, #tpu.memory_space<vmem>>, vector<1x512xf32>
      tpu.vector_store %arg9[%c0_25, %c0_26], %34 {strides = array<i32>} : memref<1x512xf32, #tpu.memory_space<vmem>>, vector<1x512xf32>,
    } else {
    }
    %c1_i32_13 = arith.constant 1 : i32
    %19 = arith.cmpi eq, %arg0, %c1_i32_13 : i32
    %20 = arith.extui %19 : i1 to i32
    %c0_i32_14 = arith.constant 0 : i32
    %21 = arith.cmpi ne, %20, %c0_i32_14 : i32
    scf.if %21 {
      %c16_i32 = arith.constant 16 : i32
      %25 = arith.muli %arg0, %c16_i32 : i32
      %26 = tpu.iota {dimensions = array<i32: 0>} : vector<16x1xi32>
      %27 = vector.broadcast %25 : i32 to vector<16x1xi32>
      %28 = arith.addi %27, %26 : vector<16x1xi32>
      %c20_i32 = arith.constant 20 : i32
      %29 = vector.broadcast %c20_i32 : i32 to vector<16x1xi32>
      %30 = arith.cmpi slt, %28, %29 : vector<16x1xi32>
      %31 = arith.extui %30 : vector<16x1xi1> to vector<16x1xi32>
      %32 = arith.sitofp %31 : vector<16x1xi32> to vector<16x1xf32>
      %33 = vector.broadcast %32 : vector<16x1xf32> to vector<16x512xf32>
      %34 = arith.mulf %10, %33 : vector<16x512xf32>
      %c0_17 = arith.constant 0 : index
      %c0_18 = arith.constant 0 : index
      %35 = vector.load %arg8[%c0_17, %c0_18] : memref<1x512xf32, #tpu.memory_space<vmem>>, vector<1x512xf32>
      %cst_19 = arith.constant dense<0.000000e+00> : vector<512xf32>
      %36 = vector.multi_reduction <add>, %34, %cst_19 [0] : vector<16x512xf32> to vector<512xf32>
      %37 = vector.shape_cast %36 : vector<512xf32> to vector<1x512xf32>
      %38 = arith.addf %35, %37 : vector<1x512xf32>
      %c0_20 = arith.constant 0 : index
      %c0_21 = arith.constant 0 : index
      %39 = vector.load %arg8[%c0_20, %c0_21] : memref<1x512xf32, #tpu.memory_space<vmem>>, vector<1x512xf32>
      tpu.vector_store %arg8[%c0_20, %c0_21], %38 {strides = array<i32>} : memref<1x512xf32, #tpu.memory_space<vmem>>, vector<1x512xf32>,
      %c0_22 = arith.constant 0 : index
      %c0_23 = arith.constant 0 : index
      %40 = vector.load %arg9[%c0_22, %c0_23] : memref<1x512xf32, #tpu.memory_space<vmem>>, vector<1x512xf32>
      %41 = arith.mulf %34, %10 : vector<16x512xf32>
      %cst_24 = arith.constant dense<0.000000e+00> : vector<512xf32>
      %42 = vector.multi_reduction <add>, %41, %cst_24 [0] : vector<16x512xf32> to vector<512xf32>
      %43 = vector.shape_cast %42 : vector<512xf32> to vector<1x512xf32>
      %44 = arith.addf %40, %43 : vector<1x512xf32>
      %c0_25 = arith.constant 0 : index
      %c0_26 = arith.constant 0 : index
      %45 = vector.load %arg9[%c0_25, %c0_26] : memref<1x512xf32, #tpu.memory_space<vmem>>, vector<1x512xf32>
      tpu.vector_store %arg9[%c0_25, %c0_26], %44 {strides = array<i32>} : memref<1x512xf32, #tpu.memory_space<vmem>>, vector<1x512xf32>,
    } else {
    }
    %c1_i32_15 = arith.constant 1 : i32
    %22 = arith.cmpi eq, %arg0, %c1_i32_15 : i32
    %23 = arith.extui %22 : i1 to i32
    %c0_i32_16 = arith.constant 0 : i32
    %24 = arith.cmpi ne, %23, %c0_i32_16 : i32
    scf.if %24 {
      %c0_17 = arith.constant 0 : index
      %c0_18 = arith.constant 0 : index
      %25 = vector.load %arg8[%c0_17, %c0_18] : memref<1x512xf32, #tpu.memory_space<vmem>>, vector<1x512xf32>
      %cst_19 = arith.constant 5.000000e-02 : f32
      %26 = vector.broadcast %cst_19 : f32 to vector<1x512xf32>
      %27 = arith.mulf %25, %26 : vector<1x512xf32>
      %c0_20 = arith.constant 0 : index
      %c0_21 = arith.constant 0 : index
      %28 = vector.load %arg9[%c0_20, %c0_21] : memref<1x512xf32, #tpu.memory_space<vmem>>, vector<1x512xf32>
      %cst_22 = arith.constant 5.000000e-02 : f32
      %29 = vector.broadcast %cst_22 : f32 to vector<1x512xf32>
      %30 = arith.mulf %28, %29 : vector<1x512xf32>
      %31 = arith.mulf %27, %27 : vector<1x512xf32>
      %32 = arith.subf %30, %31 : vector<1x512xf32>
      %cst_23 = arith.constant 0.000000e+00 : f32
      %33 = vector.broadcast %cst_23 : f32 to vector<1x512xf32>
      %34 = arith.maximumf %32, %33 : vector<1x512xf32>
      %c0_24 = arith.constant 0 : index
      %c0_25 = arith.constant 0 : index
      %35 = vector.load %arg5[%c0_24, %c0_25] : memref<1x512xf32, #tpu.memory_space<vmem>>, vector<1x512xf32>
      %cst_26 = arith.constant 9.99999974E-6 : f32
      %36 = vector.broadcast %cst_26 : f32 to vector<1x512xf32>
      %37 = arith.addf %34, %36 : vector<1x512xf32>
      %38 = math.rsqrt %37 : vector<1x512xf32>
      %39 = arith.mulf %35, %38 : vector<1x512xf32>
      %c0_27 = arith.constant 0 : index
      %c0_28 = arith.constant 0 : index
      %40 = vector.load %arg8[%c0_27, %c0_28] : memref<1x512xf32, #tpu.memory_space<vmem>>, vector<1x512xf32>
      tpu.vector_store %arg8[%c0_27, %c0_28], %39 {strides = array<i32>} : memref<1x512xf32, #tpu.memory_space<vmem>>, vector<1x512xf32>,
      %c0_29 = arith.constant 0 : index
      %c0_30 = arith.constant 0 : index
      %41 = vector.load %arg6[%c0_29, %c0_30] : memref<1x512xf32, #tpu.memory_space<vmem>>, vector<1x512xf32>
      %42 = arith.mulf %27, %39 : vector<1x512xf32>
      %43 = arith.subf %41, %42 : vector<1x512xf32>
      %c0_31 = arith.constant 0 : index
      %c0_32 = arith.constant 0 : index
      %44 = vector.load %arg9[%c0_31, %c0_32] : memref<1x512xf32, #tpu.memory_space<vmem>>, vector<1x512xf32>
      tpu.vector_store %arg9[%c0_31, %c0_32], %43 {strides = array<i32>} : memref<1x512xf32, #tpu.memory_space<vmem>>, vector<1x512xf32>,
    } else {
    }
    return
  }
  func.func @transform_0(%arg0: i32) -> (i32, i32) {
    %c0_i32 = arith.constant 0 : i32
    %c0_i32_0 = arith.constant 0 : i32
    return %arg0, %c0_i32 : i32, i32
  }
  func.func @transform_1(%arg0: i32) -> (i32, i32) {
    %c0_i32 = arith.constant 0 : i32
    %c0_i32_0 = arith.constant 0 : i32
    %c0_i32_1 = arith.constant 0 : i32
    return %c0_i32, %c0_i32_0 : i32, i32
  }
  func.func @transform_2(%arg0: i32) -> (i32, i32) {
    %c0_i32 = arith.constant 0 : i32
    %c0_i32_0 = arith.constant 0 : i32
    %c0_i32_1 = arith.constant 0 : i32
    return %c0_i32, %c0_i32_0 : i32, i32
  }
  func.func @transform_3(%arg0: i32) -> (i32, i32) {
    %c0_i32 = arith.constant 0 : i32
    %c0_i32_0 = arith.constant 0 : i32
    %c0_i32_1 = arith.constant 0 : i32
    return %c0_i32, %c0_i32_0 : i32, i32
  }
  func.func @transform_4(%arg0: i32) -> (i32, i32) {
    %c0_i32 = arith.constant 0 : i32
    %c0_i32_0 = arith.constant 0 : i32
    %c0_i32_1 = arith.constant 0 : i32
    return %c0_i32, %c0_i32_0 : i32, i32
  }
  func.func @transform_5(%arg0: i32) -> (i32, i32) {
    %c0_i32 = arith.constant 0 : i32
    %c0_i32_0 = arith.constant 0 : i32
    %c0_i32_1 = arith.constant 0 : i32
    return %c0_i32, %c0_i32_0 : i32, i32
  }
  func.func @transform_6(%arg0: i32) -> (i32, i32) {
    %c0_i32 = arith.constant 0 : i32
    %c0_i32_0 = arith.constant 0 : i32
    return %arg0, %c0_i32 : i32, i32
  }
  func.func @transform_7(%arg0: i32) -> (i32, i32) {
    %c0_i32 = arith.constant 0 : i32
    %c0_i32_0 = arith.constant 0 : i32
    %c0_i32_1 = arith.constant 0 : i32
    return %c0_i32, %c0_i32_0 : i32, i32
  }
  func.func @transform_8(%arg0: i32) -> (i32, i32) {
    %c0_i32 = arith.constant 0 : i32
    %c0_i32_0 = arith.constant 0 : i32
    %c0_i32_1 = arith.constant 0 : i32
    return %c0_i32, %c0_i32_0 : i32, i32
  }
}

</mosaic_0001>

<bundles_post_ra>
// kernel: mlp_forward.7
= control target key start
LH: loop header
LB: loop body
LE: loop exit
PB: predicated region body
PF: predicated region fallthrough
CT: control target
= control target key end

     0   :  { %s568_s18 = smov 0   ;;  %s622_s0 = inlined_call_operand.vmem [shape: bf16[32,128], index: 0, kind: input, shape index: {}]   ;;  %s623_s1 = inlined_call_operand.vmem [shape: f32[1,128], index: 1, kind: input, shape index: {}]   ;;  %s624_s2 = inlined_call_operand.vmem [shape: f32[1,128], index: 2, kind: input, shape index: {}]   ;;  %s625_s3 = inlined_call_operand.vmem [shape: bf16[128,128], index: 3, kind: input, shape index: {}]   ;;  %s626_s4 = inlined_call_operand.vmem [shape: f32[1,128], index: 4, kind: input, shape index: {}]   ;;  %s627_s5 = inlined_call_operand.vmem [shape: f32[32,128], index: 5, kind: output, shape index: {}]  }
   0x1 LB: > { %s447_s19 = sadd.s32 4294967295, %s534_s18   ;;  %p451_p0 = scmp.ge.s32.totalorder %s534_s18, 1  ;;  %s534_s18 = sphi %s568_s18, %s15_s18  }
   0x2   : > { %p188_p1 = scmp.lt.s32.totalorder %s534_s18, 3 }
   0x4   : > { %p189_p2 = pnand %p451_p0, %p188_p1 }
   0x5   : > { %v512_v0 = vld [vmem:[%s625_s3] sm:$0xff] (!%p189_p2)   ;;  %v536_v1 = vmov (!%p189_p2), 0.0   ;;  %v513_v2 = vld [vmem:[%s625_s3 + $0x8] sm:$0xff] (!%p189_p2)   ;;  %vm537_vm0 = vmmov (!%p189_p2), 0   ;;  %s452_s24 = sshll.u32 (!%p189_p2), %s447_s19, 1  ;;  %v514_v3 = vld [vmem:[%s625_s3 + $0x10] sm:$0xff] (!%p189_p2)   ;;  %v366_v21 = vlaneseq (!%p189_p2) }
   0x6   : > { %192 = sbr.rel (%p189_p2) target bundleno = 570 (0x23a), region = 40  ;;  %482 = vmatprep.subr.bf16.mxu0 (!%p189_p2), %v536_v1  ;;  %498 = vmatprep.mubr.msk.bf16.mxu0 (!%p189_p2), %vm537_vm0, %v536_v1  ;;  %p217_p3 = scmp.lt.s32.totalorder (!%p189_p2), %s452_s24, 3  ;;  %v515_v4 = vld [vmem:[%s625_s3 + $0x18] sm:$0xff] (!%p189_p2)   ;;  %v516_v8 = vld [vmem:[%s625_s3 + $0x20] sm:$0xff] (!%p189_p2)   ;;  %v517_v12 = vld [vmem:[%s625_s3 + $0x28] sm:$0xff] (!%p189_p2)  }
   0x7   : > { %483 = vmatpush3.bf16.msra.mxu0 (!%p189_p2), %v512_v0  ;;  %v456_v9 = vld [vmem:[%s623_s1] ss:$0 sm:$0xff] (!%p189_p2)  ;;  %v518_v16 = vld [vmem:[%s625_s3 + $0x30] sm:$0xff] (!%p189_p2)   ;;  %v519_v19 = vld [vmem:[%s625_s3 + $0x38] sm:$0xff] (!%p189_p2)   ;;  %v367_v22 = vand.u32 (!%p189_p2), 127, %v366_v21 }
   0x8   : > { %484 = vmatprep.subr.bf16.mxu0 (!%p189_p2), %v536_v1  ;;  %v457_v13 = vld [vmem:[%s624_s2] ss:$0 sm:$0xff] (!%p189_p2) }
   0x9   : > { %v458_v23 = vld [vmem:[%s626_s4] ss:$0 sm:$0xff] (!%p189_p2)  ;;  %vm368_vm1 = vcmp.lt.s32.totalorder (!%p189_p2), %v367_v22, 3 }
   0xb   : > { %485 = vmatpush3.bf16.msra.mxu0 (!%p189_p2), %v513_v2 }
   0xc   : > { %486 = vmatprep.subr.bf16.mxu0 (!%p189_p2), %v536_v1 }
   0xd   : > { %s629_s24 = smov (!%p217_p3, %s452_s24), 3 }
   0xe   : > { %s453_s27 = sshll.u32 %s629_s24, 2  ;;  %s455_s23 = sshll.u32 %s629_s24, 3 }
   0xf   : > { %s220_s30 = scalar_lea.vmem %s622_s0, %s453_s27  ;;  %487 = vmatpush3.bf16.msra.mxu0 %v514_v3  ;;  %s226_s27 = scalar_lea.vmem %s627_s5, %s455_s23 }
  0x10   : > { %v470_v5 = vld [vmem:[%s220_s30] sm:$0xff]   ;;  %488 = vmatprep.subr.bf16.mxu0 %v536_v1 }
  0x11   : > { %v471_v6 = vunpack.c.l.bf16 %v470_v5  ;;  %v472_v7 = vunpack.c.h.bf16 %v470_v5 }
  0x13   : > { %489 = vmatpush3.bf16.msra.mxu0 %v515_v4  ;;  %v240_v10 = vmul.f32 %v471_v6, %v456_v9  ;;  %v241_v11 = vmul.f32 %v472_v7, %v456_v9 }
  0x14   : > { %490 = vmatprep.subr.bf16.mxu0 %v536_v1 }
  0x15   : > { %v249_v14 = vadd.f32 %v457_v13, %v240_v10  ;;  %v250_v15 = vadd.f32 %v457_v13, %v241_v11 }
  0x17   : > { %491 = vmatpush3.bf16.msra.mxu0 %v516_v8  ;;  %v251_v17 = vmax.f32 %v249_v14, 0.0  ;;  %v252_v18 = vmax.f32 %v250_v15, 0.0 }
  0x18   : > { %492 = vmatprep.subr.bf16.mxu0 %v536_v1 }
  0x19   : > { %v253_v20 = vpack.c.bf16 %v252_v18, %v251_v17 }
  0x1b   : > { %493 = vmatpush3.bf16.msra.mxu0 %v517_v12 }
  0x1c   : > { %494 = vmatprep.subr.bf16.mxu0 %v536_v1 }
  0x1f   : > { %495 = vmatpush3.bf16.msra.mxu0 %v518_v16 }
  0x20   : > { %496 = vmatprep.subr.bf16.mxu0 %v536_v1 }
  0x23   : > { %497 = vmatpush3.bf16.msra.mxu0 %v519_v19 }
  0x26   : > { %499 = vmatmul.mubr.bf16.vlgmr.msra.gmra.mrb[0].mxu0 %v253_v20 }
  0xf9   : > { %v359_v24 = vpop.f32.mrb[0].mxu0 }
  0xfa   : > { %v360_v25 = vadd.f32 %v458_v23, %v359_v24  ;;  %v500_v26 = vpop.f32.mrb[1].mxu0 }
  0xfb   : > { %v362_v27 = vpop.f32.mrb[2].mxu0 }
  0xfc   : > { %v363_v28 = vadd.f32 %v458_v23, %v362_v27  ;;  %v501_v29 = vpop.f32.mrb[3].mxu0  ;;  %v369_v30 = vsel %vm368_vm1, %v360_v25, -1e+30 }
  0xfd   : > { %371 = vmax.xlane.f32.xlu0 %v369_v30 }
  0xfe   : > { %v370_v31 = vsel %vm368_vm1, %v363_v28, -1e+30 }
 0x101   : > { %373 = vmax.xlane.f32.xlu0 %v370_v31 }
 0x18a   : > { %v372_v32 = vpop.xlane.xlu0 %371 }
 0x18b   : > { %v375_v33 = vsub.f32 %v369_v30, %v372_v32 }
 0x18d   : > { %v377_v34 = vmul.f32 1.442695, %v375_v33 }
 0x18e   : > { %v374_v35 = vpop.xlane.xlu0 %373 }
 0x18f   : > { %520 = vpow2.f32 %v377_v34  ;;  %v376_v36 = vsub.f32 %v370_v31, %v374_v35 }
 0x191   : > { %v379_v37 = vmul.f32 1.442695, %v376_v36 }
 0x193   : > { %522 = vpow2.f32 %v379_v37 }
 0x199   : > { %v521_v38 = vpop.eup %520 }
 0x19a   : > { %381 = vadd.xlane.f32.xlu1 %v521_v38 }
 0x19d   : > { %v523_v39 = vpop.eup %522 }
 0x19e   : > { %383 = vadd.xlane.f32.xlu1 %v523_v39 }
 0x227   : > { %v382_v40 = vpop.xlane.xlu1 %381 }
 0x228   : > { %524 = vrcp.f32 %v382_v40 }
 0x22b   : > { %v384_v41 = vpop.xlane.xlu1 %383 }
 0x22c   : > { %526 = vrcp.f32 %v384_v41 }
 0x232   : > { %v525_v42 = vpop.eup %524 }
 0x233   : > { %v387_v43 = vmul.f32 %v525_v42, %v521_v38 }
 0x235   : > { %389 = vst [vmem:[%s226_s27] sm:$0xff] %v387_v43 }
 0x236   : > { %v527_v44 = vpop.eup %526 }
 0x237   : > { %v388_v45 = vmul.f32 %v527_v44, %v523_v39 }
 0x239   : > { %390 = vst [vmem:[%s226_s27 + $0x8] sm:$0xff] %v388_v45 }
 0x23a PF: > { %s15_s18 = sadd.s32 1, %s534_s18  }
 0x23b   : > { %p12_p4 = scmp.ge.s32.totalorder %s15_s18, 4  }
 0x23d   :  { %14 = sbr.rel (!%p12_p4) target bundleno = 1 (0x1), region = 70 }

// kernel: mlp_forward.6
= control target key start
LH: loop header
LB: loop body
LE: loop exit
PB: predicated region body
PF: predicated region fallthrough
CT: control target
= control target key end

     0   :  { %s750_s27 = smov 0   ;;  %s859_s0 = inlined_call_operand.vmem [shape: bf16[32,128], index: 0, kind: input, shape index: {}]   ;;  %s860_s1 = inlined_call_operand.vmem [shape: f32[1,128], index: 1, kind: input, shape index: {}]   ;;  %s861_s2 = inlined_call_operand.vmem [shape: f32[1,128], index: 2, kind: input, shape index: {}]   ;;  %s862_s3 = inlined_call_operand.vmem [shape: bf16[128,128], index: 3, kind: input, shape index: {}]   ;;  %s863_s4 = inlined_call_operand.vmem [shape: f32[1,128], index: 4, kind: input, shape index: {}]   ;;  %s864_s5 = inlined_call_operand.vmem [shape: f32[1,128], index: 5, kind: input, shape index: {}]   ;;  %s865_s6 = inlined_call_operand.vmem [shape: bf16[32,128], index: 6, kind: output, shape index: {0}]   ;;  %s866_s7 = inlined_call_operand.vmem [shape: f32[1,128], index: 7, kind: output, shape index: {1}]   ;;  %s867_s8 = inlined_call_operand.vmem [shape: f32[1,128], index: 8, kind: output, shape index: {2}]  }
   0x1 LB: > { %s756_s28 = sadd.s32 4294967295, %s699_s27   ;;  %p606_p0 = scmp.ge.s32.totalorder %s699_s27, 1  ;;  %s699_s27 = sphi %s750_s27, %s19_s27  }
   0x2   : > { %p258_p1 = scmp.lt.s32.totalorder %s699_s27, 3 }
   0x4   : > { %p259_p2 = pnand %p606_p0, %p258_p1 }
   0x5   : > { %v683_v0 = vld [vmem:[%s862_s3] sm:$0xff] (!%p259_p2)   ;;  %v701_v1 = vmov (!%p259_p2), 0.0   ;;  %v684_v2 = vld [vmem:[%s862_s3 + $0x8] sm:$0xff] (!%p259_p2)   ;;  %vm702_vm0 = vmmov (!%p259_p2), 0   ;;  %s607_s11 = sshll.u32 (!%p259_p2), %s756_s28, 1  ;;  %v685_v3 = vld [vmem:[%s862_s3 + $0x10] sm:$0xff] (!%p259_p2)  }
   0x6   : > { %262 = sbr.rel (%p259_p2) target bundleno = 340 (0x154), region = 44  ;;  %651 = vmatprep.subr.bf16.mxu0 (!%p259_p2), %v701_v1  ;;  %667 = vmatprep.mubr.msk.bf16.mxu0 (!%p259_p2), %vm702_vm0, %v701_v1  ;;  %p293_p3 = scmp.lt.s32.totalorder (!%p259_p2), %s607_s11, 3  ;;  %v686_v4 = vld [vmem:[%s862_s3 + $0x18] sm:$0xff] (!%p259_p2)   ;;  %v687_v8 = vld [vmem:[%s862_s3 + $0x20] sm:$0xff] (!%p259_p2)   ;;  %v688_v12 = vld [vmem:[%s862_s3 + $0x28] sm:$0xff] (!%p259_p2)  }
   0x7   : > { %652 = vmatpush3.bf16.msra.mxu0 (!%p259_p2), %v683_v0  ;;  %v611_v9 = vld [vmem:[%s860_s1] ss:$0 sm:$0xff] (!%p259_p2)  ;;  %v689_v16 = vld [vmem:[%s862_s3 + $0x30] sm:$0xff] (!%p259_p2)   ;;  %v690_v19 = vld [vmem:[%s862_s3 + $0x38] sm:$0xff] (!%p259_p2)   ;;  %p623_p4 = scmp.ne.s32.totalorder (!%p259_p2), %s756_s28, 0 }
   0x8   : > { %653 = vmatprep.subr.bf16.mxu0 (!%p259_p2), %v701_v1  ;;  %v612_v13 = vld [vmem:[%s861_s2] ss:$0 sm:$0xff] (!%p259_p2) }
   0xb   : > { %654 = vmatpush3.bf16.msra.mxu0 (!%p259_p2), %v684_v2 }
   0xc   : > { %655 = vmatprep.subr.bf16.mxu0 (!%p259_p2), %v701_v1 }
   0xd   : > { %s869_s11 = smov (!%p293_p3, %s607_s11), 3  ;;  %v703_v26 = vmov (!%p623_p4), 0.0  }
   0xe   : > { %s608_s14 = sshll.u32 %s869_s11, 2  ;;  %449 = vst [vmem:[%s866_s7] sm:$0x1] (!%p623_p4), %v703_v26  ;;  %450 = vst [vmem:[%s867_s8] sm:$0x1] (!%p623_p4), %v703_v26 }
   0xf   : > { %s296_s17 = scalar_lea.vmem %s859_s0, %s608_s14  ;;  %656 = vmatpush3.bf16.msra.mxu0 %v685_v3  ;;  %s302_s16 = scalar_lea.vmem %s865_s6, %s608_s14 }
  0x10   : > { %v634_v5 = vld [vmem:[%s296_s17] sm:$0xff]   ;;  %657 = vmatprep.subr.bf16.mxu0 %v701_v1 }
  0x11   : > { %v635_v6 = vunpack.c.l.bf16 %v634_v5  ;;  %v636_v7 = vunpack.c.h.bf16 %v634_v5 }
  0x13   : > { %658 = vmatpush3.bf16.msra.mxu0 %v686_v4  ;;  %v316_v10 = vmul.f32 %v635_v6, %v611_v9  ;;  %v317_v11 = vmul.f32 %v636_v7, %v611_v9 }
  0x14   : > { %659 = vmatprep.subr.bf16.mxu0 %v701_v1 }
  0x15   : > { %v325_v14 = vadd.f32 %v612_v13, %v316_v10  ;;  %v326_v15 = vadd.f32 %v612_v13, %v317_v11 }
  0x17   : > { %660 = vmatpush3.bf16.msra.mxu0 %v687_v8  ;;  %v327_v17 = vmax.f32 %v325_v14, 0.0  ;;  %v328_v18 = vmax.f32 %v326_v15, 0.0 }
  0x18   : > { %661 = vmatprep.subr.bf16.mxu0 %v701_v1 }
  0x19   : > { %v329_v20 = vpack.c.bf16 %v328_v18, %v327_v17 }
  0x1b   : > { %662 = vmatpush3.bf16.msra.mxu0 %v688_v12 }
  0x1c   : > { %663 = vmatprep.subr.bf16.mxu0 %v701_v1 }
  0x1f   : > { %664 = vmatpush3.bf16.msra.mxu0 %v689_v16 }
  0x20   : > { %665 = vmatprep.subr.bf16.mxu0 %v701_v1 }
  0x23   : > { %666 = vmatpush3.bf16.msra.mxu0 %v690_v19 }
  0x26   : > { %668 = vmatmul.mubr.bf16.vlgmr.msra.gmra.mrb[0].mxu0 %v329_v20 }
  0xf8   : > { %448 = sbr.rel (%p623_p4) target bundleno = 255 (0xff), region = 48 }
  0xf9   : > { %v428_v21 = vpop.f32.mrb[0].mxu0 }
  0xfa   : > { %v669_v22 = vpop.f32.mrb[1].mxu0 }
  0xfb   : > { %v431_v23 = vpop.f32.mrb[2].mxu0 }
  0xfc   : > { %v640_v24 = vpack.c.bf16 %v431_v23, %v428_v21  ;;  %v670_v25 = vpop.f32.mrb[3].mxu0 }
  0xfe   : > { %641 = vst [vmem:[%s302_s16] sm:$0xff] %v640_v24  }
  0xff PF: > { %p624_p5 = scmp.eq.s32.totalorder %s756_s28, 1 }
 0x100   : > { %v456_v27 = vadd.f32 (!%p624_p5), %v431_v23, %v428_v21  ;;  %v466_v28 = vmul.f32 (!%p624_p5), %v428_v21, %v428_v21  ;;  %v467_v29 = vmul.f32 (!%p624_p5), %v431_v23, %v431_v23  ;;  %v455_v40 = vld [vmem:[%s866_s7] sm:$0x1] (!%p624_p5) }
 0x101   : > { %454 = sbr.rel (%p624_p5) target bundleno = 275 (0x113), region = 52  ;;  %v465_v43 = vld [vmem:[%s867_s8] sm:$0x1] (!%p624_p5) }
 0x102   : > { %v457_v30 = vrot.slane (!%p624_p5), %v456_v27, 4  ;;  %v468_v31 = vadd.f32 (!%p624_p5), %v467_v29, %v466_v28 }
 0x104   : > { %v458_v32 = vadd.f32 (!%p624_p5), %v457_v30, %v456_v27  ;;  %v469_v33 = vrot.slane (!%p624_p5), %v468_v31, 4 }
 0x106   : > { %v459_v34 = vrot.slane (!%p624_p5), %v458_v32, 2  ;;  %v470_v35 = vadd.f32 (!%p624_p5), %v469_v33, %v468_v31 }
 0x108   : > { %v460_v36 = vadd.f32 %v459_v34, %v458_v32  ;;  %v471_v37 = vrot.slane %v470_v35, 2 }
 0x10a   : > { %v461_v38 = vrot.slane %v460_v36, 1  ;;  %v472_v39 = vadd.f32 %v471_v37, %v470_v35 }
 0x10c   : > { %v462_v41 = vadd.f32 %v461_v38, %v460_v36  ;;  %v473_v42 = vrot.slane %v472_v39, 1 }
 0x10e   : > { %v463_v44 = vadd.f32 %v462_v41, %v455_v40  ;;  %v474_v45 = vadd.f32 %v473_v42, %v472_v39 }
 0x110   : > { %464 = vst [vmem:[%s866_s7] sm:$0x1] %v463_v44  ;;  %v475_v46 = vadd.f32 %v474_v45, %v465_v43 }
 0x112   : > { %476 = vst [vmem:[%s867_s8] sm:$0x1] %v475_v46 }
 0x113 PF: > { %p625_p6 = scmp.ne.s32.totalorder %s756_s28, 1 }
 0x114   : > { %s626_s29 = sshll.u32 (!%p625_p6), %s756_s28, 4  ;;  %v482_v47 = vlaneseq (!%p625_p6)  ;;  %v704_v53 = vmov (!%p625_p6), 0.0   ;;  %v525_v22 = vld [vmem:[%s863_s4] sm:$0x1] (!%p625_p6) }
 0x115   : > { %480 = sbr.rel (%p625_p6) target bundleno = 340 (0x154), region = 56  ;;  %v485_v48 = vstv (!%p625_p6), %s626_s29  ;;  %v530_v25 = vld [vmem:[%s864_s5] sm:$0x1] (!%p625_p6) }
 0x116   : > { %v483_v49 = vshrl.u32 (!%p625_p6), %v482_v47, 7 }
 0x117   : > { %v496_v7 = vld [vmem:[%s866_s7] sm:$0x1] (!%p625_p6) }
 0x118   : > { %v484_v50 = vadd.s32 (!%p625_p6), 8, %v483_v49  ;;  %v486_v51 = vadd.s32 (!%p625_p6), %v485_v48, %v483_v49 }
 0x119   : > { %v506_v10 = vld [vmem:[%s867_s8] sm:$0x1] (!%p625_p6) }
 0x11a   : > { %v487_v52 = vadd.s32 (!%p625_p6), %v485_v48, %v484_v50  ;;  %vm488_vm1 = vcmp.lt.s32.totalorder (!%p625_p6), %v486_v51, 20 }
 0x11b   : > { %v627_v54 = vsel (!%p625_p6), %vm488_vm1, 1.0, %v704_v53 }
 0x11c   : > { %vm489_vm2 = vcmp.lt.s32.totalorder %v487_v52, 20  ;;  %v494_v55 = vmul.f32 %v627_v54, %v428_v21 }
 0x11d   : > { %v628_v56 = vsel %vm489_vm2, 1.0, %v704_v53 }
 0x11e   : > { %v495_v57 = vmul.f32 %v628_v56, %v431_v23  ;;  %v507_v58 = vmul.f32 %v494_v55, %v428_v21 }
 0x120   : > { %v497_v59 = vadd.f32 %v495_v57, %v494_v55  ;;  %v508_v60 = vmul.f32 %v495_v57, %v431_v23 }
 0x122   : > { %v498_v61 = vrot.slane %v497_v59, 4  ;;  %v509_v62 = vadd.f32 %v508_v60, %v507_v58 }
 0x124   : > { %v499_v63 = vadd.f32 %v498_v61, %v497_v59  ;;  %v510_v0 = vrot.slane %v509_v62, 4 }
 0x126   : > { %v500_v1 = vrot.slane %v499_v63, 2  ;;  %v511_v2 = vadd.f32 %v510_v0, %v509_v62 }
 0x128   : > { %v501_v3 = vadd.f32 %v500_v1, %v499_v63  ;;  %v512_v4 = vrot.slane %v511_v2, 2 }
 0x12a   : > { %v502_v5 = vrot.slane %v501_v3, 1  ;;  %v513_v6 = vadd.f32 %v512_v4, %v511_v2 }
 0x12c   : > { %v503_v8 = vadd.f32 %v502_v5, %v501_v3  ;;  %v514_v9 = vrot.slane %v513_v6, 1 }
 0x12e   : > { %v504_v11 = vadd.f32 %v503_v8, %v496_v7  ;;  %v515_v12 = vadd.f32 %v514_v9, %v513_v6 }
 0x130   : > { %505 = vst [vmem:[%s866_s7] sm:$0x1] %v504_v11  ;;  %v516_v13 = vadd.f32 %v515_v12, %v506_v10 }
 0x132   : > { %517 = vst [vmem:[%s867_s8] sm:$0x1] %v516_v13 }
 0x137   : > { %v518_v14 = vld [vmem:[%s866_s7] sm:$0x1] }
 0x138   : > { %v519_v15 = vmul.f32 0.05, %v518_v14 }
 0x139   : > { %v520_v16 = vld [vmem:[%s867_s8] sm:$0x1] }
 0x13a   : > { %v521_v17 = vmul.f32 0.05, %v520_v16  ;;  %v522_v18 = vmul.f32 %v519_v15, %v519_v15 }
 0x13c   : > { %v523_v19 = vsub.f32 %v521_v17, %v522_v18 }
 0x13e   : > { %v524_v20 = vmax.f32 %v523_v19, 0.0 }
 0x140   : > { %v526_v21 = vadd.f32 1e-05, %v524_v20 }
 0x142   : > { %691 = vrsqrt.f32 %v526_v21 }
 0x14c   : > { %v692_v23 = vpop.eup %691 }
 0x14d   : > { %v528_v24 = vmul.f32 %v692_v23, %v525_v22 }
 0x14f   : > { %529 = vst [vmem:[%s866_s7] sm:$0x1] %v528_v24  ;;  %v531_v26 = vmul.f32 %v528_v24, %v519_v15 }
 0x151   : > { %v532_v27 = vsub.f32 %v530_v25, %v531_v26 }
 0x153   : > { %533 = vst [vmem:[%s867_s8] sm:$0x1] %v532_v27 }
 0x154 PF: > { %s19_s27 = sadd.s32 1, %s699_s27  }
 0x155   : > { %p16_p7 = scmp.ge.s32.totalorder %s19_s27, 4  }
 0x157   :  { %18 = sbr.rel (!%p16_p7) target bundleno = 1 (0x1), region = 102 }

// kernel: mlp_forward.5
= control target key start
LH: loop header
LB: loop body
LE: loop exit
PB: predicated region body
PF: predicated region fallthrough
CT: control target
= control target key end

     0   :  { %s1100_s27 = smov 0   ;;  %s1286_s0 = inlined_call_operand.vmem [shape: bf16[32,512], index: 0, kind: input, shape index: {}]   ;;  %s1287_s1 = inlined_call_operand.vmem [shape: f32[1,512], index: 1, kind: input, shape index: {}]   ;;  %s1288_s2 = inlined_call_operand.vmem [shape: f32[1,512], index: 2, kind: input, shape index: {}]   ;;  %s1289_s3 = inlined_call_operand.vmem [shape: bf16[512,128], index: 3, kind: input, shape index: {}]   ;;  %s1290_s4 = inlined_call_operand.vmem [shape: f32[1,128], index: 4, kind: input, shape index: {}]   ;;  %s1291_s5 = inlined_call_operand.vmem [shape: f32[1,128], index: 5, kind: input, shape index: {}]   ;;  %s1292_s6 = inlined_call_operand.vmem [shape: bf16[32,128], index: 6, kind: output, shape index: {0}]   ;;  %s1293_s7 = inlined_call_operand.vmem [shape: f32[1,128], index: 7, kind: output, shape index: {1}]   ;;  %s1294_s8 = inlined_call_operand.vmem [shape: f32[1,128], index: 8, kind: output, shape index: {2}]  }
   0x1 LB: > { %s1106_s28 = sadd.s32 4294967295, %s1051_s27   ;;  %p901_p0 = scmp.ge.s32.totalorder %s1051_s27, 1  ;;  %s1051_s27 = sphi %s1100_s27, %s19_s27  }
   0x2   : > { %p259_p1 = scmp.lt.s32.totalorder %s1051_s27, 3 }
   0x4   : > { %p260_p2 = pnand %p901_p0, %p259_p1 }
   0x5   : > { %v1011_v0 = vld [vmem:[%s1289_s3 + $0x40] sm:$0xff] (!%p260_p2)   ;;  %v1015_v4 = vld [vmem:[%s1289_s3 + $0x48] sm:$0xff] (!%p260_p2)   ;;  %v1019_v8 = vld [vmem:[%s1289_s3 + $0x50] sm:$0xff] (!%p260_p2)   ;;  %s902_s19 = sshll.u32 (!%p260_p2), %s1106_s28, 1  ;;  %v322_v22 = vlaneseq (!%p260_p2)  ;;  %p941_p4 = scmp.ne.s32.totalorder (!%p260_p2), %s1106_s28, 0 }
   0x6   : > { %263 = sbr.rel (%p260_p2) target bundleno = 343 (0x157), region = 44  ;;  %v1012_v1 = vld [vmem:[%s1289_s3 + $0xc0] sm:$0xff] (!%p260_p2)   ;;  %957 = vmatprep.subr.bf16.mxu0 (!%p260_p2), %v1011_v0  ;;  %v1016_v5 = vld [vmem:[%s1289_s3 + $0xc8] sm:$0xff] (!%p260_p2)   ;;  %v1020_v9 = vld [vmem:[%s1289_s3 + $0xd0] sm:$0xff] (!%p260_p2)   ;;  %p295_p3 = scmp.lt.s32.totalorder (!%p260_p2), %s902_s19, 3 }
   0x7   : > { %v1013_v2 = vld [vmem:[%s1289_s3] sm:$0xff] (!%p260_p2)   ;;  %979 = vmatprep.subr.bf16.mxu1 (!%p260_p2), %v1012_v1  ;;  %v1017_v6 = vld [vmem:[%s1289_s3 + $0x8] sm:$0xff] (!%p260_p2)   ;;  %v1021_v10 = vld [vmem:[%s1289_s3 + $0x10] sm:$0xff] (!%p260_p2)   ;;  %v1191_v27 = vshrl.u32 (!%p260_p2), %v322_v22, 7 }
   0x8   : > { %v1014_v3 = vld [vmem:[%s1289_s3 + $0x80] sm:$0xff] (!%p260_p2)   ;;  %958 = vmatpush3.bf16.msra.mxu0 (!%p260_p2), %v1013_v2  ;;  %v1018_v7 = vld [vmem:[%s1289_s3 + $0x88] sm:$0xff] (!%p260_p2)   ;;  %v1022_v11 = vld [vmem:[%s1289_s3 + $0x90] sm:$0xff] (!%p260_p2)  }
   0x9   : > { %980 = vmatpush3.bf16.msra.mxu1 (!%p260_p2), %v1014_v3  ;;  %959 = vmatprep.subr.bf16.mxu0 (!%p260_p2), %v1015_v4  ;;  %v1023_v12 = vld [vmem:[%s1289_s3 + $0x58] sm:$0xff] (!%p260_p2)   ;;  %v1027_v16 = vld [vmem:[%s1289_s3 + $0x60] sm:$0xff] (!%p260_p2)   ;;  %v1031_v20 = vld [vmem:[%s1289_s3 + $0x68] sm:$0xff] (!%p260_p2)   ;;  %v328_v33 = vsub.s32 (!%p260_p2), 1, %v1191_v27  ;;  %v336_v35 = vsub.s32 (!%p260_p2), 3, %v1191_v27  ;;  %v324_v39 = vsub.s32 (!%p260_p2), 0, %v1191_v27 }
   0xa   : > { %981 = vmatprep.subr.bf16.mxu1 (!%p260_p2), %v1016_v5  ;;  %v1024_v13 = vld [vmem:[%s1289_s3 + $0xd8] sm:$0xff] (!%p260_p2)   ;;  %v1028_v17 = vld [vmem:[%s1289_s3 + $0xe0] sm:$0xff] (!%p260_p2)   ;;  %v1032_v21 = vld [vmem:[%s1289_s3 + $0xe8] sm:$0xff] (!%p260_p2)   ;;  %v332_v40 = vsub.s32 (!%p260_p2), 2, %v1191_v27 }
   0xb   : > { %v1025_v14 = vld [vmem:[%s1289_s3 + $0x18] sm:$0xff] (!%p260_p2)   ;;  %v1029_v18 = vld [vmem:[%s1289_s3 + $0x20] sm:$0xff] (!%p260_p2)   ;;  %v1033_v23 = vld [vmem:[%s1289_s3 + $0x28] sm:$0xff] (!%p260_p2)  }
   0xc   : > { %960 = vmatpush3.bf16.msra.mxu0 (!%p260_p2), %v1017_v6  ;;  %v1026_v15 = vld [vmem:[%s1289_s3 + $0x98] sm:$0xff] (!%p260_p2)   ;;  %v1030_v19 = vld [vmem:[%s1289_s3 + $0xa0] sm:$0xff] (!%p260_p2)   ;;  %v1034_v24 = vld [vmem:[%s1289_s3 + $0xa8] sm:$0xff] (!%p260_p2)  }
   0xd   : > { %982 = vmatpush3.bf16.msra.mxu1 %v1018_v7  ;;  %961 = vmatprep.subr.bf16.mxu0 %v1019_v8  ;;  %s1296_s19 = smov (!%p295_p3, %s902_s19), 3  ;;  %v1035_v25 = vld [vmem:[%s1289_s3 + $0x70] sm:$0xff]   ;;  %v1039_v30 = vld [vmem:[%s1289_s3 + $0x78] sm:$0xff]   ;;  %v320_v38 = vld [vmem:[%s1287_s1] sm:$0xf] }
   0xe   : > { %983 = vmatprep.subr.bf16.mxu1 %v1020_v9  ;;  %v1036_v26 = vld [vmem:[%s1289_s3 + $0xf0] sm:$0xff]   ;;  %s949_s23 = sshll.u32 %s1296_s19, 4  ;;  %v1040_v31 = vld [vmem:[%s1289_s3 + $0xf8] sm:$0xff]   ;;  %v350_v45 = vld [vmem:[%s1288_s2] sm:$0xf]  ;;  %v329_v48 = vrot.slane %v320_v38, %v328_v33  ;;  %v337_v54 = vrot.slane %v320_v38, %v336_v35  ;;  %v325_v58 = vrot.slane %v320_v38, %v324_v39  ;;  %v333_v62 = vrot.slane %v320_v38, %v332_v40  ;;  %s906_s22 = sshll.u32 %s1296_s19, 2 }
   0xf   : > { %v1037_v28 = vld [vmem:[%s1289_s3 + $0x30] sm:$0xff]   ;;  %s299_s12 = scalar_lea.vmem %s1286_s0, %s949_s23  ;;  %v1041_v32 = vld [vmem:[%s1289_s3 + $0x38] sm:$0xff]   ;;  %v359_v49 = vrot.slane %v350_v45, %v328_v33  ;;  %v367_v55 = vrot.slane %v350_v45, %v336_v35  ;;  %v355_v59 = vrot.slane %v350_v45, %v324_v39  ;;  %v363_v63 = vrot.slane %v350_v45, %v332_v40  ;;  %s305_s25 = scalar_lea.vmem %s1292_s6, %s906_s22 }
  0x10   : > { %962 = vmatpush3.bf16.msra.mxu0 %v1021_v10  ;;  %v1038_v29 = vld [vmem:[%s1289_s3 + $0xb0] sm:$0xff]   ;;  %v1042_v34 = vld [vmem:[%s1289_s3 + $0xb8] sm:$0xff]   ;;  %v308_v36 = vld [vmem:[%s299_s12] sm:$0xff]  ;;  %v1053_v40 = vmov (!%p941_p4), 0.0  }
  0x11   : > { %984 = vmatpush3.bf16.msra.mxu1 %v1022_v11  ;;  %963 = vmatprep.subr.bf16.mxu0 %v1023_v12  ;;  %v310_v37 = vld [vmem:[%s299_s12 + $0x10] sm:$0xff]  ;;  %v312_v41 = vunpack.c.l.bf16 %v308_v36  ;;  %v313_v42 = vunpack.c.h.bf16 %v308_v36  ;;  %v309_v46 = vld [vmem:[%s299_s12 + $0x8] sm:$0xff]  ;;  %v311_v47 = vld [vmem:[%s299_s12 + $0x18] sm:$0xff]  ;;  %744 = vst [vmem:[%s1293_s7] sm:$0x1] (!%p941_p4), %v1053_v40 }
  0x12   : > { %985 = vmatprep.subr.bf16.mxu1 %v1024_v13  ;;  %v316_v43 = vunpack.c.l.bf16 %v310_v37  ;;  %v317_v44 = vunpack.c.h.bf16 %v310_v37  ;;  %v314_v50 = vunpack.c.l.bf16 %v309_v46  ;;  %v315_v51 = vunpack.c.h.bf16 %v309_v46  ;;  %745 = vst [vmem:[%s1294_s8] sm:$0x1] (!%p941_p4), %v1053_v40 }
  0x13   : > { %v318_v52 = vunpack.c.l.bf16 %v311_v47  ;;  %v319_v53 = vunpack.c.h.bf16 %v311_v47  ;;  %v343_v56 = vmul.f32 %v329_v48, %v313_v42  ;;  %v342_v2 = vmul.f32 %v325_v58, %v312_v41 }
  0x14   : > { %964 = vmatpush3.bf16.msra.mxu0 %v1025_v14  ;;  %v347_v57 = vmul.f32 %v329_v48, %v317_v44  ;;  %v345_v60 = vmul.f32 %v337_v54, %v315_v51  ;;  %v346_v3 = vmul.f32 %v325_v58, %v316_v43  ;;  %v344_v6 = vmul.f32 %v333_v62, %v314_v50 }
  0x15   : > { %986 = vmatpush3.bf16.msra.mxu1 %v1026_v15  ;;  %965 = vmatprep.subr.bf16.mxu0 %v1027_v16  ;;  %v349_v61 = vmul.f32 %v337_v54, %v319_v53  ;;  %v373_v0 = vadd.f32 %v359_v49, %v343_v56  ;;  %v348_v7 = vmul.f32 %v333_v62, %v318_v52 }
  0x16   : > { %987 = vmatprep.subr.bf16.mxu1 %v1028_v17  ;;  %v377_v1 = vadd.f32 %v359_v49, %v347_v57  ;;  %v375_v4 = vadd.f32 %v367_v55, %v345_v60  ;;  %v372_v10 = vadd.f32 %v355_v59, %v342_v2  ;;  %v376_v11 = vadd.f32 %v355_v59, %v346_v3 }
  0x17   : > { %v379_v5 = vadd.f32 %v367_v55, %v349_v61  ;;  %v381_v8 = vmax.f32 %v373_v0, 0.0  ;;  %v374_v14 = vadd.f32 %v363_v63, %v344_v6  ;;  %v378_v15 = vadd.f32 %v363_v63, %v348_v7 }
  0x18   : > { %966 = vmatpush3.bf16.msra.mxu0 %v1029_v18  ;;  %v385_v9 = vmax.f32 %v377_v1, 0.0  ;;  %v383_v12 = vmax.f32 %v375_v4, 0.0  ;;  %v380_v17 = vmax.f32 %v372_v10, 0.0  ;;  %v384_v18 = vmax.f32 %v376_v11, 0.0 }
  0x19   : > { %988 = vmatpush3.bf16.msra.mxu1 %v1030_v19  ;;  %967 = vmatprep.subr.bf16.mxu0 %v1031_v20  ;;  %v387_v13 = vmax.f32 %v379_v5, 0.0  ;;  %v382_v20 = vmax.f32 %v374_v14, 0.0 }
  0x1a   : > { %989 = vmatprep.subr.bf16.mxu1 %v1032_v21  ;;  %v389_v16 = vpack.c.bf16 %v385_v9, %v381_v8  ;;  %v386_v21 = vmax.f32 %v378_v15, 0.0  ;;  %v388_v22 = vpack.c.bf16 %v384_v18, %v380_v17 }
  0x1b   : > { %v391_v19 = vpack.c.bf16 %v387_v13, %v383_v12 }
  0x1c   : > { %968 = vmatpush3.bf16.msra.mxu0 %v1033_v23  ;;  %680 = vmatprep.mubr.bf16.mxu0 %v389_v16  ;;  %v390_v23 = vpack.c.bf16 %v386_v21, %v382_v20 }
  0x1d   : > { %990 = vmatpush3.bf16.msra.mxu1 %v1034_v24  ;;  %969 = vmatprep.subr.bf16.mxu0 %v1035_v25 }
  0x1e   : > { %991 = vmatprep.subr.bf16.mxu1 %v1036_v26  ;;  %721 = vmatprep.mubr.bf16.mxu1 %v391_v19 }
  0x20   : > { %970 = vmatpush3.bf16.msra.mxu0 %v1037_v28 }
  0x21   : > { %992 = vmatpush3.bf16.msra.mxu1 %v1038_v29  ;;  %971 = vmatprep.subr.bf16.mxu0 %v1039_v30 }
  0x22   : > { %993 = vmatprep.subr.bf16.mxu1 %v1040_v31 }
  0x24   : > { %972 = vmatpush3.bf16.msra.mxu0 %v1041_v32 }
  0x25   : > { %994 = vmatpush3.bf16.msra.mxu1 %v1042_v34 }
  0x27   : > { %681 = vmatmul.mubr.bf16.vlgmr.msra.gmra.mrb[0].mxu0 %v388_v22 }
  0x28   : > { %722 = vmatmul.mubr.bf16.vlgmr.msra.gmra.mrb[0].mxu1 %v390_v23 }
  0xfa   : > { %v973_v24 = vpop.f32.mrb[0].mxu0 }
  0xfb   : > { %v995_v25 = vpop.f32.mrb[0].mxu1  ;;  %v974_v26 = vpop.f32.mrb[1].mxu0 }
  0xfc   : > { %v975_v28 = vadd.f32 %v974_v26, %v973_v24  ;;  %v996_v29 = vpop.f32.mrb[1].mxu1  ;;  %v976_v30 = vpop.f32.mrb[2].mxu0 }
  0xfd   : > { %v997_v31 = vadd.f32 %v996_v29, %v995_v25  ;;  %v998_v32 = vpop.f32.mrb[2].mxu1  ;;  %v977_v33 = vpop.f32.mrb[3].mxu0 }
  0xfe   : > { %v978_v34 = vadd.f32 %v977_v33, %v976_v30  ;;  %v999_v35 = vpop.f32.mrb[3].mxu1 }
  0xff   : > { %v724_v36 = vadd.f32 %v997_v31, %v975_v28  ;;  %v1000_v37 = vadd.f32 %v999_v35, %v998_v32  ;;  %743 = sbr.rel (%p941_p4) target bundleno = 262 (0x106), region = 48 }
 0x101   : > { %v727_v38 = vadd.f32 %v1000_v37, %v978_v34 }
 0x103   : > { %v955_v39 = vpack.c.bf16 %v727_v38, %v724_v36 }
 0x105   : > { %956 = vst [vmem:[%s305_s25] sm:$0xff] %v955_v39  }
 0x106 PF: > { %p942_p5 = scmp.eq.s32.totalorder %s1106_s28, 1 }
 0x107   : > { %v751_v41 = vadd.f32 (!%p942_p5), %v727_v38, %v724_v36  ;;  %v761_v42 = vmul.f32 (!%p942_p5), %v724_v36, %v724_v36  ;;  %v762_v43 = vmul.f32 (!%p942_p5), %v727_v38, %v727_v38  ;;  %v750_v54 = vld [vmem:[%s1293_s7] sm:$0x1] (!%p942_p5) }
 0x108   : > { %749 = sbr.rel (%p942_p5) target bundleno = 282 (0x11a), region = 52  ;;  %v760_v57 = vld [vmem:[%s1294_s8] sm:$0x1] (!%p942_p5) }
 0x109   : > { %v752_v44 = vrot.slane (!%p942_p5), %v751_v41, 4  ;;  %v763_v45 = vadd.f32 (!%p942_p5), %v762_v43, %v761_v42 }
 0x10b   : > { %v753_v46 = vadd.f32 (!%p942_p5), %v752_v44, %v751_v41  ;;  %v764_v47 = vrot.slane (!%p942_p5), %v763_v45, 4 }
 0x10d   : > { %v754_v48 = vrot.slane (!%p942_p5), %v753_v46, 2  ;;  %v765_v49 = vadd.f32 (!%p942_p5), %v764_v47, %v763_v45 }
 0x10f   : > { %v755_v50 = vadd.f32 %v754_v48, %v753_v46  ;;  %v766_v51 = vrot.slane %v765_v49, 2 }
 0x111   : > { %v756_v52 = vrot.slane %v755_v50, 1  ;;  %v767_v53 = vadd.f32 %v766_v51, %v765_v49 }
 0x113   : > { %v757_v55 = vadd.f32 %v756_v52, %v755_v50  ;;  %v768_v56 = vrot.slane %v767_v53, 1 }
 0x115   : > { %v758_v58 = vadd.f32 %v757_v55, %v750_v54  ;;  %v769_v59 = vadd.f32 %v768_v56, %v767_v53 }
 0x117   : > { %759 = vst [vmem:[%s1293_s7] sm:$0x1] %v758_v58  ;;  %v770_v60 = vadd.f32 %v769_v59, %v760_v57 }
 0x119   : > { %771 = vst [vmem:[%s1294_s8] sm:$0x1] %v770_v60 }
 0x11a PF: > { %p943_p6 = scmp.ne.s32.totalorder %s1106_s28, 1 }
 0x11b   : > { %s944_s17 = sshll.u32 (!%p943_p6), %s1106_s28, 4  ;;  %v779_v61 = vadd.s32 (!%p943_p6), 8, %v1191_v27  ;;  %v1054_v1 = vmov (!%p943_p6), 0.0   ;;  %v820_v34 = vld [vmem:[%s1290_s4] sm:$0x1] (!%p943_p6) }
 0x11c   : > { %775 = sbr.rel (%p943_p6) target bundleno = 343 (0x157), region = 56  ;;  %v780_v62 = vstv (!%p943_p6), %s944_s17  ;;  %v825_v37 = vld [vmem:[%s1291_s5] sm:$0x1] (!%p943_p6) }
 0x11d   : > { %v781_v63 = vadd.s32 (!%p943_p6), %v780_v62, %v1191_v27  ;;  %v782_v0 = vadd.s32 (!%p943_p6), %v780_v62, %v779_v61 }
 0x11e   : > { %v791_v18 = vld [vmem:[%s1293_s7] sm:$0x1] (!%p943_p6) }
 0x11f   : > { %vm783_vm0 = vcmp.lt.s32.totalorder (!%p943_p6), %v781_v63, 20  ;;  %vm784_vm1 = vcmp.lt.s32.totalorder (!%p943_p6), %v782_v0, 20 }
 0x120   : > { %v945_v2 = vsel (!%p943_p6), %vm783_vm0, 1.0, %v1054_v1  ;;  %v946_v3 = vsel (!%p943_p6), %vm784_vm1, 1.0, %v1054_v1  ;;  %v801_v21 = vld [vmem:[%s1294_s8] sm:$0x1] (!%p943_p6) }
 0x121   : > { %v789_v4 = vmul.f32 (!%p943_p6), %v945_v2, %v724_v36  ;;  %v790_v5 = vmul.f32 (!%p943_p6), %v946_v3, %v727_v38 }
 0x123   : > { %v792_v6 = vadd.f32 %v790_v5, %v789_v4  ;;  %v802_v7 = vmul.f32 %v789_v4, %v724_v36  ;;  %v803_v8 = vmul.f32 %v790_v5, %v727_v38 }
 0x125   : > { %v793_v9 = vrot.slane %v792_v6, 4  ;;  %v804_v10 = vadd.f32 %v803_v8, %v802_v7 }
 0x127   : > { %v794_v11 = vadd.f32 %v793_v9, %v792_v6  ;;  %v805_v12 = vrot.slane %v804_v10, 4 }
 0x129   : > { %v795_v13 = vrot.slane %v794_v11, 2  ;;  %v806_v14 = vadd.f32 %v805_v12, %v804_v10 }
 0x12b   : > { %v796_v15 = vadd.f32 %v795_v13, %v794_v11  ;;  %v807_v16 = vrot.slane %v806_v14, 2 }
 0x12d   : > { %v797_v27 = vrot.slane %v796_v15, 1  ;;  %v808_v17 = vadd.f32 %v807_v16, %v806_v14 }
 0x12f   : > { %v798_v19 = vadd.f32 %v797_v27, %v796_v15  ;;  %v809_v20 = vrot.slane %v808_v17, 1 }
 0x131   : > { %v799_v22 = vadd.f32 %v798_v19, %v791_v18  ;;  %v810_v23 = vadd.f32 %v809_v20, %v808_v17 }
 0x133   : > { %800 = vst [vmem:[%s1293_s7] sm:$0x1] %v799_v22  ;;  %v811_v24 = vadd.f32 %v810_v23, %v801_v21 }
 0x135   : > { %812 = vst [vmem:[%s1294_s8] sm:$0x1] %v811_v24 }
 0x13a   : > { %v813_v25 = vld [vmem:[%s1293_s7] sm:$0x1] }
 0x13b   : > { %v814_v26 = vmul.f32 0.05, %v813_v25 }
 0x13c   : > { %v815_v28 = vld [vmem:[%s1294_s8] sm:$0x1] }
 0x13d   : > { %v816_v29 = vmul.f32 0.05, %v815_v28  ;;  %v817_v30 = vmul.f32 %v814_v26, %v814_v26 }
 0x13f   : > { %v818_v31 = vsub.f32 %v816_v29, %v817_v30 }
 0x141   : > { %v819_v32 = vmax.f32 %v818_v31, 0.0 }
 0x143   : > { %v821_v33 = vadd.f32 1e-05, %v819_v32 }
 0x145   : > { %1043 = vrsqrt.f32 %v821_v33 }
 0x14f   : > { %v1044_v35 = vpop.eup %1043 }
 0x150   : > { %v823_v36 = vmul.f32 %v1044_v35, %v820_v34 }
 0x152   : > { %824 = vst [vmem:[%s1293_s7] sm:$0x1] %v823_v36  ;;  %v826_v38 = vmul.f32 %v823_v36, %v814_v26 }
 0x154   : > { %v827_v39 = vsub.f32 %v825_v37, %v826_v38 }
 0x156   : > { %828 = vst [vmem:[%s1294_s8] sm:$0x1] %v827_v39 }
 0x157 PF: > { %s19_s27 = sadd.s32 1, %s1051_s27  }
 0x158   : > { %p16_p7 = scmp.ge.s32.totalorder %s19_s27, 4  }
 0x15a   :  { %18 = sbr.rel (!%p16_p7) target bundleno = 1 (0x1), region = 102 }

// kernel: mlp_forward.4
= control target key start
LH: loop header
LB: loop body
LE: loop exit
PB: predicated region body
PF: predicated region fallthrough
CT: control target
= control target key end

     0   :  { %14 = vsyncpa [#allocation3], 0  ;;  %s3989_s27 = smov 0   ;;  %s4603_s0 = inlined_call_operand.vmem [shape: bf16[32,384], index: 0, kind: input, shape index: {}]   ;;  %s4604_s1 = inlined_call_operand.vmem [shape: bf16[384,640], index: 1, kind: input, shape index: {}]   ;;  %s4605_s2 = inlined_call_operand.vmem [shape: f32[1,640], index: 2, kind: input, shape index: {}]   ;;  %s4606_s3 = inlined_call_operand.hbm [shape: bf16[640,512], index: 3, kind: input, shape index: {}]   ;;  %s4607_s4 = inlined_call_operand.vmem [shape: f32[1,512], index: 4, kind: input, shape index: {}]   ;;  %s4608_s5 = inlined_call_operand.vmem [shape: f32[1,512], index: 5, kind: input, shape index: {}]   ;;  %s4609_s6 = inlined_call_operand.vmem [shape: bf16[32,512], index: 6, kind: output, shape index: {0}]   ;;  %s4610_s7 = inlined_call_operand.vmem [shape: f32[1,512], index: 7, kind: output, shape index: {1}]   ;;  %s4611_s8 = inlined_call_operand.vmem [shape: f32[1,512], index: 8, kind: output, shape index: {2}]  }
   0x1 LB: > { %s3995_s28 = sadd.s32 4294967295, %s3932_s27   ;;  %p3058_p0 = scmp.ge.s32.totalorder %s3932_s27, 1  ;;  %s3932_s27 = sphi %s3989_s27, %s20_s27  }
   0x2   : > { %p224_p1 = scmp.lt.s32.totalorder %s3932_s27, 3  ;;  %s3934_s29 = smov [#allocation2]  }
   0x3   : > { %s242_s30 = sshll.u32 %s3934_s29, 4  ;;  %p4612_p4 = scmp.eq.s32.totalorder %s3995_s28, 0  ;;  %s243_s30 = int_to_ptr.vmem [resolvable:$true] %s242_s30 }
   0x4   : > { %p4000_p3 = pnand %p3058_p0, %p224_p1  ;;  %s3894_s13 = scalar_lea.hbm %s4606_s3, 20480 }
   0x5   : > { %p3895_p7 = scmp.ne.s32.totalorder %s4606_s3, %s3894_s13  ;;  %p3901_p11 = scmp.lt.u32.totalorder %s3894_s13, %s4606_s3 }
   0x6   : > { %s4614_s9 = scalar_select %p4000_p3, 1, 0 }
   0x7   : > { %p3456_p5 = pneg %p4000_p3 }
   0x9   : > { %p4009_p6 = pnand %p4612_p4, %p3456_p5 }
   0xb   : > { %p3896_p8 = pneg %p4009_p6 }
   0xd   : > { %p3897_p9 = pnand %p3896_p8, %p3895_p7 }
   0xf   : > { %p3898_p10 = pneg %p3897_p9 }
  0x11   : > { %p3903_p12 = pnand %p3901_p11, %p3898_p10 }
  0x13   : > { %3906 = shalt.err (!%p3903_p12)
}
  0x14   : > { %s3907_s18 = scalar_lea.vmem %s243_s30, 20480  ;;  %p3915_p5 = scmp.lt.s32.totalorder %s243_s30, %s243_s30 }
  0x15   : > { %p3908_p13 = scmp.ne.s32.totalorder %s243_s30, %s3907_s18  ;;  %p3916_p2 = scmp.lt.s32.totalorder %s3907_s18, %s3907_s18 }
  0x17   : > { %p3910_p0 = pnand %p3908_p13, %p3896_p8  ;;  %p3917_p4 = por %p3916_p2, %p3915_p5 }
  0x19   : > { %p3911_p1 = pneg %p3910_p0 }
  0x1b   : > { %p3918_p3 = pnand %p3917_p4, %p3911_p1 }
  0x1d   : > { %3921 = shalt.err (!%p3918_p3)
}
  0x1e   : > { %s3935_s19 = smov 256   ;;  %s3936_s20 = smov 16  }
  0x1f   : > { %3459 = dma.hbm_to_vmem [thread:$0]  (!%p4009_p6), %s4606_s3, 20480, %s243_s30, [#allocation3], %s3935_s19, %s3935_s19, %s3936_s20  }
  0x20   : > { %p4616_p7 = scmp.ne.s32.totalorder %s4614_s9, 0 }
  0x21   : > { %p4617_p9 = scmp.eq.s32.totalorder (!%p4616_p7), %s3995_s28, 0 }
  0x22   : > { %274 = sbr.rel (%p4616_p7) target bundleno = 781 (0x30d), region = 44 }
  0x29   : > { %3927 = dma.done.wait (%p4617_p9), [#allocation3], 20480   ;;  %p4618_p8 = pmov %p4617_p9 }
  0x2a   : > { %v3480_v0 = vld [vmem:[%s4604_s1 + $0x4] ss:$20 sps:$4 sm:$0xff]   ;;  %v3482_v1 = vld [vmem:[%s4604_s1] ss:$20 sps:$4 sm:$0xff]   ;;  %v3485_v3 = vld [vmem:[%s4604_s1 + $0x28] ss:$20 sps:$4 sm:$0xff]  }
  0x2b   : > { %3929 = vsyncadd (%p4618_p8), [#allocation3], 4294946816  ;;  %1140 = vmatprep.subr.bf16.mxu0 %v3480_v0  ;;  %v3483_v2 = vld [vmem:[%s4604_s1 + $0x2c] ss:$20 sps:$4 sm:$0xff]   ;;  %v3486_v4 = vld [vmem:[%s4604_s1 + $0x54] ss:$20 sps:$4 sm:$0xff]  }
  0x2c   : > { %1141 = vmatpush1.bf16.msra.mxu0 %v3482_v1  ;;  %v3488_v5 = vld [vmem:[%s4604_s1 + $0x50] ss:$20 sps:$4 sm:$0xff]   ;;  %v3491_v7 = vld [vmem:[%s4604_s1 + $0x78] ss:$20 sps:$4 sm:$0xff]   ;;  %v3506_v9 = vld [vmem:[%s4604_s1 + $0x8] ss:$20 sps:$4 sm:$0xff]  }
  0x2d   : > { %1142 = vmatprep.subr.bf16.mxu0 %v3483_v2  ;;  %v3489_v6 = vld [vmem:[%s4604_s1 + $0x7c] ss:$20 sps:$4 sm:$0xff]   ;;  %v3504_v8 = vld [vmem:[%s4604_s1 + $0xc] ss:$20 sps:$4 sm:$0xff]   ;;  %v3492_v10 = vld [vmem:[%s4604_s1 + $0xa4] ss:$20 sps:$4 sm:$0xff]  }
  0x2e   : > { %1226 = vmatprep.subr.bf16.mxu1 %v3504_v8  ;;  %v3510_v11 = vld [vmem:[%s4604_s1 + $0x34] ss:$20 sps:$4 sm:$0xff]   ;;  %v3512_v12 = vld [vmem:[%s4604_s1 + $0x30] ss:$20 sps:$4 sm:$0xff]   ;;  %v3495_v14 = vld [vmem:[%s4604_s1 + $0xcc] ss:$20 sps:$4 sm:$0xff]  }
  0x2f   : > { %1227 = vmatpush1.bf16.msra.mxu1 %v3506_v9  ;;  %v3494_v13 = vld [vmem:[%s4604_s1 + $0xa0] ss:$20 sps:$4 sm:$0xff]   ;;  %v3516_v15 = vld [vmem:[%s4604_s1 + $0x5c] ss:$20 sps:$4 sm:$0xff]   ;;  %s3063_s15 = sshll.u32 %s3995_s28, 1  ;;  %vm3939_vm0 = vmmov 0  }
  0x30   : > { %1143 = vmatpush1.bf16.msra.mxu0 %v3485_v3  ;;  %1228 = vmatprep.subr.bf16.mxu1 %v3510_v11  ;;  %v3518_v16 = vld [vmem:[%s4604_s1 + $0x58] ss:$20 sps:$4 sm:$0xff]   ;;  %v3497_v17 = vld [vmem:[%s4604_s1 + $0xc8] ss:$20 sps:$4 sm:$0xff]   ;;  %p311_p2 = scmp.lt.s32.totalorder %s3063_s15, 3  ;;  %p4619_p3 = scmp.ne.s32.totalorder %s3995_s28, 0 }
  0x31   : > { %1144 = vmatprep.subr.bf16.mxu0 %v3486_v4  ;;  %v3522_v18 = vld [vmem:[%s4604_s1 + $0x84] ss:$20 sps:$4 sm:$0xff]   ;;  %v3498_v19 = vld [vmem:[%s4604_s1 + $0xf4] ss:$20 sps:$4 sm:$0xff]   ;;  %v3528_v22 = vld [vmem:[%s4604_s1 + $0xac] ss:$20 sps:$4 sm:$0xff]  }
  0x32   : > { %v3524_v20 = vld [vmem:[%s4604_s1 + $0x80] ss:$20 sps:$4 sm:$0xff]   ;;  %v3500_v21 = vld [vmem:[%s4604_s1 + $0xf0] ss:$20 sps:$4 sm:$0xff]   ;;  %s4623_s15 = smov (!%p311_p2, %s3063_s15), 3 }
  0x33   : > { %1229 = vmatpush1.bf16.msra.mxu1 %v3512_v12  ;;  %v3501_v23 = vld [vmem:[%s4604_s1 + $0x11c] ss:$20 sps:$4 sm:$0xff]   ;;  %v3503_v25 = vld [vmem:[%s4604_s1 + $0x118] ss:$20 sps:$4 sm:$0xff]   ;;  %v3534_v26 = vld [vmem:[%s4604_s1 + $0xd4] ss:$20 sps:$4 sm:$0xff]  }
  0x34   : > { %1145 = vmatpush1.bf16.msra.mxu0 %v3488_v5  ;;  %1230 = vmatprep.subr.bf16.mxu1 %v3516_v15  ;;  %v3530_v24 = vld [vmem:[%s4604_s1 + $0xa8] ss:$20 sps:$4 sm:$0xff]   ;;  %s3451_s19 = smul.u32 12, %s4623_s15  ;;  %v3507_v27 = vld [vmem:[%s4604_s1 + $0x144] ss:$20 sps:$4 sm:$0xff]   ;;  %s3363_s29 = sshll.u32 %s4623_s15, 4 }
  0x35   : > { %1146 = vmatprep.subr.bf16.mxu0 %v3489_v6  ;;  %v3536_v28 = vld [vmem:[%s4604_s1 + $0xd0] ss:$20 sps:$4 sm:$0xff]   ;;  %v3509_v29 = vld [vmem:[%s4604_s1 + $0x140] ss:$20 sps:$4 sm:$0xff]   ;;  %v3542_v32 = vld [vmem:[%s4604_s1 + $0xf8] ss:$20 sps:$4 sm:$0xff]   ;;  %s322_s11 = scalar_lea.vmem %s4609_s6, %s3363_s29 }
  0x36   : > { %v3540_v30 = vld [vmem:[%s4604_s1 + $0xfc] ss:$20 sps:$4 sm:$0xff]   ;;  %s4135_s10 = scalar_lea.vmem %s4603_s0, %s3451_s19  ;;  %v3513_v31 = vld [vmem:[%s4604_s1 + $0x16c] ss:$20 sps:$4 sm:$0xff]   ;;  %v3546_v35 = vld [vmem:[%s4604_s1 + $0x124] ss:$20 sps:$4 sm:$0xff]  }
  0x37   : > { %1231 = vmatpush1.bf16.msra.mxu1 %v3518_v16  ;;  %v4144_v33 = vld [vmem:[%s4135_s10 + $0x4] ss:$12 sps:$4 sm:$0xff]   ;;  %v3515_v34 = vld [vmem:[%s4604_s1 + $0x168] ss:$20 sps:$4 sm:$0xff]   ;;  %v3548_v37 = vld [vmem:[%s4604_s1 + $0x120] ss:$20 sps:$4 sm:$0xff]  }
  0x38   : > { %1147 = vmatpush1.bf16.msra.mxu0 %v3491_v7  ;;  %1232 = vmatprep.subr.bf16.mxu1 %v3522_v18  ;;  %v3519_v36 = vld [vmem:[%s4604_s1 + $0x194] ss:$20 sps:$4 sm:$0xff]   ;;  %v3521_v38 = vld [vmem:[%s4604_s1 + $0x190] ss:$20 sps:$4 sm:$0xff]   ;;  %v3552_v39 = vld [vmem:[%s4604_s1 + $0x14c] ss:$20 sps:$4 sm:$0xff]  }
  0x39   : > { %1148 = vmatprep.subr.bf16.mxu0 %v3492_v10  ;;  %1172 = vmatprep.mubr.bf16.mxu0 %v4144_v33  ;;  %v3525_v40 = vld [vmem:[%s4604_s1 + $0x1bc] ss:$20 sps:$4 sm:$0xff]   ;;  %v3527_v42 = vld [vmem:[%s4604_s1 + $0x1b8] ss:$20 sps:$4 sm:$0xff]   ;;  %v3561_v43 = vld [vmem:[%s4604_s1 + $0x174] ss:$20 sps:$4 sm:$0xff]  }
  0x3a   : > { %1258 = vmatprep.mubr.bf16.mxu1 %v4144_v33  ;;  %v3554_v41 = vld [vmem:[%s4604_s1 + $0x148] ss:$20 sps:$4 sm:$0xff]   ;;  %v3531_v44 = vld [vmem:[%s4604_s1 + $0x1e4] ss:$20 sps:$4 sm:$0xff]   ;;  %v3533_v46 = vld [vmem:[%s4604_s1 + $0x1e0] ss:$20 sps:$4 sm:$0xff]  }
  0x3b   : > { %1233 = vmatpush1.bf16.msra.mxu1 %v3524_v20  ;;  %v3563_v45 = vld [vmem:[%s4604_s1 + $0x170] ss:$20 sps:$4 sm:$0xff]   ;;  %v3537_v48 = vld [vmem:[%s4604_s1 + $0x20c] ss:$20 sps:$4 sm:$0xff]   ;;  %v3539_v50 = vld [vmem:[%s4604_s1 + $0x208] ss:$20 sps:$4 sm:$0xff]  }
  0x3c   : > { %1149 = vmatpush1.bf16.msra.mxu0 %v3494_v13  ;;  %1234 = vmatprep.subr.bf16.mxu1 %v3528_v22  ;;  %v3567_v47 = vld [vmem:[%s4604_s1 + $0x19c] ss:$20 sps:$4 sm:$0xff]   ;;  %v3569_v49 = vld [vmem:[%s4604_s1 + $0x198] ss:$20 sps:$4 sm:$0xff]   ;;  %v3543_v52 = vld [vmem:[%s4604_s1 + $0x234] ss:$20 sps:$4 sm:$0xff]  }
  0x3d   : > { %1150 = vmatprep.subr.bf16.mxu0 %v3495_v14  ;;  %v3573_v51 = vld [vmem:[%s4604_s1 + $0x1c4] ss:$20 sps:$4 sm:$0xff]   ;;  %v3575_v53 = vld [vmem:[%s4604_s1 + $0x1c0] ss:$20 sps:$4 sm:$0xff]   ;;  %v3549_v56 = vld [vmem:[%s4604_s1 + $0x25c] ss:$20 sps:$4 sm:$0xff]  }
  0x3e   : > { %v3545_v54 = vld [vmem:[%s4604_s1 + $0x230] ss:$20 sps:$4 sm:$0xff]   ;;  %v3579_v55 = vld [vmem:[%s4604_s1 + $0x1ec] ss:$20 sps:$4 sm:$0xff]   ;;  %v3581_v57 = vld [vmem:[%s4604_s1 + $0x1e8] ss:$20 sps:$4 sm:$0xff]  }
  0x3f   : > { %1235 = vmatpush1.bf16.msra.mxu1 %v3530_v24  ;;  %v3551_v58 = vld [vmem:[%s4604_s1 + $0x258] ss:$20 sps:$4 sm:$0xff]   ;;  %v3585_v59 = vld [vmem:[%s4604_s1 + $0x214] ss:$20 sps:$4 sm:$0xff]   ;;  %v3587_v62 = vld [vmem:[%s4604_s1 + $0x210] ss:$20 sps:$4 sm:$0xff]  }
  0x40   : > { %1151 = vmatpush1.bf16.msra.mxu0 %v3497_v17  ;;  %1236 = vmatprep.subr.bf16.mxu1 %v3534_v26  ;;  %v3559_v60 = vld [vmem:[%s4604_s1 + $0x284] ss:$20 sps:$4 sm:$0xff]   ;;  %v4230_v61 = vld [vmem:[%s4135_s10] ss:$12 sps:$4 sm:$0xff]   ;;  %v3591_v0 = vld [vmem:[%s4604_s1 + $0x23c] ss:$20 sps:$4 sm:$0xff]  }
  0x41   : > { %1152 = vmatprep.subr.bf16.mxu0 %v3498_v19  ;;  %v3557_v63 = vld [vmem:[%s4604_s1 + $0x280] ss:$20 sps:$4 sm:$0xff]   ;;  %v3564_v2 = vld [vmem:[%s4604_s1 + $0x2a8] ss:$20 sps:$4 sm:$0xff]   ;;  %v3593_v3 = vld [vmem:[%s4604_s1 + $0x238] ss:$20 sps:$4 sm:$0xff]  }
  0x42   : > { %v3566_v1 = vld [vmem:[%s4604_s1 + $0x2ac] ss:$20 sps:$4 sm:$0xff]   ;;  %v3597_v4 = vld [vmem:[%s4604_s1 + $0x264] ss:$20 sps:$4 sm:$0xff]   ;;  %v3572_v5 = vld [vmem:[%s4604_s1 + $0x2d4] ss:$20 sps:$4 sm:$0xff]  }
  0x43   : > { %1237 = vmatpush1.bf16.msra.mxu1 %v3536_v28  ;;  %v3937_v6 = vmov 0   ;;  %v3570_v7 = vld [vmem:[%s4604_s1 + $0x2d0] ss:$20 sps:$4 sm:$0xff]   ;;  %v3599_v8 = vld [vmem:[%s4604_s1 + $0x260] ss:$20 sps:$4 sm:$0xff]  }
  0x44   : > { %1153 = vmatpush1.bf16.msra.mxu0 %v3500_v21  ;;  %1238 = vmatprep.subr.bf16.mxu1 %v3540_v30  ;;  %v3605_v9 = vld [vmem:[%s4604_s1 + $0x28c] ss:$20 sps:$4 sm:$0xff]   ;;  %v3578_v10 = vld [vmem:[%s4604_s1 + $0x2fc] ss:$20 sps:$4 sm:$0xff]   ;;  %v3609_v13 = vld [vmem:[%s4604_s1 + $0x2b4] ss:$20 sps:$4 sm:$0xff]  }
  0x45   : > { %1154 = vmatprep.subr.bf16.mxu0 %v3501_v23  ;;  %v3576_v11 = vld [vmem:[%s4604_s1 + $0x2f8] ss:$20 sps:$4 sm:$0xff]   ;;  %v3603_v12 = vld [vmem:[%s4604_s1 + $0x288] ss:$20 sps:$4 sm:$0xff]   ;;  %v3582_v15 = vld [vmem:[%s4604_s1 + $0x320] ss:$20 sps:$4 sm:$0xff]  }
  0x46   : > { %v3584_v14 = vld [vmem:[%s4604_s1 + $0x324] ss:$20 sps:$4 sm:$0xff]   ;;  %v3612_v17 = vld [vmem:[%s4604_s1 + $0x2dc] ss:$20 sps:$4 sm:$0xff]   ;;  %v3590_v18 = vld [vmem:[%s4604_s1 + $0x34c] ss:$20 sps:$4 sm:$0xff]  }
  0x47   : > { %1239 = vmatpush1.bf16.msra.mxu1 %v3542_v32  ;;  %v3607_v16 = vld [vmem:[%s4604_s1 + $0x2b0] ss:$20 sps:$4 sm:$0xff]   ;;  %v3588_v19 = vld [vmem:[%s4604_s1 + $0x348] ss:$20 sps:$4 sm:$0xff]   ;;  %v3610_v20 = vld [vmem:[%s4604_s1 + $0x2d8] ss:$20 sps:$4 sm:$0xff]  }
  0x48   : > { %1155 = vmatpush1.bf16.msra.mxu0 %v3503_v25  ;;  %1240 = vmatprep.subr.bf16.mxu1 %v3546_v35  ;;  %v3615_v21 = vld [vmem:[%s4604_s1 + $0x304] ss:$20 sps:$4 sm:$0xff]   ;;  %v3596_v22 = vld [vmem:[%s4604_s1 + $0x374] ss:$20 sps:$4 sm:$0xff]   ;;  %v3618_v25 = vld [vmem:[%s4604_s1 + $0x32c] ss:$20 sps:$4 sm:$0xff]  }
  0x49   : > { %1156 = vmatprep.subr.bf16.mxu0 %v3507_v27  ;;  %v3594_v23 = vld [vmem:[%s4604_s1 + $0x370] ss:$20 sps:$4 sm:$0xff]   ;;  %v3613_v24 = vld [vmem:[%s4604_s1 + $0x300] ss:$20 sps:$4 sm:$0xff]   ;;  %v3616_v27 = vld [vmem:[%s4604_s1 + $0x328] ss:$20 sps:$4 sm:$0xff]  }
  0x4a   : > { %v3602_v26 = vld [vmem:[%s4604_s1 + $0x39c] ss:$20 sps:$4 sm:$0xff]   ;;  %v3600_v28 = vld [vmem:[%s4604_s1 + $0x398] ss:$20 sps:$4 sm:$0xff]  }
  0x4b   : > { %1241 = vmatpush1.bf16.msra.mxu1 %v3548_v37  ;;  %v3628_v30 = vld [vmem:[%s4604_s1 + $0x150] ss:$20 sps:$4 sm:$0xff]   ;;  %v3622_v37 = vld [vmem:[%s4604_s1 + $0x378] ss:$20 sps:$4 sm:$0xff]  }
  0x4c   : > { %1157 = vmatpush1.bf16.msra.mxu0 %v3509_v29  ;;  %1242 = vmatprep.subr.bf16.mxu1 %v3552_v39  ;;  %v3621_v29 = vld [vmem:[%s4604_s1 + $0x354] ss:$20 sps:$4 sm:$0xff]   ;;  %v3619_v32 = vld [vmem:[%s4604_s1 + $0x350] ss:$20 sps:$4 sm:$0xff]   ;;  %v3631_v39 = vld [vmem:[%s4604_s1 + $0x38] ss:$20 sps:$4 sm:$0xff]  }
  0x4d   : > { %1158 = vmatprep.subr.bf16.mxu0 %v3513_v31  ;;  %v4333_v31 = vld [vmem:[%s4135_s10 + $0x8] ss:$12 sps:$4 sm:$0xff]   ;;  %v3629_v35 = vld [vmem:[%s4604_s1 + $0x10] ss:$20 sps:$4 sm:$0xff]  }
  0x4f   : > { %1243 = vmatpush1.bf16.msra.mxu1 %v3554_v41  ;;  %v3625_v41 = vld [vmem:[%s4604_s1 + $0x3a0] ss:$20 sps:$4 sm:$0xff]  }
  0x50   : > { %1159 = vmatpush1.bf16.msra.mxu0 %v3515_v34  ;;  %1244 = vmatprep.subr.bf16.mxu1 %v3561_v43  ;;  %v3624_v34 = vld [vmem:[%s4604_s1 + $0x37c] ss:$20 sps:$4 sm:$0xff]  }
  0x51   : > { %1160 = vmatprep.subr.bf16.mxu0 %v3519_v36  ;;  %v3630_v36 = vld [vmem:[%s4604_s1 + $0x178] ss:$20 sps:$4 sm:$0xff]   ;;  %v3636_v43 = vld [vmem:[%s4604_s1 + $0x1c8] ss:$20 sps:$4 sm:$0xff]  }
  0x53   : > { %1245 = vmatpush1.bf16.msra.mxu1 %v3563_v45  ;;  %v3637_v45 = vld [vmem:[%s4604_s1 + $0x88] ss:$20 sps:$4 sm:$0xff]  }
  0x54   : > { %1161 = vmatpush1.bf16.msra.mxu0 %v3521_v38  ;;  %1246 = vmatprep.subr.bf16.mxu1 %v3567_v47  ;;  %v3627_v38 = vld [vmem:[%s4604_s1 + $0x3a4] ss:$20 sps:$4 sm:$0xff]  }
  0x55   : > { %1162 = vmatprep.subr.bf16.mxu0 %v3525_v40  ;;  %v3633_v40 = vld [vmem:[%s4604_s1 + $0x1a0] ss:$20 sps:$4 sm:$0xff]   ;;  %v3635_v47 = vld [vmem:[%s4604_s1 + $0x2b8] ss:$20 sps:$4 sm:$0xff]  }
  0x57   : > { %1247 = vmatpush1.bf16.msra.mxu1 %v3569_v49  ;;  %v3642_v49 = vld [vmem:[%s4604_s1 + $0x218] ss:$20 sps:$4 sm:$0xff]  }
  0x58   : > { %1163 = vmatpush1.bf16.msra.mxu0 %v3527_v42  ;;  %1248 = vmatprep.subr.bf16.mxu1 %v3573_v51  ;;  %v3634_v42 = vld [vmem:[%s4604_s1 + $0x60] ss:$20 sps:$4 sm:$0xff]   ;;  %v3643_v51 = vld [vmem:[%s4604_s1 + $0xd8] ss:$20 sps:$4 sm:$0xff]  }
  0x59   : > { %1164 = vmatprep.subr.bf16.mxu0 %v3531_v44  ;;  %v3938_v44 = vmov 0.0  }
  0x5b   : > { %1249 = vmatpush1.bf16.msra.mxu1 %v3575_v53  ;;  %v3641_v53 = vld [vmem:[%s4604_s1 + $0x308] ss:$20 sps:$4 sm:$0xff]  }
  0x5c   : > { %1165 = vmatpush1.bf16.msra.mxu0 %v3533_v46  ;;  %1250 = vmatprep.subr.bf16.mxu1 %v3579_v55  ;;  %v3639_v46 = vld [vmem:[%s4604_s1 + $0x1f0] ss:$20 sps:$4 sm:$0xff]   ;;  %v3648_v55 = vld [vmem:[%s4604_s1 + $0x268] ss:$20 sps:$4 sm:$0xff]  }
  0x5d   : > { %1166 = vmatprep.subr.bf16.mxu0 %v3537_v48  ;;  %v3640_v48 = vld [vmem:[%s4604_s1 + $0xb0] ss:$20 sps:$4 sm:$0xff]  }
  0x5f   : > { %1251 = vmatpush1.bf16.msra.mxu1 %v3581_v57  ;;  %v3649_v57 = vld [vmem:[%s4604_s1 + $0x128] ss:$20 sps:$4 sm:$0xff]  }
  0x60   : > { %1167 = vmatpush1.bf16.msra.mxu0 %v3539_v50  ;;  %1252 = vmatprep.subr.bf16.mxu1 %v3585_v59  ;;  %v3638_v50 = vld [vmem:[%s4604_s1 + $0x2e0] ss:$20 sps:$4 sm:$0xff]   ;;  %v3647_v59 = vld [vmem:[%s4604_s1 + $0x358] ss:$20 sps:$4 sm:$0xff]  }
  0x61   : > { %1168 = vmatprep.subr.bf16.mxu0 %v3543_v52  ;;  %v3645_v52 = vld [vmem:[%s4604_s1 + $0x240] ss:$20 sps:$4 sm:$0xff]  }
  0x63   : > { %1253 = vmatpush1.bf16.msra.mxu1 %v3587_v62  ;;  %v3660_v62 = vld [vmem:[#allocation2 + $0x24] ss:$16 sps:$4 sm:$0xff]  }
  0x64   : > { %1169 = vmatpush1.bf16.msra.mxu0 %v3545_v54  ;;  %1254 = vmatprep.subr.bf16.mxu1 %v3591_v0  ;;  %v3646_v54 = vld [vmem:[%s4604_s1 + $0x100] ss:$20 sps:$4 sm:$0xff]  }
  0x65   : > { %1170 = vmatprep.subr.bf16.mxu0 %v3549_v56  ;;  %v3644_v56 = vld [vmem:[%s4604_s1 + $0x330] ss:$20 sps:$4 sm:$0xff]  }
  0x66   : > { %v3658_v0 = vld [vmem:[#allocation2 + $0x20] ss:$16 sps:$4 sm:$0xff]  }
  0x67   : > { %1255 = vmatpush1.bf16.msra.mxu1 %v3593_v3  ;;  %v3657_v3 = vld [vmem:[#allocation2 + $0xc] ss:$16 sps:$4 sm:$0xff]  }
  0x68   : > { %1171 = vmatpush1.bf16.msra.mxu0 %v3551_v58  ;;  %1256 = vmatprep.subr.bf16.mxu1 %v3597_v4  ;;  %v3654_v58 = vld [vmem:[#allocation2 + $0x4] ss:$16 sps:$4 sm:$0xff]   ;;  %v3664_v4 = vld [vmem:[#allocation2 + $0x40] ss:$16 sps:$4 sm:$0xff]  }
  0x69   : > { %1183 = vmatprep.subr.bf16.mxu0 %v3559_v60  ;;  %v3652_v60 = vld [vmem:[#allocation2] ss:$16 sps:$4 sm:$0xff]  }
  0x6b   : > { %1173 = vmatmul.mubr.bf16.vlgmr.msra.gmra.mrb[0].mxu0 %v4230_v61  ;;  %1257 = vmatpush1.bf16.msra.mxu1 %v3599_v8  ;;  %v3663_v8 = vld [vmem:[#allocation2 + $0x2c] ss:$16 sps:$4 sm:$0xff]  }
  0x6c   : > { %1184 = vmatpush1.bf16.msra.mxu0 %v3557_v63  ;;  %1215 = vmatprep.mubr.bf16.mxu0 %v3937_v6  ;;  %v3650_v63 = vld [vmem:[%s4604_s1 + $0x380] ss:$20 sps:$4 sm:$0xff]  }
  0x6d   : > { %1185 = vmatprep.subr.bf16.mxu0 %v3566_v1  ;;  %1269 = vmatprep.subr.bf16.mxu1 %v3605_v9  ;;  %v3666_v1 = vld [vmem:[#allocation2 + $0x44] ss:$16 sps:$4 sm:$0xff]   ;;  %v3670_v9 = vld [vmem:[#allocation2 + $0x60] ss:$16 sps:$4 sm:$0xff]  }
  0x6e   : > { %1259 = vmatmul.mubr.bf16.vlgmr.msra.gmra.mrb[0].mxu1 %v4230_v61 }
  0x6f   : > { %1270 = vmatpush1.bf16.msra.mxu1 %v3603_v12  ;;  %1301 = vmatprep.mubr.bf16.mxu1 %v3937_v6  ;;  %v3676_v12 = vld [vmem:[#allocation2 + $0x80] ss:$16 sps:$4 sm:$0xff]  }
  0x70   : > { %1186 = vmatpush1.bf16.msra.mxu0 %v3564_v2  ;;  %1271 = vmatprep.subr.bf16.mxu1 %v3609_v13  ;;  %v3651_v2 = vld [vmem:[%s4604_s1 + $0x3a8] ss:$20 sps:$4 sm:$0xff]   ;;  %v3684_v13 = vld [vmem:[#allocation2 + $0xa4] ss:$16 sps:$4 sm:$0xff]  }
  0x71   : > { %1187 = vmatprep.subr.bf16.mxu0 %v3572_v5  ;;  %v3672_v5 = vld [vmem:[#allocation2 + $0x64] ss:$16 sps:$4 sm:$0xff]  }
  0x73   : > { %1272 = vmatpush1.bf16.msra.mxu1 %v3607_v16  ;;  %v3682_v16 = vld [vmem:[#allocation2 + $0xa0] ss:$16 sps:$4 sm:$0xff]  }
  0x74   : > { %1188 = vmatpush1.bf16.msra.mxu0 %v3570_v7  ;;  %1273 = vmatprep.subr.bf16.mxu1 %v3612_v17  ;;  %v3655_v7 = vld [vmem:[#allocation2 + $0x8] ss:$16 sps:$4 sm:$0xff]   ;;  %v3690_v17 = vld [vmem:[#allocation2 + $0xc4] ss:$16 sps:$4 sm:$0xff]  }
  0x75   : > { %1189 = vmatprep.subr.bf16.mxu0 %v3578_v10  ;;  %v3661_v10 = vld [vmem:[#allocation2 + $0x28] ss:$16 sps:$4 sm:$0xff]  }
  0x77   : > { %1274 = vmatpush1.bf16.msra.mxu1 %v3610_v20  ;;  %v3688_v20 = vld [vmem:[#allocation2 + $0xc0] ss:$16 sps:$4 sm:$0xff]  }
  0x78   : > { %1190 = vmatpush1.bf16.msra.mxu0 %v3576_v11  ;;  %1275 = vmatprep.subr.bf16.mxu1 %v3615_v21  ;;  %v3669_v11 = vld [vmem:[#allocation2 + $0x4c] ss:$16 sps:$4 sm:$0xff]   ;;  %v3696_v21 = vld [vmem:[#allocation2 + $0xe4] ss:$16 sps:$4 sm:$0xff]  }
  0x79   : > { %1191 = vmatprep.subr.bf16.mxu0 %v3584_v14  ;;  %v3667_v14 = vld [vmem:[#allocation2 + $0x48] ss:$16 sps:$4 sm:$0xff]  }
  0x7b   : > { %1276 = vmatpush1.bf16.msra.mxu1 %v3613_v24  ;;  %v3694_v24 = vld [vmem:[#allocation2 + $0xe0] ss:$16 sps:$4 sm:$0xff]  }
  0x7c   : > { %1192 = vmatpush1.bf16.msra.mxu0 %v3582_v15  ;;  %1277 = vmatprep.subr.bf16.mxu1 %v3618_v25  ;;  %v3675_v15 = vld [vmem:[#allocation2 + $0x6c] ss:$16 sps:$4 sm:$0xff]   ;;  %v3702_v25 = vld [vmem:[#allocation2 + $0x104] ss:$16 sps:$4 sm:$0xff]  }
  0x7d   : > { %1193 = vmatprep.subr.bf16.mxu0 %v3590_v18  ;;  %v3673_v18 = vld [vmem:[#allocation2 + $0x68] ss:$16 sps:$4 sm:$0xff]  }
  0x7f   : > { %1278 = vmatpush1.bf16.msra.mxu1 %v3616_v27  ;;  %v3693_v27 = vld [vmem:[#allocation2 + $0xcc] ss:$16 sps:$4 sm:$0xff]  }
  0x80   : > { %1194 = vmatpush1.bf16.msra.mxu0 %v3588_v19  ;;  %1279 = vmatprep.subr.bf16.mxu1 %v3621_v29  ;;  %v3681_v19 = vld [vmem:[#allocation2 + $0x8c] ss:$16 sps:$4 sm:$0xff]   ;;  %v3708_v29 = vld [vmem:[#allocation2 + $0x124] ss:$16 sps:$4 sm:$0xff]  }
  0x81   : > { %1195 = vmatprep.subr.bf16.mxu0 %v3596_v22  ;;  %v3679_v22 = vld [vmem:[#allocation2 + $0x88] ss:$16 sps:$4 sm:$0xff]  }
  0x83   : > { %1280 = vmatpush1.bf16.msra.mxu1 %v3619_v32  ;;  %v3706_v32 = vld [vmem:[#allocation2 + $0x120] ss:$16 sps:$4 sm:$0xff]  }
  0x84   : > { %1196 = vmatpush1.bf16.msra.mxu0 %v3594_v23  ;;  %1281 = vmatprep.subr.bf16.mxu1 %v3624_v34  ;;  %v3687_v23 = vld [vmem:[#allocation2 + $0xac] ss:$16 sps:$4 sm:$0xff]   ;;  %v3714_v34 = vld [vmem:[#allocation2 + $0x144] ss:$16 sps:$4 sm:$0xff]  }
  0x85   : > { %1197 = vmatprep.subr.bf16.mxu0 %v3602_v26  ;;  %v3685_v26 = vld [vmem:[#allocation2 + $0xa8] ss:$16 sps:$4 sm:$0xff]  }
  0x87   : > { %1282 = vmatpush1.bf16.msra.mxu1 %v3622_v37  ;;  %v3712_v37 = vld [vmem:[#allocation2 + $0x140] ss:$16 sps:$4 sm:$0xff]  }
  0x88   : > { %1198 = vmatpush1.bf16.msra.mxu0 %v3600_v28  ;;  %1283 = vmatprep.subr.bf16.mxu1 %v3627_v38  ;;  %v3700_v28 = vld [vmem:[#allocation2 + $0x100] ss:$16 sps:$4 sm:$0xff]   ;;  %v3720_v38 = vld [vmem:[#allocation2 + $0x164] ss:$16 sps:$4 sm:$0xff]  }
  0x89   : > { %3368 = vmatprep.subr.bf16.mxu0 %v3628_v30  ;;  %v3691_v30 = vld [vmem:[#allocation2 + $0xc8] ss:$16 sps:$4 sm:$0xff]  }
  0x8b   : > { %1216 = vmatmul.mubr.bf16.vlgmr.msra.gmra.mrb[0].mxu0 %v4333_v31  ;;  %1284 = vmatpush1.bf16.msra.mxu1 %v3625_v41  ;;  %v3718_v41 = vld [vmem:[#allocation2 + $0x160] ss:$16 sps:$4 sm:$0xff]  }
  0x8c   : > { %3369 = vmatpush3.bf16.msra.mxu0 %v3629_v35  ;;  %1344 = vmatprep.mubr.bf16.mxu0 %v4144_v33  ;;  %v3632_v33 = vld [vmem:[%s4604_s1 + $0x290] ss:$20 sps:$4 sm:$0xff]   ;;  %v3697_v35 = vld [vmem:[#allocation2 + $0xe8] ss:$16 sps:$4 sm:$0xff]  }
  0x8d   : > { %3370 = vmatprep.subr.bf16.mxu0 %v3630_v36  ;;  %3399 = vmatprep.subr.bf16.mxu1 %v3938_v44  ;;  %v3705_v36 = vld [vmem:[#allocation2 + $0x10c] ss:$16 sps:$4 sm:$0xff]  }
  0x8e   : > { %1302 = vmatmul.mubr.bf16.vlgmr.msra.gmra.mrb[0].mxu1 %v4333_v31 }
  0x8f   : > { %3400 = vmatpush3.bf16.msra.mxu1 %v3632_v33  ;;  %3415 = vmatprep.mubr.msk.bf16.mxu1 %vm3939_vm0, %v3938_v44  ;;  %v3717_v33 = vld [vmem:[#allocation2 + $0x14c] ss:$16 sps:$4 sm:$0xff]  }
  0x90   : > { %3371 = vmatpush3.bf16.msra.mxu0 %v3631_v39  ;;  %3401 = vmatprep.subr.bf16.mxu1 %v3938_v44  ;;  %v3703_v39 = vld [vmem:[#allocation2 + $0x108] ss:$16 sps:$4 sm:$0xff]  }
  0x91   : > { %3372 = vmatprep.subr.bf16.mxu0 %v3633_v40  ;;  %v3711_v40 = vld [vmem:[#allocation2 + $0x12c] ss:$16 sps:$4 sm:$0xff]  }
  0x93   : > { %3402 = vmatpush3.bf16.msra.mxu1 %v3635_v47  ;;  %v3723_v47 = vld [vmem:[#allocation2 + $0x16c] ss:$16 sps:$4 sm:$0xff]  }
  0x94   : > { %3373 = vmatpush3.bf16.msra.mxu0 %v3634_v42  ;;  %3403 = vmatprep.subr.bf16.mxu1 %v3938_v44  ;;  %v3726_v42 = vld [vmem:[#allocation2 + $0x184] ss:$16 sps:$4 sm:$0xff]  }
  0x95   : > { %3374 = vmatprep.subr.bf16.mxu0 %v3636_v43  ;;  %v3709_v43 = vld [vmem:[#allocation2 + $0x128] ss:$16 sps:$4 sm:$0xff]  }
  0x97   : > { %3404 = vmatpush3.bf16.msra.mxu1 %v3638_v50  ;;  %v3721_v50 = vld [vmem:[#allocation2 + $0x168] ss:$16 sps:$4 sm:$0xff]  }
  0x98   : > { %3375 = vmatpush3.bf16.msra.mxu0 %v3637_v45  ;;  %3405 = vmatprep.subr.bf16.mxu1 %v3938_v44  ;;  %v3732_v45 = vld [vmem:[#allocation2 + $0x1a4] ss:$16 sps:$4 sm:$0xff]  }
  0x99   : > { %3376 = vmatprep.subr.bf16.mxu0 %v3639_v46  ;;  %v3715_v46 = vld [vmem:[#allocation2 + $0x148] ss:$16 sps:$4 sm:$0xff]  }
  0x9b   : > { %3406 = vmatpush3.bf16.msra.mxu1 %v3641_v53  ;;  %v3744_v53 = vld [vmem:[#allocation2 + $0x1e4] ss:$16 sps:$4 sm:$0xff]  }
  0x9c   : > { %3377 = vmatpush3.bf16.msra.mxu0 %v3640_v48  ;;  %3407 = vmatprep.subr.bf16.mxu1 %v3938_v44  ;;  %v3730_v48 = vld [vmem:[#allocation2 + $0x1a0] ss:$16 sps:$4 sm:$0xff]  }
  0x9d   : > { %3378 = vmatprep.subr.bf16.mxu0 %v3642_v49  ;;  %v3738_v49 = vld [vmem:[#allocation2 + $0x1c4] ss:$16 sps:$4 sm:$0xff]  }
  0x9f   : > { %3408 = vmatpush3.bf16.msra.mxu1 %v3644_v56  ;;  %v3742_v56 = vld [vmem:[#allocation2 + $0x1e0] ss:$16 sps:$4 sm:$0xff]  }
  0xa0   : > { %3379 = vmatpush3.bf16.msra.mxu0 %v3643_v51  ;;  %3409 = vmatprep.subr.bf16.mxu1 %v3938_v44  ;;  %v3729_v51 = vld [vmem:[#allocation2 + $0x18c] ss:$16 sps:$4 sm:$0xff]  }
  0xa1   : > { %3380 = vmatprep.subr.bf16.mxu0 %v3645_v52  ;;  %v3736_v52 = vld [vmem:[#allocation2 + $0x1c0] ss:$16 sps:$4 sm:$0xff]  }
  0xa3   : > { %3410 = vmatpush3.bf16.msra.mxu1 %v3647_v59  ;;  %v3741_v59 = vld [vmem:[#allocation2 + $0x1cc] ss:$16 sps:$4 sm:$0xff]  }
  0xa4   : > { %3381 = vmatpush3.bf16.msra.mxu0 %v3646_v54  ;;  %3411 = vmatprep.subr.bf16.mxu1 %v3938_v44  ;;  %v3727_v54 = vld [vmem:[#allocation2 + $0x188] ss:$16 sps:$4 sm:$0xff]  }
  0xa5   : > { %3382 = vmatprep.subr.bf16.mxu0 %v3648_v55  ;;  %v3735_v55 = vld [vmem:[#allocation2 + $0x1ac] ss:$16 sps:$4 sm:$0xff]  }
  0xa7   : > { %3412 = vmatpush3.bf16.msra.mxu1 %v3650_v63  ;;  %v3745_v63 = vld [vmem:[#allocation2 + $0x1e8] ss:$16 sps:$4 sm:$0xff]  }
  0xa8   : > { %3383 = vmatpush3.bf16.msra.mxu0 %v3649_v57  ;;  %3413 = vmatprep.subr.bf16.mxu1 %v3938_v44  ;;  %v3724_v44 = vld [vmem:[#allocation2 + $0x180] ss:$16 sps:$4 sm:$0xff]   ;;  %v3750_v57 = vld [vmem:[#allocation2 + $0x204] ss:$16 sps:$4 sm:$0xff]  }
  0xa9   : > { %2369 = vmatprep.subr.bf16.mxu0 %v3654_v58  ;;  %v3733_v58 = vld [vmem:[#allocation2 + $0x1a8] ss:$16 sps:$4 sm:$0xff]  }
  0xab   : > { %1345 = vmatmul.mubr.bf16.vlgmr.msra.gmra.mrb[4].mxu0 %v4230_v61  ;;  %3414 = vmatpush3.bf16.msra.mxu1 %v3651_v2  ;;  %v3678_v61 = vld [vmem:[#allocation2 + $0x84] ss:$16 sps:$4 sm:$0xff]  }
  0xac   : > { %2370 = vmatpush1.bf16.msra.mxu0 %v3652_v60  ;;  %2498 = vmatprep.subr.bf16.mxu1 %v3657_v3  ;;  %v3739_v60 = vld [vmem:[#allocation2 + $0x1c8] ss:$16 sps:$4 sm:$0xff]  }
  0xad   : > { %2371 = vmatprep.subr.bf16.mxu0 %v3660_v62  ;;  %v3747_v62 = vld [vmem:[#allocation2 + $0x1ec] ss:$16 sps:$4 sm:$0xff]  }
  0xae   : > { %3416 = vmatmul.mubr.bf16.vlgmr.msra.gmra.mrb[4].mxu1 %v4333_v31  ;;  %v3699_v31 = vld [vmem:[#allocation2 + $0xec] ss:$16 sps:$4 sm:$0xff]  }
  0xaf   : > { %2499 = vmatpush1.bf16.msra.mxu1 %v3655_v7 }
  0xb0   : > { %2372 = vmatpush1.bf16.msra.mxu0 %v3658_v0  ;;  %2500 = vmatprep.subr.bf16.mxu1 %v3663_v8  ;;  %v3753_v0 = vld [vmem:[#allocation2 + $0x20c] ss:$16 sps:$4 sm:$0xff]  }
  0xb1   : > { %2373 = vmatprep.subr.bf16.mxu0 %v3666_v1  ;;  %v475_v1 = vlaneseq }
  0xb3   : > { %2501 = vmatpush1.bf16.msra.mxu1 %v3661_v10  ;;  %v4425_v2 = vshrl.u32 %v475_v1, 7  ;;  %vm2661_vm1 = vcmp.lt.s32.totalorder (!%p4619_p3), %v475_v1, 512 }
  0xb4   : > { %2374 = vmatpush1.bf16.msra.mxu0 %v3664_v4  ;;  %2502 = vmatprep.subr.bf16.mxu1 %v3669_v11  ;;  %v4431_v4 = vld [vmem:[%s4605_s2] sm:$0x1f] }
  0xb5   : > { %2375 = vmatprep.subr.bf16.mxu0 %v3672_v5  ;;  %v477_v3 = vsub.s32 0, %v4425_v2  ;;  %v481_v5 = vsub.s32 1, %v4425_v2 }
  0xb7   : > { %2503 = vmatpush1.bf16.msra.mxu1 %v3667_v14  ;;  %v478_v7 = vrot.slane %v4431_v4, %v477_v3  ;;  %v482_v8 = vrot.slane %v4431_v4, %v481_v5  ;;  %v3784_v3 = vld [vmem:[#allocation2 + $0x2c0] ss:$16 sps:$4 sm:$0xff]   ;;  %v3787_v5 = vld [vmem:[#allocation2 + $0x2c8] ss:$16 sps:$4 sm:$0xff]  }
  0xb8   : > { %2376 = vmatpush1.bf16.msra.mxu0 %v3670_v9  ;;  %2504 = vmatprep.subr.bf16.mxu1 %v3675_v15 }
  0xb9   : > { %2377 = vmatprep.subr.bf16.mxu0 %v3678_v61 }
  0xbb   : > { %2505 = vmatpush1.bf16.msra.mxu1 %v3673_v18 }
  0xbc   : > { %2378 = vmatpush1.bf16.msra.mxu0 %v3676_v12  ;;  %2506 = vmatprep.subr.bf16.mxu1 %v3681_v19  ;;  %v489_v19 = vsub.s32 3, %v4425_v2 }
  0xbd   : > { %2379 = vmatprep.subr.bf16.mxu0 %v3684_v13 }
  0xbf   : > { %2507 = vmatpush1.bf16.msra.mxu1 %v3679_v22 }
  0xc0   : > { %2380 = vmatpush1.bf16.msra.mxu0 %v3682_v16  ;;  %2508 = vmatprep.subr.bf16.mxu1 %v3687_v23  ;;  %v485_v16 = vsub.s32 2, %v4425_v2 }
  0xc1   : > { %2381 = vmatprep.subr.bf16.mxu0 %v3690_v17 }
  0xc3   : > { %2509 = vmatpush1.bf16.msra.mxu1 %v3685_v26  ;;  %v486_v26 = vrot.slane %v4431_v4, %v485_v16 }
  0xc4   : > { %2382 = vmatpush1.bf16.msra.mxu0 %v3688_v20  ;;  %2510 = vmatprep.subr.bf16.mxu1 %v3693_v27  ;;  %v3756_v27 = vld [vmem:[#allocation2 + $0x224] ss:$16 sps:$4 sm:$0xff]  }
  0xc5   : > { %2383 = vmatprep.subr.bf16.mxu0 %v3696_v21 }
  0xc7   : > { %2511 = vmatpush1.bf16.msra.mxu1 %v3691_v30 }
  0xc8   : > { %2384 = vmatpush1.bf16.msra.mxu0 %v3694_v24  ;;  %2512 = vmatprep.subr.bf16.mxu1 %v3699_v31  ;;  %v3748_v24 = vld [vmem:[#allocation2 + $0x200] ss:$16 sps:$4 sm:$0xff]  }
  0xc9   : > { %2385 = vmatprep.subr.bf16.mxu0 %v3702_v25  ;;  %v3751_v25 = vld [vmem:[#allocation2 + $0x208] ss:$16 sps:$4 sm:$0xff]   ;;  %v3754_v31 = vld [vmem:[#allocation2 + $0x220] ss:$16 sps:$4 sm:$0xff]  }
  0xcb   : > { %2513 = vmatpush1.bf16.msra.mxu1 %v3697_v35 }
  0xcc   : > { %2386 = vmatpush1.bf16.msra.mxu0 %v3700_v28  ;;  %2514 = vmatprep.subr.bf16.mxu1 %v3705_v36  ;;  %v3759_v28 = vld [vmem:[#allocation2 + $0x22c] ss:$16 sps:$4 sm:$0xff]   ;;  %v3762_v36 = vld [vmem:[#allocation2 + $0x244] ss:$16 sps:$4 sm:$0xff]  }
  0xcd   : > { %2387 = vmatprep.subr.bf16.mxu0 %v3708_v29  ;;  %v490_v29 = vrot.slane %v4431_v4, %v489_v19  ;;  %v3801_v19 = vld [vmem:[#allocation2 + $0x30c] ss:$16 sps:$4 sm:$0xff]  }
  0xcf   : > { %2515 = vmatpush1.bf16.msra.mxu1 %v3703_v39 }
  0xd0   : > { %2388 = vmatpush1.bf16.msra.mxu0 %v3706_v32  ;;  %2516 = vmatprep.subr.bf16.mxu1 %v3711_v40  ;;  %v3757_v32 = vld [vmem:[#allocation2 + $0x228] ss:$16 sps:$4 sm:$0xff]  }
  0xd1   : > { %2389 = vmatprep.subr.bf16.mxu0 %v3714_v34 }
  0xd3   : > { %2517 = vmatpush1.bf16.msra.mxu1 %v3709_v43 }
  0xd4   : > { %2390 = vmatpush1.bf16.msra.mxu0 %v3712_v37  ;;  %2518 = vmatprep.subr.bf16.mxu1 %v3717_v33  ;;  %v3765_v37 = vld [vmem:[#allocation2 + $0x24c] ss:$16 sps:$4 sm:$0xff]  }
  0xd5   : > { %2391 = vmatprep.subr.bf16.mxu0 %v3720_v38 }
  0xd7   : > { %2519 = vmatpush1.bf16.msra.mxu1 %v3715_v46 }
  0xd8   : > { %2392 = vmatpush1.bf16.msra.mxu0 %v3718_v41  ;;  %2520 = vmatprep.subr.bf16.mxu1 %v3723_v47  ;;  %v3768_v47 = vld [vmem:[#allocation2 + $0x264] ss:$16 sps:$4 sm:$0xff]  }
  0xd9   : > { %2393 = vmatprep.subr.bf16.mxu0 %v3726_v42 }
  0xdb   : > { %2521 = vmatpush1.bf16.msra.mxu1 %v3721_v50 }
  0xdc   : > { %2394 = vmatpush1.bf16.msra.mxu0 %v3724_v44  ;;  %2522 = vmatprep.subr.bf16.mxu1 %v3729_v51  ;;  %v3760_v44 = vld [vmem:[#allocation2 + $0x240] ss:$16 sps:$4 sm:$0xff]  }
  0xdd   : > { %2395 = vmatprep.subr.bf16.mxu0 %v3732_v45  ;;  %v3763_v45 = vld [vmem:[#allocation2 + $0x248] ss:$16 sps:$4 sm:$0xff]  }
  0xdf   : > { %2523 = vmatpush1.bf16.msra.mxu1 %v3727_v54  ;;  %v3774_v54 = vld [vmem:[#allocation2 + $0x284] ss:$16 sps:$4 sm:$0xff]  }
  0xe0   : > { %2396 = vmatpush1.bf16.msra.mxu0 %v3730_v48  ;;  %2524 = vmatprep.subr.bf16.mxu1 %v3735_v55  ;;  %v3771_v48 = vld [vmem:[#allocation2 + $0x26c] ss:$16 sps:$4 sm:$0xff]  }
  0xe1   : > { %2397 = vmatprep.subr.bf16.mxu0 %v3738_v49  ;;  %v3777_v55 = vld [vmem:[#allocation2 + $0x28c] ss:$16 sps:$4 sm:$0xff]  }
  0xe3   : > { %2525 = vmatpush1.bf16.msra.mxu1 %v3733_v58  ;;  %v3780_v58 = vld [vmem:[#allocation2 + $0x2a4] ss:$16 sps:$4 sm:$0xff]  }
  0xe4   : > { %2398 = vmatpush1.bf16.msra.mxu0 %v3736_v52  ;;  %2526 = vmatprep.subr.bf16.mxu1 %v3741_v59  ;;  %v3766_v52 = vld [vmem:[#allocation2 + $0x260] ss:$16 sps:$4 sm:$0xff]   ;;  %v3783_v59 = vld [vmem:[#allocation2 + $0x2ac] ss:$16 sps:$4 sm:$0xff]  }
  0xe5   : > { %2399 = vmatprep.subr.bf16.mxu0 %v3744_v53  ;;  %v3769_v53 = vld [vmem:[#allocation2 + $0x268] ss:$16 sps:$4 sm:$0xff]  }
  0xe7   : > { %2527 = vmatpush1.bf16.msra.mxu1 %v3739_v60  ;;  %v3778_v60 = vld [vmem:[#allocation2 + $0x2a0] ss:$16 sps:$4 sm:$0xff]  }
  0xe8   : > { %2400 = vmatpush1.bf16.msra.mxu0 %v3742_v56  ;;  %2528 = vmatprep.subr.bf16.mxu1 %v3747_v62  ;;  %v3772_v56 = vld [vmem:[#allocation2 + $0x280] ss:$16 sps:$4 sm:$0xff]   ;;  %v3781_v62 = vld [vmem:[#allocation2 + $0x2a8] ss:$16 sps:$4 sm:$0xff]  }
  0xe9   : > { %2412 = vmatprep.subr.bf16.mxu0 %v3750_v57  ;;  %v3775_v57 = vld [vmem:[#allocation2 + $0x288] ss:$16 sps:$4 sm:$0xff]  }
  0xeb   : > { %2529 = vmatpush1.bf16.msra.mxu1 %v3745_v63  ;;  %v3786_v63 = vld [vmem:[#allocation2 + $0x2c4] ss:$16 sps:$4 sm:$0xff]  }
  0xec   : > { %2541 = vmatprep.subr.bf16.mxu1 %v3753_v0  ;;  %v3789_v0 = vld [vmem:[#allocation2 + $0x2cc] ss:$16 sps:$4 sm:$0xff]  }
 0x15e   : > { %v1217_v9 = vpop.f32.mrb[0].mxu0 }
 0x15f   : > { %v3419_v61 = vadd.f32 %v1217_v9, %v478_v7  ;;  %v1219_v10 = vpop.f32.mrb[1].mxu0  ;;  %v3792_v9 = vld [vmem:[#allocation2 + $0x2e4] ss:$16 sps:$4 sm:$0xff]  }
 0x160   : > { %v3420_v11 = vadd.f32 %v1219_v10, %v482_v8  ;;  %v1221_v12 = vpop.f32.mrb[2].mxu0 }
 0x161   : > { %v3421_v13 = vadd.f32 %v1221_v12, %v478_v7  ;;  %v1223_v14 = vpop.f32.mrb[3].mxu0  ;;  %v1394_v17 = vmax.f32 %v3419_v61, 0.0  ;;  %v1303_v30 = vpop.f32.mrb[0].mxu1  ;;  %v3795_v61 = vld [vmem:[#allocation2 + $0x2ec] ss:$16 sps:$4 sm:$0xff]  }
 0x162   : > { %v3422_v15 = vadd.f32 %v1223_v14, %v482_v8  ;;  %v1395_v20 = vmax.f32 %v3420_v11, 0.0  ;;  %v3423_v34 = vadd.f32 %v1303_v30, %v486_v26  ;;  %v1305_v35 = vpop.f32.mrb[1].mxu1  ;;  %v493_v8 = vsub.s32 4, %v4425_v2  ;;  %v3790_v14 = vld [vmem:[#allocation2 + $0x2e0] ss:$16 sps:$4 sm:$0xff]  }
 0x163   : > { %v1399_v18 = vmax.f32 %v3421_v13, 0.0  ;;  %v3424_v38 = vadd.f32 %v1305_v35, %v490_v29  ;;  %v1307_v39 = vpop.f32.mrb[2].mxu1  ;;  %v3810_v30 = vld [vmem:[#allocation2 + $0x344] ss:$16 sps:$4 sm:$0xff]  }
 0x164   : > { %v1400_v21 = vmax.f32 %v3422_v15, 0.0  ;;  %v1396_v40 = vmax.f32 %v3423_v34, 0.0  ;;  %v3425_v41 = vadd.f32 %v1307_v39, %v486_v26  ;;  %v1309_v42 = vpop.f32.mrb[3].mxu1  ;;  %v3793_v15 = vld [vmem:[#allocation2 + $0x2e8] ss:$16 sps:$4 sm:$0xff]  }
 0x165   : > { %v1404_v22 = vpack.c.bf16 %v1399_v18, %v1394_v17  ;;  %v1397_v43 = vmax.f32 %v3424_v38, 0.0  ;;  %v3426_v33 = vadd.f32 %v1309_v42, %v490_v29  ;;  %v494_v17 = vrot.slane %v4431_v4, %v493_v8  ;;  %v3798_v18 = vld [vmem:[#allocation2 + $0x304] ss:$16 sps:$4 sm:$0xff]   ;;  %v3811_v38 = vld [vmem:[#allocation2 + $0x348] ss:$16 sps:$4 sm:$0xff]  }
 0x166   : > { %v1405_v23 = vpack.c.bf16 %v1400_v21, %v1395_v20  ;;  %v1401_v46 = vmax.f32 %v3425_v41, 0.0  ;;  %v3796_v20 = vld [vmem:[#allocation2 + $0x300] ss:$16 sps:$4 sm:$0xff]   ;;  %v3799_v21 = vld [vmem:[#allocation2 + $0x308] ss:$16 sps:$4 sm:$0xff]  }
 0x167   : > { %v1402_v49 = vmax.f32 %v3426_v33, 0.0  ;;  %v3819_v41 = vld [vmem:[#allocation2 + $0x36c] ss:$16 sps:$4 sm:$0xff]   ;;  %v3817_v33 = vld [vmem:[#allocation2 + $0x368] ss:$16 sps:$4 sm:$0xff]  }
 0x168   : > { %2401 = vmatprep.mubr.bf16.mxu0 %v1405_v23  ;;  %2530 = vmatprep.mubr.bf16.mxu1 %v1405_v23  ;;  %v4440_v50 = vpack.c.bf16 %v1401_v46, %v1396_v40  ;;  %v3804_v23 = vld [vmem:[#allocation2 + $0x324] ss:$16 sps:$4 sm:$0xff]   ;;  %v3820_v46 = vld [vmem:[#allocation2 + $0x380] ss:$16 sps:$4 sm:$0xff]  }
 0x169   : > { %2402 = vmatmul.mubr.bf16.vlgmr.msra.gmra.mrb[8].mxu0 %v1404_v22  ;;  %2531 = vmatmul.mubr.bf16.vlgmr.msra.gmra.mrb[8].mxu1 %v1404_v22  ;;  %v1407_v51 = vpack.c.bf16 %v1402_v49, %v1397_v43  ;;  %v3816_v40 = vld [vmem:[#allocation2 + $0x364] ss:$16 sps:$4 sm:$0xff]   ;;  %v3814_v43 = vld [vmem:[#allocation2 + $0x360] ss:$16 sps:$4 sm:$0xff]   ;;  %v3831_v49 = vld [vmem:[#allocation2 + $0x3ac] ss:$16 sps:$4 sm:$0xff]  }
 0x16a   : > { %2413 = vmatpush1.bf16.msra.mxu0 %v3748_v24  ;;  %2542 = vmatpush1.bf16.msra.mxu1 %v3751_v25  ;;  %v3807_v24 = vld [vmem:[#allocation2 + $0x32c] ss:$16 sps:$4 sm:$0xff]   ;;  %v3850_v8 = vld [vmem:[#allocation2 + $0x420] ss:$16 sps:$4 sm:$0xff]  }
 0x16b   : > { %2414 = vmatprep.subr.bf16.mxu0 %v3756_v27  ;;  %2543 = vmatprep.subr.bf16.mxu1 %v3759_v28  ;;  %v3802_v27 = vld [vmem:[#allocation2 + $0x320] ss:$16 sps:$4 sm:$0xff]   ;;  %v3805_v28 = vld [vmem:[#allocation2 + $0x328] ss:$16 sps:$4 sm:$0xff]  }
 0x16c   : > { %2444 = vmatprep.mubr.bf16.mxu0 %v1407_v51  ;;  %2573 = vmatprep.mubr.bf16.mxu1 %v1407_v51  ;;  %v3826_v51 = vld [vmem:[#allocation2 + $0x3a0] ss:$16 sps:$4 sm:$0xff]  }
 0x16e   : > { %2415 = vmatpush1.bf16.msra.mxu0 %v3754_v31  ;;  %2544 = vmatpush1.bf16.msra.mxu1 %v3757_v32  ;;  %v3813_v31 = vld [vmem:[#allocation2 + $0x34c] ss:$16 sps:$4 sm:$0xff]  }
 0x16f   : > { %2416 = vmatprep.subr.bf16.mxu0 %v3762_v36  ;;  %2545 = vmatprep.subr.bf16.mxu1 %v3765_v37  ;;  %v3808_v37 = vld [vmem:[#allocation2 + $0x340] ss:$16 sps:$4 sm:$0xff]  }
 0x172   : > { %2417 = vmatpush1.bf16.msra.mxu0 %v3760_v44  ;;  %2546 = vmatpush1.bf16.msra.mxu1 %v3763_v45  ;;  %v3822_v44 = vld [vmem:[#allocation2 + $0x384] ss:$16 sps:$4 sm:$0xff]   ;;  %v3825_v45 = vld [vmem:[#allocation2 + $0x38c] ss:$16 sps:$4 sm:$0xff]  }
 0x173   : > { %2418 = vmatprep.subr.bf16.mxu0 %v3768_v47  ;;  %2547 = vmatprep.subr.bf16.mxu1 %v3771_v48  ;;  %v3823_v47 = vld [vmem:[#allocation2 + $0x388] ss:$16 sps:$4 sm:$0xff]   ;;  %v3828_v48 = vld [vmem:[#allocation2 + $0x3a4] ss:$16 sps:$4 sm:$0xff]  }
 0x176   : > { %2419 = vmatpush1.bf16.msra.mxu0 %v3766_v52  ;;  %2548 = vmatpush1.bf16.msra.mxu1 %v3769_v53  ;;  %v3829_v52 = vld [vmem:[#allocation2 + $0x3a8] ss:$16 sps:$4 sm:$0xff]   ;;  %v3834_v53 = vld [vmem:[#allocation2 + $0x3c4] ss:$16 sps:$4 sm:$0xff]  }
 0x177   : > { %2420 = vmatprep.subr.bf16.mxu0 %v3774_v54  ;;  %2549 = vmatprep.subr.bf16.mxu1 %v3777_v55  ;;  %v3837_v54 = vld [vmem:[#allocation2 + $0x3cc] ss:$16 sps:$4 sm:$0xff]   ;;  %v3832_v55 = vld [vmem:[#allocation2 + $0x3c0] ss:$16 sps:$4 sm:$0xff]  }
 0x17a   : > { %2421 = vmatpush1.bf16.msra.mxu0 %v3772_v56  ;;  %2550 = vmatpush1.bf16.msra.mxu1 %v3775_v57  ;;  %v3835_v56 = vld [vmem:[#allocation2 + $0x3c8] ss:$16 sps:$4 sm:$0xff]   ;;  %v3840_v57 = vld [vmem:[#allocation2 + $0x3e4] ss:$16 sps:$4 sm:$0xff]  }
 0x17b   : > { %2422 = vmatprep.subr.bf16.mxu0 %v3780_v58  ;;  %2551 = vmatprep.subr.bf16.mxu1 %v3783_v59  ;;  %v3843_v58 = vld [vmem:[#allocation2 + $0x3ec] ss:$16 sps:$4 sm:$0xff]   ;;  %v3838_v59 = vld [vmem:[#allocation2 + $0x3e0] ss:$16 sps:$4 sm:$0xff]  }
 0x17e   : > { %2423 = vmatpush1.bf16.msra.mxu0 %v3778_v60  ;;  %2552 = vmatpush1.bf16.msra.mxu1 %v3781_v62  ;;  %v3384_v7 = vpop.f32.mrb[4].mxu0  ;;  %v3841_v60 = vld [vmem:[#allocation2 + $0x3e8] ss:$16 sps:$4 sm:$0xff]   ;;  %v3846_v62 = vld [vmem:[#allocation2 + $0x404] ss:$16 sps:$4 sm:$0xff]  }
 0x17f   : > { %2424 = vmatprep.subr.bf16.mxu0 %v3786_v63  ;;  %2553 = vmatprep.subr.bf16.mxu1 %v3789_v0  ;;  %v3385_v10 = vpop.f32.mrb[5].mxu0  ;;  %v3849_v63 = vld [vmem:[#allocation2 + $0x40c] ss:$16 sps:$4 sm:$0xff]   ;;  %v3844_v0 = vld [vmem:[#allocation2 + $0x400] ss:$16 sps:$4 sm:$0xff]  }
 0x180   : > { %v3386_v11 = vadd.f32 %v3385_v10, %v3384_v7  ;;  %v3387_v12 = vpop.f32.mrb[6].mxu0  ;;  %v3855_v7 = vld [vmem:[#allocation2 + $0x42c] ss:$16 sps:$4 sm:$0xff]  }
 0x181   : > { %v3388_v13 = vpop.f32.mrb[7].mxu0  ;;  %v1387_v26 = vpop.f32.mrb[4].mxu1  ;;  %v3861_v10 = vld [vmem:[#allocation2 + $0x44c] ss:$16 sps:$4 sm:$0xff]  }
 0x182   : > { %2425 = vmatpush1.bf16.msra.mxu0 %v3784_v3  ;;  %2554 = vmatpush1.bf16.msra.mxu1 %v3787_v5  ;;  %v3389_v16 = vadd.f32 %v3388_v13, %v3387_v12  ;;  %v1347_v22 = vadd.f32 %v3386_v11, %v494_v17  ;;  %v3417_v29 = vpop.f32.mrb[5].mxu1  ;;  %v3847_v3 = vld [vmem:[#allocation2 + $0x408] ss:$16 sps:$4 sm:$0xff]   ;;  %v3852_v5 = vld [vmem:[#allocation2 + $0x424] ss:$16 sps:$4 sm:$0xff]  }
 0x183   : > { %2426 = vmatprep.subr.bf16.mxu0 %v3792_v9  ;;  %2555 = vmatprep.subr.bf16.mxu1 %v3795_v61  ;;  %v1390_v32 = vpop.f32.mrb[6].mxu1  ;;  %v3853_v9 = vld [vmem:[#allocation2 + $0x428] ss:$16 sps:$4 sm:$0xff]   ;;  %v3858_v61 = vld [vmem:[#allocation2 + $0x444] ss:$16 sps:$4 sm:$0xff]  }
 0x184   : > { %v1350_v25 = vadd.f32 %v3389_v16, %v494_v17  ;;  %v1388_v4 = vadd.f32 %v1387_v26, %v1347_v22  ;;  %v3418_v36 = vpop.f32.mrb[7].mxu1  ;;  %v3856_v11 = vld [vmem:[#allocation2 + $0x440] ss:$16 sps:$4 sm:$0xff]   ;;  %v3859_v12 = vld [vmem:[#allocation2 + $0x448] ss:$16 sps:$4 sm:$0xff]  }
 0x185   : > { %v3864_v13 = vld [vmem:[#allocation2 + $0x464] ss:$16 sps:$4 sm:$0xff]   ;;  %v3873_v17 = vld [vmem:[#allocation2 + $0x48c] ss:$16 sps:$4 sm:$0xff]   ;;  %v3877_v22 = vld [vmem:[#allocation2 + $0x4a8] ss:$16 sps:$4 sm:$0xff]  }
 0x186   : > { %2427 = vmatpush1.bf16.msra.mxu0 %v3790_v14  ;;  %2556 = vmatpush1.bf16.msra.mxu1 %v3793_v15  ;;  %v1398_v34 = vmax.f32 %v1388_v4, 0.0  ;;  %v1391_v35 = vadd.f32 %v1390_v32, %v1350_v25  ;;  %v3862_v14 = vld [vmem:[#allocation2 + $0x460] ss:$16 sps:$4 sm:$0xff]   ;;  %v3865_v15 = vld [vmem:[#allocation2 + $0x468] ss:$16 sps:$4 sm:$0xff]  }
 0x187   : > { %2428 = vmatprep.subr.bf16.mxu0 %v3798_v18  ;;  %2557 = vmatprep.subr.bf16.mxu1 %v3801_v19  ;;  %v3870_v16 = vld [vmem:[#allocation2 + $0x484] ss:$16 sps:$4 sm:$0xff]   ;;  %v3868_v18 = vld [vmem:[#allocation2 + $0x480] ss:$16 sps:$4 sm:$0xff]   ;;  %v3883_v26 = vld [vmem:[#allocation2 + $0x4c8] ss:$16 sps:$4 sm:$0xff]  }
 0x188   : > { %v1403_v39 = vmax.f32 %v1391_v35, 0.0  ;;  %v3876_v19 = vld [vmem:[#allocation2 + $0x4a4] ss:$16 sps:$4 sm:$0xff]   ;;  %v3880_v25 = vld [vmem:[#allocation2 + $0x4c0] ss:$16 sps:$4 sm:$0xff]  }
 0x189   : > { %v3886_v4 = vld [vmem:[#allocation2 + $0x4e0] ss:$16 sps:$4 sm:$0xff]   ;;  %v3889_v29 = vld [vmem:[#allocation2 + $0x4e8] ss:$16 sps:$4 sm:$0xff]  }
 0x18a   : > { %2429 = vmatpush1.bf16.msra.mxu0 %v3796_v20  ;;  %2558 = vmatpush1.bf16.msra.mxu1 %v3799_v21  ;;  %v4444_v42 = vpack.c.bf16 %v1403_v39, %v1398_v34  ;;  %v3879_v20 = vld [vmem:[#allocation2 + $0x4ac] ss:$16 sps:$4 sm:$0xff]   ;;  %v3874_v21 = vld [vmem:[#allocation2 + $0x4a0] ss:$16 sps:$4 sm:$0xff]  }
 0x18b   : > { %2430 = vmatprep.subr.bf16.mxu0 %v3804_v23  ;;  %2559 = vmatprep.subr.bf16.mxu1 %v3807_v24  ;;  %v3882_v23 = vld [vmem:[#allocation2 + $0x4c4] ss:$16 sps:$4 sm:$0xff]   ;;  %v3885_v24 = vld [vmem:[#allocation2 + $0x4cc] ss:$16 sps:$4 sm:$0xff]  }
 0x18e   : > { %2431 = vmatpush1.bf16.msra.mxu0 %v3802_v27  ;;  %2560 = vmatpush1.bf16.msra.mxu1 %v3805_v28  ;;  %v3888_v27 = vld [vmem:[#allocation2 + $0x4e4] ss:$16 sps:$4 sm:$0xff]   ;;  %v3891_v28 = vld [vmem:[#allocation2 + $0x4ec] ss:$16 sps:$4 sm:$0xff]  }
 0x18f   : > { %2432 = vmatprep.subr.bf16.mxu0 %v3810_v30  ;;  %2561 = vmatprep.subr.bf16.mxu1 %v3813_v31 }
 0x192   : > { %2433 = vmatpush1.bf16.msra.mxu0 %v3808_v37  ;;  %2562 = vmatpush1.bf16.msra.mxu1 %v3811_v38 }
 0x193   : > { %2434 = vmatprep.subr.bf16.mxu0 %v3816_v40  ;;  %2563 = vmatprep.subr.bf16.mxu1 %v3819_v41 }
 0x196   : > { %2435 = vmatpush1.bf16.msra.mxu0 %v3814_v43  ;;  %2564 = vmatpush1.bf16.msra.mxu1 %v3817_v33  ;;  %v3940_v43 = vmov (!%p4619_p3), 0.0  }
 0x197   : > { %2436 = vmatprep.subr.bf16.mxu0 %v3822_v44  ;;  %2565 = vmatprep.subr.bf16.mxu1 %v3825_v45  ;;  %2663 = vst.msk [vmem:[%s4610_s7] sm:$0xf] (!%p4619_p3), %vm2661_vm1, %v3940_v43  ;;  %2664 = vst.msk [vmem:[%s4611_s8] sm:$0xf] (!%p4619_p3), %vm2661_vm1, %v3940_v43 }
 0x19a   : > { %2437 = vmatpush1.bf16.msra.mxu0 %v3820_v46  ;;  %2566 = vmatpush1.bf16.msra.mxu1 %v3823_v47 }
 0x19b   : > { %2438 = vmatprep.subr.bf16.mxu0 %v3828_v48  ;;  %2567 = vmatprep.subr.bf16.mxu1 %v3831_v49 }
 0x19e   : > { %2439 = vmatpush1.bf16.msra.mxu0 %v3826_v51  ;;  %2568 = vmatpush1.bf16.msra.mxu1 %v3829_v52 }
 0x19f   : > { %2440 = vmatprep.subr.bf16.mxu0 %v3834_v53  ;;  %2569 = vmatprep.subr.bf16.mxu1 %v3837_v54 }
 0x1a2   : > { %2441 = vmatpush1.bf16.msra.mxu0 %v3832_v55  ;;  %2570 = vmatpush1.bf16.msra.mxu1 %v3835_v56 }
 0x1a3   : > { %2442 = vmatprep.subr.bf16.mxu0 %v3840_v57  ;;  %2571 = vmatprep.subr.bf16.mxu1 %v3843_v58 }
 0x1a6   : > { %2443 = vmatpush1.bf16.msra.mxu0 %v3838_v59  ;;  %2572 = vmatpush1.bf16.msra.mxu1 %v3841_v60 }
 0x1a7   : > { %2455 = vmatprep.subr.bf16.mxu0 %v3846_v62  ;;  %2584 = vmatprep.subr.bf16.mxu1 %v3849_v63 }
 0x1a9   : > { %2445 = vmatmul.mubr.bf16.vlgmr.msra.gmra.mrb[8].mxu0 %v4440_v50  ;;  %2574 = vmatmul.mubr.bf16.vlgmr.msra.gmra.mrb[8].mxu1 %v4440_v50  ;;  %v3867_v50 = vld [vmem:[#allocation2 + $0x46c] ss:$16 sps:$4 sm:$0xff]  }
 0x1aa   : > { %2456 = vmatpush1.bf16.msra.mxu0 %v3844_v0  ;;  %2585 = vmatpush1.bf16.msra.mxu1 %v3847_v3 }
 0x1ab   : > { %2457 = vmatprep.subr.bf16.mxu0 %v3852_v5  ;;  %2586 = vmatprep.subr.bf16.mxu1 %v3855_v7 }
 0x1ac   : > { %2487 = vmatprep.mubr.bf16.mxu0 %v3937_v6  ;;  %2616 = vmatprep.mubr.bf16.mxu1 %v3937_v6  ;;  %v3871_v6 = vld [vmem:[#allocation2 + $0x488] ss:$16 sps:$4 sm:$0xff]  }
 0x1ae   : > { %2458 = vmatpush1.bf16.msra.mxu0 %v3850_v8  ;;  %2587 = vmatpush1.bf16.msra.mxu1 %v3853_v9 }
 0x1af   : > { %2459 = vmatprep.subr.bf16.mxu0 %v3858_v61  ;;  %2588 = vmatprep.subr.bf16.mxu1 %v3861_v10 }
 0x1b2   : > { %2460 = vmatpush1.bf16.msra.mxu0 %v3856_v11  ;;  %2589 = vmatpush1.bf16.msra.mxu1 %v3859_v12 }
 0x1b3   : > { %2461 = vmatprep.subr.bf16.mxu0 %v3864_v13  ;;  %2590 = vmatprep.subr.bf16.mxu1 %v3867_v50 }
 0x1b6   : > { %2462 = vmatpush1.bf16.msra.mxu0 %v3862_v14  ;;  %2591 = vmatpush1.bf16.msra.mxu1 %v3865_v15 }
 0x1b7   : > { %2463 = vmatprep.subr.bf16.mxu0 %v3870_v16  ;;  %2592 = vmatprep.subr.bf16.mxu1 %v3873_v17 }
 0x1ba   : > { %2464 = vmatpush1.bf16.msra.mxu0 %v3868_v18  ;;  %2593 = vmatpush1.bf16.msra.mxu1 %v3871_v6 }
 0x1bb   : > { %2465 = vmatprep.subr.bf16.mxu0 %v3876_v19  ;;  %2594 = vmatprep.subr.bf16.mxu1 %v3879_v20 }
 0x1be   : > { %2466 = vmatpush1.bf16.msra.mxu0 %v3874_v21  ;;  %2595 = vmatpush1.bf16.msra.mxu1 %v3877_v22 }
 0x1bf   : > { %2467 = vmatprep.subr.bf16.mxu0 %v3882_v23  ;;  %2596 = vmatprep.subr.bf16.mxu1 %v3885_v24 }
 0x1c2   : > { %2468 = vmatpush1.bf16.msra.mxu0 %v3880_v25  ;;  %2597 = vmatpush1.bf16.msra.mxu1 %v3883_v26 }
 0x1c3   : > { %2469 = vmatprep.subr.bf16.mxu0 %v3888_v27  ;;  %2598 = vmatprep.subr.bf16.mxu1 %v3891_v28 }
 0x1c6   : > { %2470 = vmatpush1.bf16.msra.mxu0 %v3886_v4  ;;  %2599 = vmatpush1.bf16.msra.mxu1 %v3889_v29 }
 0x1c9   : > { %2488 = vmatmul.mubr.bf16.vlgmr.msra.gmra.mrb[8].mxu0 %v4444_v42  ;;  %2617 = vmatmul.mubr.bf16.vlgmr.msra.gmra.mrb[8].mxu1 %v4444_v42 }
 0x29c   : > { %v4453_v30 = vpop.f32.mrb[8].mxu0  ;;  %v4455_v31 = vpop.f32.mrb[8].mxu1  ;;  %2658 = sbr.rel (%p4619_p3) target bundleno = 675 (0x2a3), region = 52 }
 0x29d   : > { %v4460_v32 = vpop.f32.mrb[9].mxu0  ;;  %v4462_v34 = vpop.f32.mrb[9].mxu1 }
 0x29e   : > { %v3364_v35 = vpack.c.bf16 %v4460_v32, %v4453_v30  ;;  %v3365_v36 = vpack.c.bf16 %v4462_v34, %v4455_v31  ;;  %v4468_v37 = vpop.f32.mrb[10].mxu0  ;;  %v4470_v38 = vpop.f32.mrb[10].mxu1 }
 0x29f   : > { %v4472_v39 = vpop.f32.mrb[11].mxu0  ;;  %v4474_v40 = vpop.f32.mrb[11].mxu1 }
 0x2a0   : > { %2651 = vst [vmem:[%s322_s11] sm:$0xff] %v3364_v35  ;;  %2652 = vst [vmem:[%s322_s11 + $0x8] sm:$0xff] %v3365_v36  ;;  %v3366_v41 = vpack.c.bf16 %v4472_v39, %v4468_v37  ;;  %v3367_v42 = vpack.c.bf16 %v4474_v40, %v4470_v38 }
 0x2a2   : > { %2653 = vst [vmem:[%s322_s11 + $0x10] sm:$0xff] %v3366_v41  ;;  %2654 = vst [vmem:[%s322_s11 + $0x18] sm:$0xff] %v3367_v42 }
 0x2a3 PF: > { %p3356_p4 = scmp.eq.s32.totalorder %s3995_s28, 1 }
 0x2a4   : > { %v2670_v33 = vadd.f32 (!%p3356_p4), %v4468_v37, %v4453_v30  ;;  %v2677_v44 = vadd.f32 (!%p3356_p4), %v4472_v39, %v4460_v32  ;;  %v2684_v45 = vadd.f32 (!%p3356_p4), %v4470_v38, %v4455_v31  ;;  %v2691_v46 = vadd.f32 (!%p3356_p4), %v4474_v40, %v4462_v34 }
 0x2a5   : > { %2668 = sbr.rel (%p3356_p4) target bundleno = 710 (0x2c6), region = 56  ;;  %v2734_v47 = vmul.f32 (!%p3356_p4), %v4453_v30, %v4453_v30  ;;  %v2735_v48 = vmul.f32 (!%p3356_p4), %v4460_v32, %v4460_v32  ;;  %v3941_v54 = vmov (!%p3356_p4), 1966171168   ;;  %v2736_v56 = vmul.f32 (!%p3356_p4), %v4455_v31, %v4455_v31 }
 0x2a6   : > { %v2671_v49 = vrot.slane (!%p3356_p4), %v2670_v33, 4  ;;  %v2678_v51 = vrot.slane (!%p3356_p4), %v2677_v44, 4  ;;  %v2685_v52 = vrot.slane (!%p3356_p4), %v2684_v45, 4  ;;  %v2692_v53 = vrot.slane (!%p3356_p4), %v2691_v46, 4 }
 0x2a7   : > { %v2705_v55 = vunpack.c.l.s4 (!%p3356_p4), %v3941_v54  ;;  %v2737_v57 = vmul.f32 (!%p3356_p4), %v4462_v34, %v4462_v34  ;;  %v2738_v58 = vmul.f32 (!%p3356_p4), %v4468_v37, %v4468_v37  ;;  %v2739_v3 = vmul.f32 (!%p3356_p4), %v4472_v39, %v4472_v39 }
 0x2a8   : > { %v2672_v59 = vadd.f32 (!%p3356_p4), %v2671_v49, %v2670_v33  ;;  %v2679_v60 = vadd.f32 (!%p3356_p4), %v2678_v51, %v2677_v44  ;;  %v2686_v62 = vadd.f32 (!%p3356_p4), %v2685_v52, %v2684_v45  ;;  %v2693_v63 = vadd.f32 (!%p3356_p4), %v2692_v53, %v2691_v46 }
 0x2a9   : > { %v2706_v0 = vunpack.c.0.s8 (!%p3356_p4), %v2705_v55  ;;  %v2740_v5 = vmul.f32 (!%p3356_p4), %v4470_v38, %v4470_v38  ;;  %v2741_v7 = vmul.f32 (!%p3356_p4), %v4474_v40, %v4474_v40  ;;  %v2742_v12 = vadd.f32 (!%p3356_p4), %v2738_v58, %v2734_v47  ;;  %v2669_v58 = vld [vmem:[%s4610_s7] sm:$0xf] (!%p3356_p4) }
 0x2aa   : > { %v2673_v8 = vrot.slane (!%p3356_p4), %v2672_v59, 2  ;;  %v2680_v9 = vrot.slane (!%p3356_p4), %v2679_v60, 2  ;;  %v2687_v61 = vrot.slane (!%p3356_p4), %v2686_v62, 2  ;;  %v2694_v10 = vrot.slane (!%p3356_p4), %v2693_v63, 2 }
 0x2ab   : > { %v2709_v11 = vsub.s32 (!%p3356_p4), %v2706_v0, %v4425_v2  ;;  %v2749_v13 = vadd.f32 (!%p3356_p4), %v2739_v3, %v2735_v48  ;;  %v2756_v50 = vadd.f32 (!%p3356_p4), %v2740_v5, %v2736_v56  ;;  %v2743_v18 = vrot.slane (!%p3356_p4), %v2742_v12, 4 }
 0x2ac   : > { %v2674_v14 = vadd.f32 %v2673_v8, %v2672_v59  ;;  %v2681_v15 = vadd.f32 %v2680_v9, %v2679_v60  ;;  %v2688_v16 = vadd.f32 %v2687_v61, %v2686_v62  ;;  %v2695_v17 = vadd.f32 %v2694_v10, %v2693_v63 }
 0x2ad   : > { %v2750_v6 = vrot.slane %v2749_v13, 4  ;;  %v2757_v19 = vrot.slane %v2756_v50, 4  ;;  %v2763_v20 = vadd.f32 %v2741_v7, %v2737_v57  ;;  %v2744_v25 = vadd.f32 %v2743_v18, %v2742_v12  ;;  %v2733_v12 = vld [vmem:[%s4611_s8] sm:$0xf] }
 0x2ae   : > { %v2675_v21 = vrot.slane %v2674_v14, 1  ;;  %v2682_v22 = vrot.slane %v2681_v15, 1  ;;  %v2689_v23 = vrot.slane %v2688_v16, 1  ;;  %v2696_v24 = vrot.slane %v2695_v17, 1 }
 0x2af   : > { %v2751_v26 = vadd.f32 %v2750_v6, %v2749_v13  ;;  %v2758_v27 = vadd.f32 %v2757_v19, %v2756_v50  ;;  %v2764_v28 = vrot.slane %v2763_v20, 4  ;;  %v2745_v41 = vrot.slane %v2744_v25, 2 }
 0x2b0   : > { %v2676_v4 = vadd.f32 %v2675_v21, %v2674_v14  ;;  %v2683_v29 = vadd.f32 %v2682_v22, %v2681_v15  ;;  %v2690_v35 = vadd.f32 %v2689_v23, %v2688_v16  ;;  %v2697_v36 = vadd.f32 %v2696_v24, %v2695_v17 }
 0x2b1   : > { %v2752_v42 = vrot.slane %v2751_v26, 2  ;;  %v2759_v43 = vrot.slane %v2758_v27, 2  ;;  %v2765_v33 = vadd.f32 %v2764_v28, %v2763_v20  ;;  %v2746_v46 = vadd.f32 %v2745_v41, %v2744_v25 }
 0x2b2   : > { %v2702_v44 = vcombine.low %v2676_v4, %v2683_v29  ;;  %v2703_v45 = vcombine.low %v2690_v35, %v2697_v36  ;;  %vm2730_vm2 = vcmp.lt.s32.totalorder %v475_v1, 512 }
 0x2b3   : > { %v2753_v47 = vadd.f32 %v2752_v42, %v2751_v26  ;;  %v2760_v48 = vadd.f32 %v2759_v43, %v2758_v27  ;;  %v2766_v49 = vrot.slane %v2765_v33, 2  ;;  %v2747_v53 = vrot.slane %v2746_v46, 1 }
 0x2b4   : > { %v2710_v51 = vrot.slane %v2702_v44, %v2709_v11  ;;  %v2717_v52 = vrot.slane %v2703_v45, %v2709_v11 }
 0x2b5   : > { %v2754_v54 = vrot.slane %v2753_v47, 1  ;;  %v2761_v55 = vrot.slane %v2760_v48, 1  ;;  %v2767_v56 = vadd.f32 %v2766_v49, %v2765_v33  ;;  %v2748_v59 = vadd.f32 %v2747_v53, %v2746_v46 }
 0x2b6   : > { %v2718_v57 = vcombine.low %v2710_v51, %v2717_v52 }
 0x2b7   : > { %v2755_v60 = vadd.f32 %v2754_v54, %v2753_v47  ;;  %v2762_v62 = vadd.f32 %v2761_v55, %v2760_v48  ;;  %v2768_v63 = vrot.slane %v2767_v56, 1 }
 0x2b8   : > { %v2725_v0 = vrot.slane %v2718_v57, %v2709_v11 }
 0x2b9   : > { %v2769_v3 = vadd.f32 %v2768_v63, %v2767_v56  ;;  %v2774_v5 = vcombine.low %v2748_v59, %v2755_v60 }
 0x2ba   : > { %v2727_v7 = vadd.f32 %v2725_v0, %v2669_v58 }
 0x2bb   : > { %v2775_v8 = vcombine.low %v2762_v62, %v2769_v3  ;;  %v2782_v9 = vrot.slane %v2774_v5, %v2709_v11 }
 0x2bc   : > { %2732 = vst.msk [vmem:[%s4610_s7] sm:$0xf] %vm2730_vm2, %v2727_v7 }
 0x2bd   : > { %v2789_v61 = vrot.slane %v2775_v8, %v2709_v11 }
 0x2bf   : > { %v2790_v10 = vcombine.low %v2782_v9, %v2789_v61 }
 0x2c1   : > { %v2797_v13 = vrot.slane %v2790_v10, %v2709_v11 }
 0x2c3   : > { %v2799_v50 = vadd.f32 %v2797_v13, %v2733_v12 }
 0x2c5   : > { %2800 = vst.msk [vmem:[%s4611_s8] sm:$0xf] %vm2730_vm2, %v2799_v50 }
 0x2c6 PF: > { %p3357_p6 = scmp.ne.s32.totalorder %s3995_s28, 1 }
 0x2c7   : > { %s3358_s23 = sshll.u32 (!%p3357_p6), %s3995_s28, 4  ;;  %v2808_v14 = vadd.s32 (!%p3357_p6), 8, %v4425_v2  ;;  %v3942_v18 = vmov (!%p3357_p6), 1966171168   ;;  %v3943_v19 = vmov (!%p3357_p6), 0.0   ;;  %vm4559_vm5 = vcmp.lt.s32.totalorder (!%p3357_p6), %v475_v1, 512 }
 0x2c8   : > { %2804 = sbr.rel (%p3357_p6) target bundleno = 781 (0x30d), region = 60  ;;  %v2809_v15 = vstv (!%p3357_p6), %s3358_s23  ;;  %v2862_v6 = vunpack.c.l.s4 (!%p3357_p6), %v3942_v18 }
 0x2c9   : > { %v2810_v16 = vadd.s32 (!%p3357_p6), %v2809_v15, %v4425_v2  ;;  %v2811_v17 = vadd.s32 (!%p3357_p6), %v2809_v15, %v2808_v14 }
 0x2ca   : > { %v2863_v11 = vunpack.c.0.s8 (!%p3357_p6), %v2862_v6 }
 0x2cb   : > { %vm2812_vm3 = vcmp.lt.s32.totalorder (!%p3357_p6), %v2810_v16, 20  ;;  %vm2813_vm4 = vcmp.lt.s32.totalorder (!%p3357_p6), %v2811_v17, 20 }
 0x2cc   : > { %v3359_v20 = vsel (!%p3357_p6), %vm2812_vm3, 1.0, %v3943_v19  ;;  %v3360_v21 = vsel (!%p3357_p6), %vm2813_vm4, 1.0, %v3943_v19  ;;  %v4541_v29 = vsub.s32 (!%p3357_p6), %v2863_v11, %v4425_v2 }
 0x2cd   : > { %v2818_v22 = vmul.f32 (!%p3357_p6), %v3359_v20, %v4453_v30  ;;  %v2819_v23 = vmul.f32 (!%p3357_p6), %v3359_v20, %v4460_v32  ;;  %v2820_v24 = vmul.f32 (!%p3357_p6), %v3359_v20, %v4455_v31  ;;  %v2821_v25 = vmul.f32 (!%p3357_p6), %v3359_v20, %v4462_v34 }
 0x2ce   : > { %v2822_v26 = vmul.f32 (!%p3357_p6), %v3360_v21, %v4468_v37  ;;  %v2823_v27 = vmul.f32 (!%p3357_p6), %v3360_v21, %v4472_v39  ;;  %v2824_v28 = vmul.f32 (!%p3357_p6), %v3360_v21, %v4470_v38  ;;  %v2825_v4 = vmul.f32 (!%p3357_p6), %v3360_v21, %v4474_v40 }
 0x2cf   : > { %v2891_v35 = vmul.f32 %v2818_v22, %v4453_v30  ;;  %v2892_v36 = vmul.f32 %v2819_v23, %v4460_v32  ;;  %v2893_v41 = vmul.f32 %v2820_v24, %v4455_v31  ;;  %v2894_v45 = vmul.f32 %v2821_v25, %v4462_v34 }
 0x2d0   : > { %v2827_v42 = vadd.f32 %v2822_v26, %v2818_v22  ;;  %v2834_v43 = vadd.f32 %v2823_v27, %v2819_v23  ;;  %v2841_v33 = vadd.f32 %v2824_v28, %v2820_v24  ;;  %v2848_v44 = vadd.f32 %v2825_v4, %v2821_v25 }
 0x2d1   : > { %v2895_v46 = vmul.f32 %v2822_v26, %v4468_v37  ;;  %v2896_v47 = vmul.f32 %v2823_v27, %v4472_v39  ;;  %v2897_v48 = vmul.f32 %v2824_v28, %v4470_v38  ;;  %v2898_v32 = vmul.f32 %v2825_v4, %v4474_v40 }
 0x2d2   : > { %v2828_v2 = vrot.slane %v2827_v42, 4  ;;  %v2835_v49 = vrot.slane %v2834_v43, 4  ;;  %v2842_v51 = vrot.slane %v2841_v33, 4  ;;  %v2849_v30 = vrot.slane %v2848_v44, 4 }
 0x2d3   : > { %v2899_v52 = vadd.f32 %v2895_v46, %v2891_v35  ;;  %v2906_v31 = vadd.f32 %v2896_v47, %v2892_v36  ;;  %v2913_v53 = vadd.f32 %v2897_v48, %v2893_v41  ;;  %v2920_v59 = vadd.f32 %v2898_v32, %v2894_v45  ;;  %v2826_v46 = vld [vmem:[%s4610_s7] sm:$0xf] }
 0x2d4   : > { %v2829_v54 = vadd.f32 %v2828_v2, %v2827_v42  ;;  %v2836_v55 = vadd.f32 %v2835_v49, %v2834_v43  ;;  %v2843_v56 = vadd.f32 %v2842_v51, %v2841_v33  ;;  %v2850_v57 = vadd.f32 %v2849_v30, %v2848_v44 }
 0x2d5   : > { %v2900_v34 = vrot.slane %v2899_v52, 4  ;;  %v2907_v58 = vrot.slane %v2906_v31, 4  ;;  %v2914_v37 = vrot.slane %v2913_v53, 4  ;;  %v2921_v5 = vrot.slane %v2920_v59, 4 }
 0x2d6   : > { %v2830_v39 = vrot.slane %v2829_v54, 2  ;;  %v2837_v60 = vrot.slane %v2836_v55, 2  ;;  %v2844_v38 = vrot.slane %v2843_v56, 2  ;;  %v2851_v62 = vrot.slane %v2850_v57, 2 }
 0x2d7   : > { %v2901_v63 = vadd.f32 %v2900_v34, %v2899_v52  ;;  %v2908_v0 = vadd.f32 %v2907_v58, %v2906_v31  ;;  %v2915_v3 = vadd.f32 %v2914_v37, %v2913_v53  ;;  %v2922_v13 = vadd.f32 %v2921_v5, %v2920_v59  ;;  %v2890_v52 = vld [vmem:[%s4611_s8] sm:$0xf] }
 0x2d8   : > { %v2831_v40 = vadd.f32 %v2830_v39, %v2829_v54  ;;  %v2838_v7 = vadd.f32 %v2837_v60, %v2836_v55  ;;  %v2845_v8 = vadd.f32 %v2844_v38, %v2843_v56  ;;  %v2852_v9 = vadd.f32 %v2851_v62, %v2850_v57  ;;  %v2965_v37 = vld [vmem:[%s4607_s4] sm:$0xf] }
 0x2d9   : > { %v2902_v61 = vrot.slane %v2901_v63, 2  ;;  %v2909_v10 = vrot.slane %v2908_v0, 2  ;;  %v2916_v12 = vrot.slane %v2915_v3, 2  ;;  %v2923_v11 = vrot.slane %v2922_v13, 2  ;;  %v2970_v60 = vld [vmem:[%s4608_s5] sm:$0xf] }
 0x2da   : > { %v2832_v50 = vrot.slane %v2831_v40, 1  ;;  %v2839_v14 = vrot.slane %v2838_v7, 1  ;;  %v2846_v15 = vrot.slane %v2845_v8, 1  ;;  %v2853_v16 = vrot.slane %v2852_v9, 1 }
 0x2db   : > { %v2903_v17 = vadd.f32 %v2902_v61, %v2901_v63  ;;  %v2910_v18 = vadd.f32 %v2909_v10, %v2908_v0  ;;  %v2917_v6 = vadd.f32 %v2916_v12, %v2915_v3  ;;  %v2924_v26 = vadd.f32 %v2923_v11, %v2922_v13 }
 0x2dc   : > { %v2833_v19 = vadd.f32 %v2832_v50, %v2831_v40  ;;  %v2840_v20 = vadd.f32 %v2839_v14, %v2838_v7  ;;  %v2847_v21 = vadd.f32 %v2846_v15, %v2845_v8  ;;  %v2854_v22 = vadd.f32 %v2853_v16, %v2852_v9 }
 0x2dd   : > { %v2904_v23 = vrot.slane %v2903_v17, 1  ;;  %v2911_v24 = vrot.slane %v2910_v18, 1  ;;  %v2918_v25 = vrot.slane %v2917_v6, 1  ;;  %v2925_v41 = vrot.slane %v2924_v26, 1 }
 0x2de   : > { %v2859_v27 = vcombine.low %v2833_v19, %v2840_v20  ;;  %v2860_v28 = vcombine.low %v2847_v21, %v2854_v22 }
 0x2df   : > { %v2905_v4 = vadd.f32 %v2904_v23, %v2903_v17  ;;  %v2912_v35 = vadd.f32 %v2911_v24, %v2910_v18  ;;  %v2919_v36 = vadd.f32 %v2918_v25, %v2917_v6  ;;  %v2926_v33 = vadd.f32 %v2925_v41, %v2924_v26 }
 0x2e0   : > { %v2867_v42 = vrot.slane %v2859_v27, %v4541_v29  ;;  %v2874_v43 = vrot.slane %v2860_v28, %v4541_v29 }
 0x2e1   : > { %v2931_v44 = vcombine.low %v2905_v4, %v2912_v35  ;;  %v2932_v47 = vcombine.low %v2919_v36, %v2926_v33 }
 0x2e2   : > { %v2875_v45 = vcombine.low %v2867_v42, %v2874_v43 }
 0x2e3   : > { %v2939_v48 = vrot.slane %v2931_v44, %v4541_v29  ;;  %v2946_v51 = vrot.slane %v2932_v47, %v4541_v29 }
 0x2e4   : > { %v2882_v2 = vrot.slane %v2875_v45, %v4541_v29 }
 0x2e5   : > { %v2947_v32 = vcombine.low %v2939_v48, %v2946_v51 }
 0x2e6   : > { %v2884_v30 = vadd.f32 %v2882_v2, %v2826_v46 }
 0x2e7   : > { %v2954_v31 = vrot.slane %v2947_v32, %v4541_v29 }
 0x2e8   : > { %2889 = vst.msk [vmem:[%s4610_s7] sm:$0xf] %vm4559_vm5, %v2884_v30 }
 0x2e9   : > { %v2956_v1 = vadd.f32 %v2954_v31, %v2890_v52 }
 0x2eb   : > { %2957 = vst.msk [vmem:[%s4611_s8] sm:$0xf] %vm4559_vm5, %v2956_v1 }
 0x2ef   : > { %v2958_v53 = vld [vmem:[%s4610_s7] sm:$0xf] }
 0x2f0   : > { %v2959_v54 = vmul.f32 0.05, %v2958_v53 }
 0x2f2   : > { %v2962_v55 = vmul.f32 %v2959_v54, %v2959_v54  ;;  %v2960_v56 = vld [vmem:[%s4611_s8] sm:$0xf] }
 0x2f3   : > { %v2961_v57 = vmul.f32 0.05, %v2960_v56 }
 0x2f5   : > { %v2963_v34 = vsub.f32 %v2961_v57, %v2962_v55 }
 0x2f7   : > { %v2964_v29 = vmax.f32 %v2963_v34, 0.0 }
 0x2f9   : > { %v2966_v58 = vadd.f32 1e-05, %v2964_v29 }
 0x2fb   : > { %3892 = vrsqrt.f32 %v2966_v58 }
 0x305   : > { %v3893_v59 = vpop.eup %3892 }
 0x306   : > { %v2968_v39 = vmul.f32 %v3893_v59, %v2965_v37 }
 0x308   : > { %2969 = vst.msk [vmem:[%s4610_s7] sm:$0xf] %vm4559_vm5, %v2968_v39  ;;  %v2971_v38 = vmul.f32 %v2968_v39, %v2959_v54 }
 0x30a   : > { %v2972_v62 = vsub.f32 %v2970_v60, %v2971_v38 }
 0x30c   : > { %2973 = vst.msk [vmem:[%s4611_s8] sm:$0xf] %vm4559_vm5, %v2972_v62 }
 0x30d PF: > { %s20_s27 = sadd.s32 1, %s3932_s27  }
 0x30e   : > { %p17_p10 = scmp.ge.s32.totalorder %s20_s27, 4  }
 0x310   :  { %19 = sbr.rel (!%p17_p10) target bundleno = 1 (0x1), region = 107 }
 0x317   :  { %3010 = vsyncpa [#allocation3], 1 }
 0x318   :  { %3012 = vsyncpa [#allocation3 + $0x1], 1 }

</bundles_post_ra>
